<compile_context>
chip_gen: v7x
topology: tpu7x:2x2x1
jax: 0.10.0
libtpu: 0.0.40
codegen_flags: <defaults>
</compile_context>

<pallas_src>
import functools

import jax
import jax.numpy as jnp
from jax.experimental import pallas as pl
from jax.experimental.pallas import tpu as pltpu


def _round_up(n, m):
    return (n + m - 1) // m * m


def _dense_capsule_kernel(x_ref, w_ref, e_ref, et_ref, out_ref, logits_ref, *,
                          routings, out_num_caps, out_dim_caps, caps_tile,
                          num_caps_tiles):
    O, D = out_num_caps, out_dim_caps
    TI, NI = caps_tile, num_caps_tiles
    _, K, TB = x_ref.shape                     # x block: (I_pad, K, TB), bf16
    M = O * D
    L = TI * TB
    assert x_ref.shape[0] == TI * NI

    e_mat = e_ref[...]                         # [M, O] f32  (sum D lanes -> capsule)
    et_mat = et_ref[...]                       # [O, M] f32  (broadcast capsule -> D lanes)

    # ---- x_hat for one I-chunk: bf16 MXU matmul, f32 accumulation -----------
    # x_hat[i, b, m] = sum_k x[i, k, b] * w[i, k, m]
    def xhat_chunk(ci):
        xc = x_ref[pl.ds(ci * TI, TI), :, :]   # [TI, K, TB] bf16
        wc = w_ref[pl.ds(ci * TI, TI), :, :]   # [TI, K, M]  bf16
        return jax.lax.dot_general(
            xc, wc, (((1,), (1,)), ((0,), (0,))),
            preferred_element_type=jnp.float32)            # [TI, TB, M] f32

    if NI == 1:
        # Everything fits in one chunk: compute x_hat once and reuse across
        # routing iterations (no recompute needed in the small/medium regime).
        _xh0 = xhat_chunk(0)
        get_xhat = lambda ci: _xh0
    else:
        get_xhat = xhat_chunk

    def squash(s):                                          # s: [TB, M] f32
        sq = jnp.dot(s * s, e_mat, preferred_element_type=jnp.float32)   # [TB, O]
        scale = sq * pl.reciprocal((1.0 + sq) * (jnp.sqrt(sq) + 1e-8),
                                   approx=True)                          # [TB, O]
        return jnp.dot(scale, et_mat, preferred_element_type=jnp.float32) * s

    zero_s = jnp.zeros((TB, M), jnp.float32)

    # ---- routing iteration 0: logits are all zero => c == 1/O exactly -------
    def chunk0(ci, s_acc):
        return s_acc + jnp.sum(get_xhat(ci), axis=0)

    if NI == 1:
        s = chunk0(0, zero_s)
    else:
        s = jax.lax.fori_loop(0, NI, chunk0, zero_s)
    outputs = squash(s * jnp.float32(1.0 / O))

    # ---- routing iterations 1 .. routings-1 ----------------------------------
    # Fused form: iteration r first folds the logit update from outputs_{r-1}
    # into the per-chunk logits, then softmaxes and re-aggregates s.
    for r in range(1, routings):

        def chunk_body(ci, s_acc, _r=r, _out=outputs):
            xh = get_xhat(ci)                               # [TI, TB, M]
            prod = (xh * _out[None, :, :]).reshape(L, M)    # [TI*TB, M]
            # delta[o, i*TB+b] = sum_d outputs[b, o, d] * x_hat[i, b, o, d]
            delta = jax.lax.dot_general(
                et_mat, prod, (((1,), (1,)), ((), ())),
                preferred_element_type=jnp.float32)          # [O, L]
            if _r == 1:
                logit = delta                                # previous logits were 0
            else:
                logit = logits_ref[ci] + delta
            if _r < routings - 1:
                logits_ref[ci] = logit                       # needed by iteration r+1
            # softmax over the out-capsule (sublane) axis
            lmax = jnp.max(logit, axis=0, keepdims=True)
            ex = jnp.exp(logit - lmax)
            c = ex * pl.reciprocal(jnp.sum(ex, axis=0, keepdims=True),
                                   approx=True)              # [O, L]
            # expand back to the flat M lane axis: c_m[l, m] = c[o(m), l]
            c_m = jax.lax.dot_general(
                c, et_mat, (((0,), (0,)), ((), ())),
                preferred_element_type=jnp.float32)           # [L, M]
            return s_acc + jnp.sum(c_m.reshape(TI, TB, M) * xh, axis=0)

        if NI == 1:
            s = chunk_body(0, zero_s)
        else:
            s = jax.lax.fori_loop(0, NI, chunk_body, zero_s)
        outputs = squash(s)

    out_ref[...] = outputs.astype(out_ref.dtype)


def dense_capsule_forward(x, weight, routings=3, batch_tile=128, caps_tile=None):
    """x: [B, in_num_caps, in_dim_caps]; weight: [O, I, D, K] -> [B, O, D]."""
    B, I, K = x.shape
    O, I2, D, K2 = weight.shape
    assert I == I2 and K == K2 and routings > 0
    M = O * D

    # ---- batch tiling: TB == full padded batch (single step) or a multiple of
    # 128 so the lane-dense x block and the [TB, M] output store tile cleanly.
    B8 = _round_up(B, 8)
    if B8 <= max(batch_tile, 8):
        TB = B8
    else:
        TB = _round_up(min(batch_tile, B8), 128)
    Bp = _round_up(B, TB)

    # ---- input-capsule tiling: bound per-chunk temporaries (~TI*TB*M f32) and
    # the (i,b)-flattened lane axis (TI*TB) used by the routing logits.
    if caps_tile is None:
        caps_tile = max(8, 4096 // TB)
    TI = max(1, min(caps_tile, I))
    I_pad = _round_up(I, TI)
    NI = I_pad // TI

    # ---- host-side one-time relayouts (plain XLA ops, outside the kernel) ----
    #   weight [O, I, D, K] -> [I_pad, K, O*D]  (bf16, lane-dense M)
    #   x      [B, I, K]    -> [I_pad, K, Bp]   (bf16, lane-dense batch tile)
    w_t = jnp.transpose(weight, (1, 3, 0, 2)).reshape(I, K, M)
    w_t = jnp.pad(w_t, ((0, I_pad - I), (0, 0), (0, 0))).astype(jnp.bfloat16)
    x_t = jnp.transpose(x, (1, 2, 0))
    x_t = jnp.pad(x_t, ((0, I_pad - I), (0, 0), (0, Bp - B))).astype(jnp.bfloat16)

    # Selector matrices grouping the flat M = O*D lane axis by output capsule.
    m_grp = jnp.arange(M, dtype=jnp.int32) // D
    E = (m_grp[:, None] == jnp.arange(O, dtype=jnp.int32)[None, :]).astype(jnp.float32)
    Et = jnp.transpose(E)                                            # [O, M]

    kernel = functools.partial(_dense_capsule_kernel, routings=routings,
                               out_num_caps=O, out_dim_caps=D,
                               caps_tile=TI, num_caps_tiles=NI)

    # ---- VMEM budget from padded (sublane, lane) footprints ------------------
    def _pad(n, m):
        return _round_up(n, m)

    L = TI * TB
    out_isz = jnp.dtype(x.dtype).itemsize
    vmem_needed = (
        2 * I_pad * _pad(K, 8) * _pad(TB, 128) * 2          # x block (2 buffers, bf16)
        + 2 * I_pad * _pad(K, 8) * _pad(M, 128) * 2         # weight (worst case 2 buffers)
        + 2 * _pad(TB, 8) * _pad(M, 128) * out_isz          # output block
        + NI * _pad(O, 8) * _pad(L, 128) * 4                # routing-logit scratch
        + 4 * TI * _pad(TB, 8) * _pad(M, 128) * 4           # x_hat + routing temporaries
        + 4 * _pad(O, 8) * _pad(L, 128) * 4                 # delta / c temporaries
        + 8 * _pad(TB, 8) * _pad(M, 128) * 4                # s / outputs / squash temps
        + (4 << 20)                                         # headroom
    )
    try:
        phys_vmem = int(pltpu.get_tpu_info().vmem_capacity_bytes)
    except Exception:
        phys_vmem = 64 << 20                                # conservative (v7x)
    vmem_cap = max(32 << 20, int(phys_vmem * 0.85))
    vmem_limit = int(min(max(vmem_needed, 16 << 20), vmem_cap))

    def _build_and_call(single_buffer_weight):
        w_kwargs = {}
        if single_buffer_weight:
            w_kwargs["pipeline_mode"] = pl.Buffered(1)       # constant block: 1 buffer
        grid_spec = pltpu.PrefetchScalarGridSpec(
            num_scalar_prefetch=0,
            grid=(Bp // TB,),
            in_specs=[
                pl.BlockSpec((I_pad, K, TB), lambda b: (0, 0, b)),
                pl.BlockSpec((I_pad, K, M), lambda b: (0, 0, 0), **w_kwargs),
                pl.BlockSpec((M, O), lambda b: (0, 0)),
                pl.BlockSpec((O, M), lambda b: (0, 0)),
            ],
            out_specs=pl.BlockSpec((TB, M), lambda b: (b, 0)),
            scratch_shapes=[pltpu.VMEM((NI, O, L), jnp.float32)],
        )
        return pl.pallas_call(
            kernel,
            out_shape=jax.ShapeDtypeStruct((Bp, M), x.dtype),
            grid_spec=grid_spec,
            compiler_params=pltpu.CompilerParams(
                dimension_semantics=("parallel",),
                vmem_limit_bytes=vmem_limit,
            ),
        )(x_t, w_t, E, Et)

    try:
        out_flat = _build_and_call(True)
    except Exception:
        # Fall back to default double-buffering if Buffered(1) is rejected.
        out_flat = _build_and_call(False)

    return out_flat[:B].reshape(B, O, D)


def dense_capsule_reference(x, weight, routings=3):
    """Pure-JAX mirror of the PyTorch forward, for correctness checking."""
    x_hat = jnp.einsum("oidk,bik->boid", weight, x)          # [B, O, I, D]
    B, O, I, _ = x_hat.shape
    b = jnp.zeros((B, O, I), x_hat.dtype)
    outputs = None
    for r in range(routings):
        c = jax.nn.softmax(b, axis=1)
        s = jnp.sum(c[..., None] * x_hat, axis=-2, keepdims=True)   # [B, O, 1, D]
        norm = jnp.sqrt(jnp.sum(s * s, axis=-1, keepdims=True))
        scale = norm**2 / (1 + norm**2) / (norm + 1e-8)
        outputs = scale * s
        if r < routings - 1:
            b = b + jnp.sum(outputs * x_hat, axis=-1)
    return jnp.squeeze(outputs, axis=-2)


if __name__ == "__main__":
    # Small shapes consistent with DenseCapsule's [B, in_num_caps, in_dim_caps] input.
    B, in_num_caps, in_dim_caps = 2, 32, 8
    out_num_caps, out_dim_caps, routings = 4, 16, 3

    key = jax.random.PRNGKey(0)
    kx, kw = jax.random.split(key)
    x = jax.random.normal(kx, (B, in_num_caps, in_dim_caps), dtype=jnp.float32)
    # nn.Parameter(0.01 * randn(O, I, D, K))
    weight = 0.01 * jax.random.normal(
        kw, (out_num_caps, in_num_caps, out_dim_caps, in_dim_caps),
        dtype=jnp.float32)

    out = dense_capsule_forward(x, weight, routings=routings)
    out = jax.block_until_ready(out)
    assert out.shape == (B, out_num_caps, out_dim_caps)

    # Reference on bf16-rounded operands (the kernel feeds the MXU bf16 inputs
    # with f32 accumulation), so residual diffs are only accumulation order and
    # the approx reciprocals.
    x_q = x.astype(jnp.bfloat16).astype(jnp.float32)
    w_q = weight.astype(jnp.bfloat16).astype(jnp.float32)
    ref = dense_capsule_reference(x_q, w_q, routings=routings)
    assert jnp.allclose(out, ref, atol=2e-4, rtol=2e-3), "mismatch (small case)"

    # Second config exercising batch tiling (grid > 1), input-capsule chunking
    # (NI > 1) and the batch/I zero-padding paths.
    B2, I2, K2 = 200, 80, 8
    O2, D2 = 6, 16
    kx2, kw2 = jax.random.split(jax.random.PRNGKey(1))
    x2 = jax.random.normal(kx2, (B2, I2, K2), dtype=jnp.float32)
    w2 = 0.01 * jax.random.normal(kw2, (O2, I2, D2, K2), dtype=jnp.float32)
    out2 = jax.block_until_ready(
        dense_capsule_forward(x2, w2, routings=routings, batch_tile=128, caps_tile=32))
    ref2 = dense_capsule_reference(x2.astype(jnp.bfloat16).astype(jnp.float32),
                                   w2.astype(jnp.bfloat16).astype(jnp.float32),
                                   routings=routings)
    assert out2.shape == (B2, O2, D2)
    assert jnp.allclose(out2, ref2, atol=2e-4, rtol=2e-3), "mismatch (tiled case)"

    print("KERNEL_OK")
</pallas_src>

<mosaic_0001>
module attributes {stable_mosaic.version = 11 : i64} {
  func.func @_dense_capsule_kernel(%arg0: i32, %arg1: memref<32x8x8xbf16, #tpu.memory_space<vmem>>, %arg2: memref<32x8x64xbf16, #tpu.memory_space<vmem>>, %arg3: memref<64x4xf32, #tpu.memory_space<vmem>>, %arg4: memref<4x64xf32, #tpu.memory_space<vmem>>, %arg5: memref<8x64xf32, #tpu.memory_space<vmem>>, %arg6: memref<1x4x256xf32, #tpu.memory_space<vmem>>) attributes {dimension_semantics = [#tpu.dimension_semantics<parallel>], iteration_bounds = array<i64: 1>, scalar_prefetch = 0 : i64, scratch_operands = 1 : i64, tpu.core_type = #tpu.core_type<tc>, window_params = [{transform_indices = @transform_0, window_bounds = array<i64: 32, 8, 8>}, {pipeline_mode = #tpu.pipeline_mode<synchronous>, transform_indices = @transform_1, window_bounds = array<i64: 32, 8, 64>}, {pipeline_mode = #tpu.pipeline_mode<synchronous>, transform_indices = @transform_2, window_bounds = array<i64: 64, 4>}, {pipeline_mode = #tpu.pipeline_mode<synchronous>, transform_indices = @transform_3, window_bounds = array<i64: 4, 64>}, {transform_indices = @transform_4, window_bounds = array<i64: 8, 64>}]} {
    %c0 = arith.constant 0 : index
    %c0_0 = arith.constant 0 : index
    %0 = vector.load %arg3[%c0, %c0_0] : memref<64x4xf32, #tpu.memory_space<vmem>>, vector<64x4xf32>
    %c0_1 = arith.constant 0 : index
    %c0_2 = arith.constant 0 : index
    %1 = vector.load %arg4[%c0_1, %c0_2] : memref<4x64xf32, #tpu.memory_space<vmem>>, vector<4x64xf32>
    %c0_3 = arith.constant 0 : index
    %c0_4 = arith.constant 0 : index
    %c0_5 = arith.constant 0 : index
    %2 = vector.load %arg1[%c0_3, %c0_4, %c0_5] : memref<32x8x8xbf16, #tpu.memory_space<vmem>>, vector<32x8x8xbf16>
    %c0_6 = arith.constant 0 : index
    %c0_7 = arith.constant 0 : index
    %c0_8 = arith.constant 0 : index
    %3 = vector.load %arg2[%c0_6, %c0_7, %c0_8] : memref<32x8x64xbf16, #tpu.memory_space<vmem>>, vector<32x8x64xbf16>
    %cst = arith.constant dense<0.000000e+00> : vector<32x8x64xf32>
    %4 = tpu.matmul %2, %3, %cst {dimension_numbers = #tpu.dot_dimension_numbers<[1], [1], [2], [2], [0, 0, 0, 2, 1, 2], [0], [0]>} : vector<32x8x8xbf16>, vector<32x8x64xbf16>, vector<32x8x64xf32> -> vector<32x8x64xf32>
    %cst_9 = arith.constant 0.000000e+00 : f32
    %5 = vector.broadcast %cst_9 : f32 to vector<8x64xf32>
    %cst_10 = arith.constant dense<0.000000e+00> : vector<8x64xf32>
    %6 = vector.multi_reduction <add>, %4, %cst_10 [0] : vector<32x8x64xf32> to vector<8x64xf32>
    %7 = arith.addf %5, %6 : vector<8x64xf32>
    %cst_11 = arith.constant 2.500000e-01 : f32
    %8 = vector.broadcast %cst_11 : f32 to vector<8x64xf32>
    %9 = arith.mulf %7, %8 : vector<8x64xf32>
    %10 = arith.mulf %9, %9 : vector<8x64xf32>
    %cst_12 = arith.constant dense<0.000000e+00> : vector<8x4xf32>
    %11 = tpu.matmul %10, %0, %cst_12 {dimension_numbers = #tpu.dot_dimension_numbers<[1], [0], [0], [1], [0, 0, 1, 1], [], []>} : vector<8x64xf32>, vector<64x4xf32>, vector<8x4xf32> -> vector<8x4xf32>
    %cst_13 = arith.constant 1.000000e+00 : f32
    %12 = vector.broadcast %cst_13 : f32 to vector<8x4xf32>
    %13 = arith.addf %12, %11 : vector<8x4xf32>
    %14 = math.sqrt %11 : vector<8x4xf32>
    %cst_14 = arith.constant 9.99999993E-9 : f32
    %15 = vector.broadcast %cst_14 : f32 to vector<8x4xf32>
    %16 = arith.addf %14, %15 : vector<8x4xf32>
    %17 = arith.mulf %13, %16 : vector<8x4xf32>
    %18 = tpu.reciprocal %17 {approx = true} : vector<8x4xf32> -> vector<8x4xf32>
    %19 = arith.mulf %11, %18 : vector<8x4xf32>
    %cst_15 = arith.constant dense<0.000000e+00> : vector<8x64xf32>
    %20 = tpu.matmul %19, %1, %cst_15 {dimension_numbers = #tpu.dot_dimension_numbers<[1], [0], [0], [1], [0, 0, 1, 1], [], []>} : vector<8x4xf32>, vector<4x64xf32>, vector<8x64xf32> -> vector<8x64xf32>
    %21 = arith.mulf %20, %9 : vector<8x64xf32>
    %22 = vector.shape_cast %21 : vector<8x64xf32> to vector<1x8x64xf32>
    %23 = vector.broadcast %22 : vector<1x8x64xf32> to vector<32x8x64xf32>
    %24 = arith.mulf %4, %23 : vector<32x8x64xf32>
    %25 = vector.shape_cast %24 : vector<32x8x64xf32> to vector<256x64xf32>
    %cst_16 = arith.constant dense<0.000000e+00> : vector<4x256xf32>
    %26 = tpu.matmul %1, %25, %cst_16 {dimension_numbers = #tpu.dot_dimension_numbers<[1], [1], [0], [0], [0, 0, 1, 0], [], []>} : vector<4x64xf32>, vector<256x64xf32>, vector<4x256xf32> -> vector<4x256xf32>
    %c0_17 = arith.constant 0 : index
    %c0_18 = arith.constant 0 : index
    %c0_19 = arith.constant 0 : index
    %27 = vector.load %arg6[%c0_17, %c0_18, %c0_19] : memref<1x4x256xf32, #tpu.memory_space<vmem>>, vector<1x4x256xf32>
    %28 = vector.shape_cast %27 : vector<1x4x256xf32> to vector<4x256xf32>
    %29 = vector.shape_cast %26 : vector<4x256xf32> to vector<1x4x256xf32>
    tpu.vector_store %arg6[%c0_17, %c0_18, %c0_19], %29 {strides = array<i32>} : memref<1x4x256xf32, #tpu.memory_space<vmem>>, vector<1x4x256xf32>,
    %cst_20 = arith.constant dense<0xFF800000> : vector<256xf32>
    %30 = vector.multi_reduction <maximumf>, %26, %cst_20 [0] : vector<4x256xf32> to vector<256xf32>
    %31 = vector.shape_cast %30 : vector<256xf32> to vector<1x256xf32>
    %32 = vector.broadcast %31 : vector<1x256xf32> to vector<4x256xf32>
    %33 = arith.subf %26, %32 : vector<4x256xf32>
    %34 = math.exp %33 : vector<4x256xf32>
    %cst_21 = arith.constant dense<0.000000e+00> : vector<256xf32>
    %35 = vector.multi_reduction <add>, %34, %cst_21 [0] : vector<4x256xf32> to vector<256xf32>
    %36 = vector.shape_cast %35 : vector<256xf32> to vector<1x256xf32>
    %37 = tpu.reciprocal %36 {approx = true} : vector<1x256xf32> -> vector<1x256xf32>
    %38 = vector.broadcast %37 : vector<1x256xf32> to vector<4x256xf32>
    %39 = arith.mulf %34, %38 : vector<4x256xf32>
    %cst_22 = arith.constant dense<0.000000e+00> : vector<256x64xf32>
    %40 = tpu.matmul %39, %1, %cst_22 {dimension_numbers = #tpu.dot_dimension_numbers<[0], [0], [1], [1], [0, 1, 1, 1], [], []>} : vector<4x256xf32>, vector<4x64xf32>, vector<256x64xf32> -> vector<256x64xf32>
    %41 = vector.shape_cast %40 : vector<256x64xf32> to vector<32x8x64xf32>
    %42 = arith.mulf %41, %4 : vector<32x8x64xf32>
    %cst_23 = arith.constant dense<0.000000e+00> : vector<8x64xf32>
    %43 = vector.multi_reduction <add>, %42, %cst_23 [0] : vector<32x8x64xf32> to vector<8x64xf32>
    %44 = arith.addf %5, %43 : vector<8x64xf32>
    %45 = arith.mulf %44, %44 : vector<8x64xf32>
    %cst_24 = arith.constant dense<0.000000e+00> : vector<8x4xf32>
    %46 = tpu.matmul %45, %0, %cst_24 {dimension_numbers = #tpu.dot_dimension_numbers<[1], [0], [0], [1], [0, 0, 1, 1], [], []>} : vector<8x64xf32>, vector<64x4xf32>, vector<8x4xf32> -> vector<8x4xf32>
    %cst_25 = arith.constant 1.000000e+00 : f32
    %47 = vector.broadcast %cst_25 : f32 to vector<8x4xf32>
    %48 = arith.addf %47, %46 : vector<8x4xf32>
    %49 = math.sqrt %46 : vector<8x4xf32>
    %cst_26 = arith.constant 9.99999993E-9 : f32
    %50 = vector.broadcast %cst_26 : f32 to vector<8x4xf32>
    %51 = arith.addf %49, %50 : vector<8x4xf32>
    %52 = arith.mulf %48, %51 : vector<8x4xf32>
    %53 = tpu.reciprocal %52 {approx = true} : vector<8x4xf32> -> vector<8x4xf32>
    %54 = arith.mulf %46, %53 : vector<8x4xf32>
    %cst_27 = arith.constant dense<0.000000e+00> : vector<8x64xf32>
    %55 = tpu.matmul %54, %1, %cst_27 {dimension_numbers = #tpu.dot_dimension_numbers<[1], [0], [0], [1], [0, 0, 1, 1], [], []>} : vector<8x4xf32>, vector<4x64xf32>, vector<8x64xf32> -> vector<8x64xf32>
    %56 = arith.mulf %55, %44 : vector<8x64xf32>
    %57 = vector.shape_cast %56 : vector<8x64xf32> to vector<1x8x64xf32>
    %58 = vector.broadcast %57 : vector<1x8x64xf32> to vector<32x8x64xf32>
    %59 = arith.mulf %4, %58 : vector<32x8x64xf32>
    %60 = vector.shape_cast %59 : vector<32x8x64xf32> to vector<256x64xf32>
    %cst_28 = arith.constant dense<0.000000e+00> : vector<4x256xf32>
    %61 = tpu.matmul %1, %60, %cst_28 {dimension_numbers = #tpu.dot_dimension_numbers<[1], [1], [0], [0], [0, 0, 1, 0], [], []>} : vector<4x64xf32>, vector<256x64xf32>, vector<4x256xf32> -> vector<4x256xf32>
    %c0_29 = arith.constant 0 : index
    %c0_30 = arith.constant 0 : index
    %c0_31 = arith.constant 0 : index
    %62 = vector.load %arg6[%c0_29, %c0_30, %c0_31] : memref<1x4x256xf32, #tpu.memory_space<vmem>>, vector<1x4x256xf32>
    %63 = vector.shape_cast %62 : vector<1x4x256xf32> to vector<4x256xf32>
    %64 = arith.addf %63, %61 : vector<4x256xf32>
    %cst_32 = arith.constant dense<0xFF800000> : vector<256xf32>
    %65 = vector.multi_reduction <maximumf>, %64, %cst_32 [0] : vector<4x256xf32> to vector<256xf32>
    %66 = vector.shape_cast %65 : vector<256xf32> to vector<1x256xf32>
    %67 = vector.broadcast %66 : vector<1x256xf32> to vector<4x256xf32>
    %68 = arith.subf %64, %67 : vector<4x256xf32>
    %69 = math.exp %68 : vector<4x256xf32>
    %cst_33 = arith.constant dense<0.000000e+00> : vector<256xf32>
    %70 = vector.multi_reduction <add>, %69, %cst_33 [0] : vector<4x256xf32> to vector<256xf32>
    %71 = vector.shape_cast %70 : vector<256xf32> to vector<1x256xf32>
    %72 = tpu.reciprocal %71 {approx = true} : vector<1x256xf32> -> vector<1x256xf32>
    %73 = vector.broadcast %72 : vector<1x256xf32> to vector<4x256xf32>
    %74 = arith.mulf %69, %73 : vector<4x256xf32>
    %cst_34 = arith.constant dense<0.000000e+00> : vector<256x64xf32>
    %75 = tpu.matmul %74, %1, %cst_34 {dimension_numbers = #tpu.dot_dimension_numbers<[0], [0], [1], [1], [0, 1, 1, 1], [], []>} : vector<4x256xf32>, vector<4x64xf32>, vector<256x64xf32> -> vector<256x64xf32>
    %76 = vector.shape_cast %75 : vector<256x64xf32> to vector<32x8x64xf32>
    %77 = arith.mulf %76, %4 : vector<32x8x64xf32>
    %cst_35 = arith.constant dense<0.000000e+00> : vector<8x64xf32>
    %78 = vector.multi_reduction <add>, %77, %cst_35 [0] : vector<32x8x64xf32> to vector<8x64xf32>
    %79 = arith.addf %5, %78 : vector<8x64xf32>
    %80 = arith.mulf %79, %79 : vector<8x64xf32>
    %cst_36 = arith.constant dense<0.000000e+00> : vector<8x4xf32>
    %81 = tpu.matmul %80, %0, %cst_36 {dimension_numbers = #tpu.dot_dimension_numbers<[1], [0], [0], [1], [0, 0, 1, 1], [], []>} : vector<8x64xf32>, vector<64x4xf32>, vector<8x4xf32> -> vector<8x4xf32>
    %cst_37 = arith.constant 1.000000e+00 : f32
    %82 = vector.broadcast %cst_37 : f32 to vector<8x4xf32>
    %83 = arith.addf %82, %81 : vector<8x4xf32>
    %84 = math.sqrt %81 : vector<8x4xf32>
    %cst_38 = arith.constant 9.99999993E-9 : f32
    %85 = vector.broadcast %cst_38 : f32 to vector<8x4xf32>
    %86 = arith.addf %84, %85 : vector<8x4xf32>
    %87 = arith.mulf %83, %86 : vector<8x4xf32>
    %88 = tpu.reciprocal %87 {approx = true} : vector<8x4xf32> -> vector<8x4xf32>
    %89 = arith.mulf %81, %88 : vector<8x4xf32>
    %cst_39 = arith.constant dense<0.000000e+00> : vector<8x64xf32>
    %90 = tpu.matmul %89, %1, %cst_39 {dimension_numbers = #tpu.dot_dimension_numbers<[1], [0], [0], [1], [0, 0, 1, 1], [], []>} : vector<8x4xf32>, vector<4x64xf32>, vector<8x64xf32> -> vector<8x64xf32>
    %91 = arith.mulf %90, %79 : vector<8x64xf32>
    %c0_40 = arith.constant 0 : index
    %c0_41 = arith.constant 0 : index
    %92 = vector.load %arg5[%c0_40, %c0_41] : memref<8x64xf32, #tpu.memory_space<vmem>>, vector<8x64xf32>
    tpu.vector_store %arg5[%c0_40, %c0_41], %91 {strides = array<i32>} : memref<8x64xf32, #tpu.memory_space<vmem>>, vector<8x64xf32>,
    return
  }
  func.func @transform_0(%arg0: i32) -> (i32, i32, i32) {
    %c0_i32 = arith.constant 0 : i32
    %c0_i32_0 = arith.constant 0 : i32
    %c0_i32_1 = arith.constant 0 : i32
    return %c0_i32, %c0_i32_0, %arg0 : i32, i32, i32
  }
  func.func @transform_1(%arg0: i32) -> (i32, i32, i32) {
    %c0_i32 = arith.constant 0 : i32
    %c0_i32_0 = arith.constant 0 : i32
    %c0_i32_1 = arith.constant 0 : i32
    %c0_i32_2 = arith.constant 0 : i32
    return %c0_i32, %c0_i32_0, %c0_i32_1 : i32, i32, i32
  }
  func.func @transform_2(%arg0: i32) -> (i32, i32) {
    %c0_i32 = arith.constant 0 : i32
    %c0_i32_0 = arith.constant 0 : i32
    %c0_i32_1 = arith.constant 0 : i32
    return %c0_i32, %c0_i32_0 : i32, i32
  }
  func.func @transform_3(%arg0: i32) -> (i32, i32) {
    %c0_i32 = arith.constant 0 : i32
    %c0_i32_0 = arith.constant 0 : i32
    %c0_i32_1 = arith.constant 0 : i32
    return %c0_i32, %c0_i32_0 : i32, i32
  }
  func.func @transform_4(%arg0: i32) -> (i32, i32) {
    %c0_i32 = arith.constant 0 : i32
    %c0_i32_0 = arith.constant 0 : i32
    return %arg0, %c0_i32 : i32, i32
  }
}

module attributes {stable_mosaic.version = 11 : i64} {
  func.func @_dense_capsule_kernel(%arg0: i32, %arg1: memref<32x8x8xbf16, #tpu.memory_space<vmem>>, %arg2: memref<32x8x64xbf16, #tpu.memory_space<vmem>>, %arg3: memref<64x4xf32, #tpu.memory_space<vmem>>, %arg4: memref<4x64xf32, #tpu.memory_space<vmem>>, %arg5: memref<8x64xf32, #tpu.memory_space<vmem>>, %arg6: memref<1x4x256xf32, #tpu.memory_space<vmem>>) attributes {dimension_semantics = [#tpu.dimension_semantics<parallel>], iteration_bounds = array<i64: 1>, scalar_prefetch = 0 : i64, scratch_operands = 1 : i64, tpu.core_type = #tpu.core_type<tc>, window_params = [{transform_indices = @transform_0, window_bounds = array<i64: 32, 8, 8>}, {pipeline_mode = #tpu.pipeline_mode<synchronous>, transform_indices = @transform_1, window_bounds = array<i64: 32, 8, 64>}, {pipeline_mode = #tpu.pipeline_mode<synchronous>, transform_indices = @transform_2, window_bounds = array<i64: 64, 4>}, {pipeline_mode = #tpu.pipeline_mode<synchronous>, transform_indices = @transform_3, window_bounds = array<i64: 4, 64>}, {transform_indices = @transform_4, window_bounds = array<i64: 8, 64>}]} {
    %c0 = arith.constant 0 : index
    %c0_0 = arith.constant 0 : index
    %0 = vector.load %arg3[%c0, %c0_0] : memref<64x4xf32, #tpu.memory_space<vmem>>, vector<64x4xf32>
    %c0_1 = arith.constant 0 : index
    %c0_2 = arith.constant 0 : index
    %1 = vector.load %arg4[%c0_1, %c0_2] : memref<4x64xf32, #tpu.memory_space<vmem>>, vector<4x64xf32>
    %c0_3 = arith.constant 0 : index
    %c0_4 = arith.constant 0 : index
    %c0_5 = arith.constant 0 : index
    %2 = vector.load %arg1[%c0_3, %c0_4, %c0_5] : memref<32x8x8xbf16, #tpu.memory_space<vmem>>, vector<32x8x8xbf16>
    %c0_6 = arith.constant 0 : index
    %c0_7 = arith.constant 0 : index
    %c0_8 = arith.constant 0 : index
    %3 = vector.load %arg2[%c0_6, %c0_7, %c0_8] : memref<32x8x64xbf16, #tpu.memory_space<vmem>>, vector<32x8x64xbf16>
    %cst = arith.constant dense<0.000000e+00> : vector<32x8x64xf32>
    %4 = tpu.matmul %2, %3, %cst {dimension_numbers = #tpu.dot_dimension_numbers<[1], [1], [2], [2], [0, 0, 0, 2, 1, 2], [0], [0]>} : vector<32x8x8xbf16>, vector<32x8x64xbf16>, vector<32x8x64xf32> -> vector<32x8x64xf32>
    %cst_9 = arith.constant 0.000000e+00 : f32
    %5 = vector.broadcast %cst_9 : f32 to vector<8x64xf32>
    %cst_10 = arith.constant dense<0.000000e+00> : vector<8x64xf32>
    %6 = vector.multi_reduction <add>, %4, %cst_10 [0] : vector<32x8x64xf32> to vector<8x64xf32>
    %7 = arith.addf %5, %6 : vector<8x64xf32>
    %cst_11 = arith.constant 2.500000e-01 : f32
    %8 = vector.broadcast %cst_11 : f32 to vector<8x64xf32>
    %9 = arith.mulf %7, %8 : vector<8x64xf32>
    %10 = arith.mulf %9, %9 : vector<8x64xf32>
    %cst_12 = arith.constant dense<0.000000e+00> : vector<8x4xf32>
    %11 = tpu.matmul %10, %0, %cst_12 {dimension_numbers = #tpu.dot_dimension_numbers<[1], [0], [0], [1], [0, 0, 1, 1], [], []>} : vector<8x64xf32>, vector<64x4xf32>, vector<8x4xf32> -> vector<8x4xf32>
    %cst_13 = arith.constant 1.000000e+00 : f32
    %12 = vector.broadcast %cst_13 : f32 to vector<8x4xf32>
    %13 = arith.addf %12, %11 : vector<8x4xf32>
    %14 = math.sqrt %11 : vector<8x4xf32>
    %cst_14 = arith.constant 9.99999993E-9 : f32
    %15 = vector.broadcast %cst_14 : f32 to vector<8x4xf32>
    %16 = arith.addf %14, %15 : vector<8x4xf32>
    %17 = arith.mulf %13, %16 : vector<8x4xf32>
    %18 = tpu.reciprocal %17 {approx = true} : vector<8x4xf32> -> vector<8x4xf32>
    %19 = arith.mulf %11, %18 : vector<8x4xf32>
    %cst_15 = arith.constant dense<0.000000e+00> : vector<8x64xf32>
    %20 = tpu.matmul %19, %1, %cst_15 {dimension_numbers = #tpu.dot_dimension_numbers<[1], [0], [0], [1], [0, 0, 1, 1], [], []>} : vector<8x4xf32>, vector<4x64xf32>, vector<8x64xf32> -> vector<8x64xf32>
    %21 = arith.mulf %20, %9 : vector<8x64xf32>
    %22 = vector.shape_cast %21 : vector<8x64xf32> to vector<1x8x64xf32>
    %23 = vector.broadcast %22 : vector<1x8x64xf32> to vector<32x8x64xf32>
    %24 = arith.mulf %4, %23 : vector<32x8x64xf32>
    %25 = vector.shape_cast %24 : vector<32x8x64xf32> to vector<256x64xf32>
    %cst_16 = arith.constant dense<0.000000e+00> : vector<4x256xf32>
    %26 = tpu.matmul %1, %25, %cst_16 {dimension_numbers = #tpu.dot_dimension_numbers<[1], [1], [0], [0], [0, 0, 1, 0], [], []>} : vector<4x64xf32>, vector<256x64xf32>, vector<4x256xf32> -> vector<4x256xf32>
    %c0_17 = arith.constant 0 : index
    %c0_18 = arith.constant 0 : index
    %c0_19 = arith.constant 0 : index
    %27 = vector.load %arg6[%c0_17, %c0_18, %c0_19] : memref<1x4x256xf32, #tpu.memory_space<vmem>>, vector<1x4x256xf32>
    %28 = vector.shape_cast %27 : vector<1x4x256xf32> to vector<4x256xf32>
    %29 = vector.shape_cast %26 : vector<4x256xf32> to vector<1x4x256xf32>
    tpu.vector_store %arg6[%c0_17, %c0_18, %c0_19], %29 {strides = array<i32>} : memref<1x4x256xf32, #tpu.memory_space<vmem>>, vector<1x4x256xf32>,
    %cst_20 = arith.constant dense<0xFF800000> : vector<256xf32>
    %30 = vector.multi_reduction <maximumf>, %26, %cst_20 [0] : vector<4x256xf32> to vector<256xf32>
    %31 = vector.shape_cast %30 : vector<256xf32> to vector<1x256xf32>
    %32 = vector.broadcast %31 : vector<1x256xf32> to vector<4x256xf32>
    %33 = arith.subf %26, %32 : vector<4x256xf32>
    %34 = math.exp %33 : vector<4x256xf32>
    %cst_21 = arith.constant dense<0.000000e+00> : vector<256xf32>
    %35 = vector.multi_reduction <add>, %34, %cst_21 [0] : vector<4x256xf32> to vector<256xf32>
    %36 = vector.shape_cast %35 : vector<256xf32> to vector<1x256xf32>
    %37 = tpu.reciprocal %36 {approx = true} : vector<1x256xf32> -> vector<1x256xf32>
    %38 = vector.broadcast %37 : vector<1x256xf32> to vector<4x256xf32>
    %39 = arith.mulf %34, %38 : vector<4x256xf32>
    %cst_22 = arith.constant dense<0.000000e+00> : vector<256x64xf32>
    %40 = tpu.matmul %39, %1, %cst_22 {dimension_numbers = #tpu.dot_dimension_numbers<[0], [0], [1], [1], [0, 1, 1, 1], [], []>} : vector<4x256xf32>, vector<4x64xf32>, vector<256x64xf32> -> vector<256x64xf32>
    %41 = vector.shape_cast %40 : vector<256x64xf32> to vector<32x8x64xf32>
    %42 = arith.mulf %41, %4 : vector<32x8x64xf32>
    %cst_23 = arith.constant dense<0.000000e+00> : vector<8x64xf32>
    %43 = vector.multi_reduction <add>, %42, %cst_23 [0] : vector<32x8x64xf32> to vector<8x64xf32>
    %44 = arith.addf %5, %43 : vector<8x64xf32>
    %45 = arith.mulf %44, %44 : vector<8x64xf32>
    %cst_24 = arith.constant dense<0.000000e+00> : vector<8x4xf32>
    %46 = tpu.matmul %45, %0, %cst_24 {dimension_numbers = #tpu.dot_dimension_numbers<[1], [0], [0], [1], [0, 0, 1, 1], [], []>} : vector<8x64xf32>, vector<64x4xf32>, vector<8x4xf32> -> vector<8x4xf32>
    %cst_25 = arith.constant 1.000000e+00 : f32
    %47 = vector.broadcast %cst_25 : f32 to vector<8x4xf32>
    %48 = arith.addf %47, %46 : vector<8x4xf32>
    %49 = math.sqrt %46 : vector<8x4xf32>
    %cst_26 = arith.constant 9.99999993E-9 : f32
    %50 = vector.broadcast %cst_26 : f32 to vector<8x4xf32>
    %51 = arith.addf %49, %50 : vector<8x4xf32>
    %52 = arith.mulf %48, %51 : vector<8x4xf32>
    %53 = tpu.reciprocal %52 {approx = true} : vector<8x4xf32> -> vector<8x4xf32>
    %54 = arith.mulf %46, %53 : vector<8x4xf32>
    %cst_27 = arith.constant dense<0.000000e+00> : vector<8x64xf32>
    %55 = tpu.matmul %54, %1, %cst_27 {dimension_numbers = #tpu.dot_dimension_numbers<[1], [0], [0], [1], [0, 0, 1, 1], [], []>} : vector<8x4xf32>, vector<4x64xf32>, vector<8x64xf32> -> vector<8x64xf32>
    %56 = arith.mulf %55, %44 : vector<8x64xf32>
    %57 = vector.shape_cast %56 : vector<8x64xf32> to vector<1x8x64xf32>
    %58 = vector.broadcast %57 : vector<1x8x64xf32> to vector<32x8x64xf32>
    %59 = arith.mulf %4, %58 : vector<32x8x64xf32>
    %60 = vector.shape_cast %59 : vector<32x8x64xf32> to vector<256x64xf32>
    %cst_28 = arith.constant dense<0.000000e+00> : vector<4x256xf32>
    %61 = tpu.matmul %1, %60, %cst_28 {dimension_numbers = #tpu.dot_dimension_numbers<[1], [1], [0], [0], [0, 0, 1, 0], [], []>} : vector<4x64xf32>, vector<256x64xf32>, vector<4x256xf32> -> vector<4x256xf32>
    %c0_29 = arith.constant 0 : index
    %c0_30 = arith.constant 0 : index
    %c0_31 = arith.constant 0 : index
    %62 = vector.load %arg6[%c0_29, %c0_30, %c0_31] : memref<1x4x256xf32, #tpu.memory_space<vmem>>, vector<1x4x256xf32>
    %63 = vector.shape_cast %62 : vector<1x4x256xf32> to vector<4x256xf32>
    %64 = arith.addf %63, %61 : vector<4x256xf32>
    %cst_32 = arith.constant dense<0xFF800000> : vector<256xf32>
    %65 = vector.multi_reduction <maximumf>, %64, %cst_32 [0] : vector<4x256xf32> to vector<256xf32>
    %66 = vector.shape_cast %65 : vector<256xf32> to vector<1x256xf32>
    %67 = vector.broadcast %66 : vector<1x256xf32> to vector<4x256xf32>
    %68 = arith.subf %64, %67 : vector<4x256xf32>
    %69 = math.exp %68 : vector<4x256xf32>
    %cst_33 = arith.constant dense<0.000000e+00> : vector<256xf32>
    %70 = vector.multi_reduction <add>, %69, %cst_33 [0] : vector<4x256xf32> to vector<256xf32>
    %71 = vector.shape_cast %70 : vector<256xf32> to vector<1x256xf32>
    %72 = tpu.reciprocal %71 {approx = true} : vector<1x256xf32> -> vector<1x256xf32>
    %73 = vector.broadcast %72 : vector<1x256xf32> to vector<4x256xf32>
    %74 = arith.mulf %69, %73 : vector<4x256xf32>
    %cst_34 = arith.constant dense<0.000000e+00> : vector<256x64xf32>
    %75 = tpu.matmul %74, %1, %cst_34 {dimension_numbers = #tpu.dot_dimension_numbers<[0], [0], [1], [1], [0, 1, 1, 1], [], []>} : vector<4x256xf32>, vector<4x64xf32>, vector<256x64xf32> -> vector<256x64xf32>
    %76 = vector.shape_cast %75 : vector<256x64xf32> to vector<32x8x64xf32>
    %77 = arith.mulf %76, %4 : vector<32x8x64xf32>
    %cst_35 = arith.constant dense<0.000000e+00> : vector<8x64xf32>
    %78 = vector.multi_reduction <add>, %77, %cst_35 [0] : vector<32x8x64xf32> to vector<8x64xf32>
    %79 = arith.addf %5, %78 : vector<8x64xf32>
    %80 = arith.mulf %79, %79 : vector<8x64xf32>
    %cst_36 = arith.constant dense<0.000000e+00> : vector<8x4xf32>
    %81 = tpu.matmul %80, %0, %cst_36 {dimension_numbers = #tpu.dot_dimension_numbers<[1], [0], [0], [1], [0, 0, 1, 1], [], []>} : vector<8x64xf32>, vector<64x4xf32>, vector<8x4xf32> -> vector<8x4xf32>
    %cst_37 = arith.constant 1.000000e+00 : f32
    %82 = vector.broadcast %cst_37 : f32 to vector<8x4xf32>
    %83 = arith.addf %82, %81 : vector<8x4xf32>
    %84 = math.sqrt %81 : vector<8x4xf32>
    %cst_38 = arith.constant 9.99999993E-9 : f32
    %85 = vector.broadcast %cst_38 : f32 to vector<8x4xf32>
    %86 = arith.addf %84, %85 : vector<8x4xf32>
    %87 = arith.mulf %83, %86 : vector<8x4xf32>
    %88 = tpu.reciprocal %87 {approx = true} : vector<8x4xf32> -> vector<8x4xf32>
    %89 = arith.mulf %81, %88 : vector<8x4xf32>
    %cst_39 = arith.constant dense<0.000000e+00> : vector<8x64xf32>
    %90 = tpu.matmul %89, %1, %cst_39 {dimension_numbers = #tpu.dot_dimension_numbers<[1], [0], [0], [1], [0, 0, 1, 1], [], []>} : vector<8x4xf32>, vector<4x64xf32>, vector<8x64xf32> -> vector<8x64xf32>
    %91 = arith.mulf %90, %79 : vector<8x64xf32>
    %c0_40 = arith.constant 0 : index
    %c0_41 = arith.constant 0 : index
    %92 = vector.load %arg5[%c0_40, %c0_41] : memref<8x64xf32, #tpu.memory_space<vmem>>, vector<8x64xf32>
    tpu.vector_store %arg5[%c0_40, %c0_41], %91 {strides = array<i32>} : memref<8x64xf32, #tpu.memory_space<vmem>>, vector<8x64xf32>,
    return
  }
  func.func @transform_0(%arg0: i32) -> (i32, i32, i32) {
    %c0_i32 = arith.constant 0 : i32
    %c0_i32_0 = arith.constant 0 : i32
    %c0_i32_1 = arith.constant 0 : i32
    return %c0_i32, %c0_i32_0, %arg0 : i32, i32, i32
  }
  func.func @transform_1(%arg0: i32) -> (i32, i32, i32) {
    %c0_i32 = arith.constant 0 : i32
    %c0_i32_0 = arith.constant 0 : i32
    %c0_i32_1 = arith.constant 0 : i32
    %c0_i32_2 = arith.constant 0 : i32
    return %c0_i32, %c0_i32_0, %c0_i32_1 : i32, i32, i32
  }
  func.func @transform_2(%arg0: i32) -> (i32, i32) {
    %c0_i32 = arith.constant 0 : i32
    %c0_i32_0 = arith.constant 0 : i32
    %c0_i32_1 = arith.constant 0 : i32
    return %c0_i32, %c0_i32_0 : i32, i32
  }
  func.func @transform_3(%arg0: i32) -> (i32, i32) {
    %c0_i32 = arith.constant 0 : i32
    %c0_i32_0 = arith.constant 0 : i32
    %c0_i32_1 = arith.constant 0 : i32
    return %c0_i32, %c0_i32_0 : i32, i32
  }
  func.func @transform_4(%arg0: i32) -> (i32, i32) {
    %c0_i32 = arith.constant 0 : i32
    %c0_i32_0 = arith.constant 0 : i32
    return %arg0, %c0_i32 : i32, i32
  }
}

</mosaic_0001>

<bundles_post_ra>
// kernel: tpu_custom_call.1
= control target key start
LH: loop header
LB: loop body
LE: loop exit
PB: predicated region body
PF: predicated region fallthrough
CT: control target
= control target key end

     0   :  { %v6049_v9 = vmov 0.0   ;;  %vm112_vm0 = vcmask 1043456   ;;  %vm5063_vm1 = vmmov 0   ;;  %s6042_s0 = inlined_call_operand.vmem [shape: bf16[32,8,8], index: 0, kind: input, shape index: {}]   ;;  %s6043_s1 = inlined_call_operand.vmem [shape: bf16[32,8,64], index: 1, kind: input, shape index: {}]   ;;  %s6044_s2 = inlined_call_operand.vmem [shape: f32[64,4], index: 2, kind: input, shape index: {}]   ;;  %s6045_s3 = inlined_call_operand.vmem [shape: f32[4,64], index: 3, kind: input, shape index: {}]   ;;  %s6046_s4 = inlined_call_operand.hbm [shape: f32[8,64], index: 4, kind: output, shape index: {}]  }
   0x1   :  { %v28_v0 = vld [vmem:[%s6042_s0] sm:$0xf]  ;;  %v30_v1 = vld [vmem:[%s6042_s0 + $0x8] sm:$0xf]  ;;  %v29_v2 = vld [vmem:[%s6042_s0 + $0x4] sm:$0xf]  ;;  %4509 = vmatprep.subr.bf16.mxu0 %v6049_v9  ;;  %4515 = vmatprep.subr.bf16.mxu1 %v6049_v9 }
   0x2   :  { %92 = vxpose.xlu0.c.b16.start.end [1/1] (short) (narrow) %v28_v0, 16  ;;  %218 = vxpose.xlu1.c.b16.start.end [1/1] (short) (narrow) %v30_v1, 16  ;;  %v31_v3 = vld [vmem:[%s6042_s0 + $0xc] sm:$0xf]  ;;  %v32_v4 = vld [vmem:[%s6042_s0 + $0x10] sm:$0xf] }
   0x3   :  { %v33_v5 = vld [vmem:[%s6042_s0 + $0x14] sm:$0xf]  ;;  %v60_v6 = vld [vmem:[%s6043_s1] sm:$0xf]  ;;  %v34_v7 = vld [vmem:[%s6042_s0 + $0x18] sm:$0xf]  ;;  %4511 = vmatprep.mubr.msk.bf16.mxu0 %vm5063_vm1, %v6049_v9  ;;  %4517 = vmatprep.mubr.msk.bf16.mxu1 %vm5063_vm1, %v6049_v9 }
   0x4   :  { %v35_v8 = vld [vmem:[%s6042_s0 + $0x1c] sm:$0xf]  ;;  %v114_v10 = vsel %vm112_vm0, %v60_v6, 0  ;;  %v61_v11 = vld [vmem:[%s6043_s1 + $0x4] sm:$0xf] }
   0x5   :  { %4510 = vmatpush3.bf16.msra.mxu0 %v114_v10  ;;  %v176_v12 = vsel %vm112_vm0, %v61_v11, 0  ;;  %v36_v13 = vld [vmem:[%s6042_s0 + $0x20] sm:$0xf]  ;;  %v37_v14 = vld [vmem:[%s6042_s0 + $0x24] sm:$0xf] }
   0x6   :  { %156 = vxpose.xlu0.c.b16.start.end [1/1] (short) (narrow) %v29_v2, 16  ;;  %280 = vxpose.xlu1.c.b16.start.end [1/1] (short) (narrow) %v31_v3, 16  ;;  %v38_v15 = vld [vmem:[%s6042_s0 + $0x28] sm:$0xf]  ;;  %v39_v16 = vld [vmem:[%s6042_s0 + $0x2c] sm:$0xf] }
   0x7   :  { %4516 = vmatpush3.bf16.msra.mxu1 %v176_v12  ;;  %4521 = vmatprep.subr.bf16.mxu0 %v6049_v9 }
   0x8   :  { %4527 = vmatprep.subr.bf16.mxu1 %v6049_v9 }
   0xa   :  { %342 = vxpose.xlu0.c.b16.start.end [1/1] (short) (narrow) %v32_v4, 16  ;;  %404 = vxpose.xlu1.c.b16.start.end [1/1] (short) (narrow) %v33_v5, 16 }
   0xe   :  { %466 = vxpose.xlu0.c.b16.start.end [1/1] (short) (narrow) %v34_v7, 16  ;;  %528 = vxpose.xlu1.c.b16.start.end [1/1] (short) (narrow) %v35_v8, 16 }
  0x12   :  { %590 = vxpose.xlu0.c.b16.start.end [1/1] (short) (narrow) %v36_v13, 16  ;;  %652 = vxpose.xlu1.c.b16.start.end [1/1] (short) (narrow) %v37_v14, 16 }
  0x13   :  { %9 = vsyncpa [#allocation4], 0  ;;  %v40_v17 = vld [vmem:[%s6042_s0 + $0x30] sm:$0xf]  ;;  %v41_v18 = vld [vmem:[%s6042_s0 + $0x34] sm:$0xf] }
  0x14   :  { %v42_v19 = vld [vmem:[%s6042_s0 + $0x38] sm:$0xf]  ;;  %v43_v20 = vld [vmem:[%s6042_s0 + $0x3c] sm:$0xf]  ;;  %v44_v21 = vld [vmem:[%s6042_s0 + $0x40] sm:$0xf] }
  0x15   :  { %v45_v22 = vld [vmem:[%s6042_s0 + $0x44] sm:$0xf]  ;;  %v46_v23 = vld [vmem:[%s6042_s0 + $0x48] sm:$0xf]  ;;  %v47_v24 = vld [vmem:[%s6042_s0 + $0x4c] sm:$0xf] }
  0x16   :  { %714 = vxpose.xlu0.c.b16.start.end [1/1] (short) (narrow) %v38_v15, 16  ;;  %776 = vxpose.xlu1.c.b16.start.end [1/1] (short) (narrow) %v39_v16, 16  ;;  %v48_v25 = vld [vmem:[%s6042_s0 + $0x50] sm:$0xf]  ;;  %v49_v26 = vld [vmem:[%s6042_s0 + $0x54] sm:$0xf] }
  0x17   :  { %v50_v27 = vld [vmem:[%s6042_s0 + $0x58] sm:$0xf]  ;;  %v51_v28 = vld [vmem:[%s6042_s0 + $0x5c] sm:$0xf]  ;;  %v52_v29 = vld [vmem:[%s6042_s0 + $0x60] sm:$0xf] }
  0x18   :  { %v53_v30 = vld [vmem:[%s6042_s0 + $0x64] sm:$0xf]  ;;  %v54_v31 = vld [vmem:[%s6042_s0 + $0x68] sm:$0xf]  ;;  %v55_v32 = vld [vmem:[%s6042_s0 + $0x6c] sm:$0xf] }
  0x19   :  { %v56_v33 = vld [vmem:[%s6042_s0 + $0x70] sm:$0xf]  ;;  %v57_v34 = vld [vmem:[%s6042_s0 + $0x74] sm:$0xf]  ;;  %v58_v35 = vld [vmem:[%s6042_s0 + $0x78] sm:$0xf] }
  0x1a   :  { %838 = vxpose.xlu0.c.b16.start.end [1/1] (short) (narrow) %v40_v17, 16  ;;  %900 = vxpose.xlu1.c.b16.start.end [1/1] (short) (narrow) %v41_v18, 16  ;;  %v59_v36 = vld [vmem:[%s6042_s0 + $0x7c] sm:$0xf]  ;;  %v62_v37 = vld [vmem:[%s6043_s1 + $0x8] sm:$0xf] }
  0x1b   :  { %vm108_vm2 = vcmask 64512   ;;  %v238_v38 = vsel %vm112_vm0, %v62_v37, 0  ;;  %v63_v40 = vld [vmem:[%s6043_s1 + $0xc] sm:$0xf]  ;;  %v64_v44 = vld [vmem:[%s6043_s1 + $0x10] sm:$0xf] }
  0x1c   :  { %v300_v41 = vsel %vm112_vm0, %v63_v40, 0  ;;  %v362_v45 = vsel %vm112_vm0, %v64_v44, 0  ;;  %v65_v46 = vld [vmem:[%s6043_s1 + $0x14] sm:$0xf]  ;;  %v66_v49 = vld [vmem:[%s6043_s1 + $0x18] sm:$0xf] }
  0x1d   :  { %v424_v48 = vsel %vm112_vm0, %v65_v46, 0  ;;  %v486_v51 = vsel %vm112_vm0, %v66_v49, 0  ;;  %v67_v52 = vld [vmem:[%s6043_s1 + $0x1c] sm:$0xf]  ;;  %v68_v55 = vld [vmem:[%s6043_s1 + $0x20] sm:$0xf] }
  0x1e   :  { %962 = vxpose.xlu0.c.b16.start.end [1/1] (short) (narrow) %v42_v19, 16  ;;  %1024 = vxpose.xlu1.c.b16.start.end [1/1] (short) (narrow) %v43_v20, 16  ;;  %v548_v54 = vsel %vm112_vm0, %v67_v52, 0  ;;  %v610_v57 = vsel %vm112_vm0, %v68_v55, 0  ;;  %v69_v58 = vld [vmem:[%s6043_s1 + $0x24] sm:$0xf] }
  0x1f   :  { %v672_v60 = vsel %vm112_vm0, %v69_v58, 0  ;;  %v70_v61 = vld [vmem:[%s6043_s1 + $0x28] sm:$0xf]  ;;  %v71_v0 = vld [vmem:[%s6043_s1 + $0x2c] sm:$0xf]  ;;  %vm2078_vm3 = vcmask 523264  }
  0x20   :  { %v734_v63 = vsel %vm112_vm0, %v70_v61, 0  ;;  %v796_v2 = vsel %vm112_vm0, %v71_v0, 0  ;;  %v72_v3 = vld [vmem:[%s6043_s1 + $0x30] sm:$0xf]  ;;  %v73_v6 = vld [vmem:[%s6043_s1 + $0x34] sm:$0xf]  ;;  %vm5666_vm7 = vmpackc.low %vm2078_vm3, %vm2078_vm3 }
  0x21   :  { %v858_v5 = vsel %vm112_vm0, %v72_v3, 0  ;;  %v920_v8 = vsel %vm112_vm0, %v73_v6, 0  ;;  %v74_v10 = vld [vmem:[%s6043_s1 + $0x38] sm:$0xf]  ;;  %v75_v13 = vld [vmem:[%s6043_s1 + $0x3c] sm:$0xf] }
  0x22   :  { %1086 = vxpose.xlu0.c.b16.start.end [1/1] (short) (narrow) %v44_v21, 16  ;;  %1148 = vxpose.xlu1.c.b16.start.end [1/1] (short) (narrow) %v45_v22, 16  ;;  %v982_v12 = vsel %vm112_vm0, %v74_v10, 0  ;;  %v1044_v15 = vsel %vm112_vm0, %v75_v13, 0  ;;  %v76_v16 = vld [vmem:[%s6043_s1 + $0x40] sm:$0xf] }
  0x23   :  { %v1106_v18 = vsel %vm112_vm0, %v76_v16, 0  ;;  %v77_v19 = vld [vmem:[%s6043_s1 + $0x44] sm:$0xf]  ;;  %v78_v22 = vld [vmem:[%s6043_s1 + $0x48] sm:$0xf]  ;;  %v21_v6 = vld [vmem:[%s6044_s2 + $0x10] sm:$0xff] }
  0x24   :  { %v1168_v21 = vsel %vm112_vm0, %v77_v19, 0  ;;  %v83_v37 = vld [vmem:[%s6043_s1 + $0x5c] sm:$0xf]  ;;  %v84_v40 = vld [vmem:[%s6043_s1 + $0x60] sm:$0xf]  ;;  %v20_v3 = vld [vmem:[%s6044_s2 + $0x8] sm:$0xff] }
  0x25   :  { %v86_v46 = vld [vmem:[%s6043_s1 + $0x68] sm:$0xf]  ;;  %v87_v49 = vld [vmem:[%s6043_s1 + $0x6c] sm:$0xf]  ;;  %v88_v52 = vld [vmem:[%s6043_s1 + $0x70] sm:$0xf] }
  0x26   :  { %1210 = vxpose.xlu0.c.b16.start.end [1/1] (short) (narrow) %v46_v23, 16  ;;  %1272 = vxpose.xlu1.c.b16.start.end [1/1] (short) (narrow) %v47_v24, 16  ;;  %v1230_v24 = vsel %vm112_vm0, %v78_v22, 0  ;;  %v89_v55 = vld [vmem:[%s6043_s1 + $0x74] sm:$0xf]  ;;  %v23_v10 = vld [vmem:[%s6044_s2 + $0x20] sm:$0xff] }
  0x27   :  { %v90_v58 = vld [vmem:[%s6043_s1 + $0x78] sm:$0xf]  ;;  %v91_v61 = vld [vmem:[%s6043_s1 + $0x7c] sm:$0xf]  ;;  %v25_v13 = vld [vmem:[%s6044_s2 + $0x30] sm:$0xff]  ;;  %vm2230_vm6 = vcmask 31744  }
  0x2a   :  { %1334 = vxpose.xlu0.c.b16.start.end [1/1] (short) (narrow) %v48_v25, 16  ;;  %1396 = vxpose.xlu1.c.b16.start.end [1/1] (short) (narrow) %v49_v26, 16  ;;  %v79_v25 = vld [vmem:[%s6043_s1 + $0x4c] sm:$0xf] }
  0x2e   :  { %1458 = vxpose.xlu0.c.b16.start.end [1/1] (short) (narrow) %v50_v27, 16  ;;  %1520 = vxpose.xlu1.c.b16.start.end [1/1] (short) (narrow) %v51_v28, 16  ;;  %v1292_v27 = vsel %vm112_vm0, %v79_v25, 0  ;;  %v80_v28 = vld [vmem:[%s6043_s1 + $0x50] sm:$0xf] }
  0x32   :  { %1582 = vxpose.xlu0.c.b16.start.end [1/1] (short) (narrow) %v52_v29, 16  ;;  %1644 = vxpose.xlu1.c.b16.start.end [1/1] (short) (narrow) %v53_v30, 16  ;;  %v1354_v30 = vsel %vm112_vm0, %v80_v28, 0 }
  0x36   :  { %1706 = vxpose.xlu0.c.b16.start.end [1/1] (short) (narrow) %v54_v31, 16  ;;  %1768 = vxpose.xlu1.c.b16.start.end [1/1] (short) (narrow) %v55_v32, 16  ;;  %v81_v31 = vld [vmem:[%s6043_s1 + $0x54] sm:$0xf] }
  0x3a   :  { %1830 = vxpose.xlu0.c.b16.start.end [1/1] (short) (narrow) %v56_v33, 16  ;;  %1892 = vxpose.xlu1.c.b16.start.end [1/1] (short) (narrow) %v57_v34, 16  ;;  %v1416_v33 = vsel %vm112_vm0, %v81_v31, 0  ;;  %v82_v34 = vld [vmem:[%s6043_s1 + $0x58] sm:$0xf] }
  0x3e   :  { %1954 = vxpose.xlu0.c.b16.start.end [1/1] (short) (narrow) %v58_v35, 16  ;;  %2016 = vxpose.xlu1.c.b16.start.end [1/1] (short) (narrow) %v59_v36, 16  ;;  %v1478_v36 = vsel %vm112_vm0, %v82_v34, 0 }
  0x68   :  { %v100_v39 = vpop.trf.xlu0  ;;  %v226_v43 = vpop.trf.xlu1 }
  0x69   :  { %4512 = vmatmul.mubr.msk.bf16.vlgmr.msra.gmra.mrb[0].mxu0 %vm108_vm2, %v100_v39  ;;  %v1540_v39 = vsel %vm112_vm0, %v83_v37, 0 }
  0x6a   :  { %4522 = vmatpush3.bf16.msra.mxu0 %v238_v38  ;;  %4523 = vmatprep.mubr.msk.bf16.mxu0 %vm5063_vm1, %v6049_v9 }
  0x6b   :  { %4533 = vmatprep.subr.bf16.mxu0 %v6049_v9 }
  0x6c   :  { %v164_v42 = vpop.trf.xlu0  ;;  %v288_v47 = vpop.trf.xlu1 }
  0x6d   :  { %4518 = vmatmul.mubr.msk.bf16.vlgmr.msra.gmra.mrb[0].mxu1 %vm108_vm2, %v164_v42  ;;  %v1602_v42 = vsel %vm112_vm0, %v84_v40, 0 }
  0x6e   :  { %4528 = vmatpush3.bf16.msra.mxu1 %v300_v41  ;;  %4529 = vmatprep.mubr.msk.bf16.mxu1 %vm5063_vm1, %v6049_v9 }
  0x6f   :  { %4539 = vmatprep.subr.bf16.mxu1 %v6049_v9 }
  0x70   :  { %v350_v50 = vpop.trf.xlu0  ;;  %v412_v53 = vpop.trf.xlu1 }
  0x71   :  { %4524 = vmatmul.mubr.msk.bf16.vlgmr.msra.gmra.mrb[4].mxu0 %vm108_vm2, %v226_v43  ;;  %v85_v43 = vld [vmem:[%s6043_s1 + $0x64] sm:$0xf] }
  0x72   :  { %4534 = vmatpush3.bf16.msra.mxu0 %v362_v45  ;;  %4535 = vmatprep.mubr.msk.bf16.mxu0 %vm5063_vm1, %v6049_v9  ;;  %v1664_v45 = vsel %vm112_vm0, %v85_v43, 0 }
  0x73   :  { %4545 = vmatprep.subr.bf16.mxu0 %v6049_v9 }
  0x74   :  { %v474_v56 = vpop.trf.xlu0  ;;  %v536_v59 = vpop.trf.xlu1 }
  0x75   :  { %4530 = vmatmul.mubr.msk.bf16.vlgmr.msra.gmra.mrb[4].mxu1 %vm108_vm2, %v288_v47 }
  0x76   :  { %4540 = vmatpush3.bf16.msra.mxu1 %v424_v48  ;;  %4541 = vmatprep.mubr.msk.bf16.mxu1 %vm5063_vm1, %v6049_v9  ;;  %v1726_v48 = vsel %vm112_vm0, %v86_v46, 0 }
  0x77   :  { %4551 = vmatprep.subr.bf16.mxu1 %v6049_v9 }
  0x78   :  { %v598_v62 = vpop.trf.xlu0  ;;  %v660_v1 = vpop.trf.xlu1 }
  0x79   :  { %4536 = vmatmul.mubr.msk.bf16.vlgmr.msra.gmra.mrb[8].mxu0 %vm108_vm2, %v350_v50 }
  0x7a   :  { %4546 = vmatpush3.bf16.msra.mxu0 %v486_v51  ;;  %4547 = vmatprep.mubr.msk.bf16.mxu0 %vm5063_vm1, %v6049_v9  ;;  %v1788_v51 = vsel %vm112_vm0, %v87_v49, 0 }
  0x7b   :  { %4557 = vmatprep.subr.bf16.mxu0 %v6049_v9 }
  0x7c   :  { %v722_v4 = vpop.trf.xlu0  ;;  %v784_v7 = vpop.trf.xlu1 }
  0x7d   :  { %4542 = vmatmul.mubr.msk.bf16.vlgmr.msra.gmra.mrb[8].mxu1 %vm108_vm2, %v412_v53 }
  0x7e   :  { %4552 = vmatpush3.bf16.msra.mxu1 %v548_v54  ;;  %4553 = vmatprep.mubr.msk.bf16.mxu1 %vm5063_vm1, %v6049_v9  ;;  %v1850_v54 = vsel %vm112_vm0, %v88_v52, 0 }
  0x7f   :  { %4563 = vmatprep.subr.bf16.mxu1 %v6049_v9 }
  0x80   :  { %v846_v11 = vpop.trf.xlu0  ;;  %v908_v14 = vpop.trf.xlu1 }
  0x81   :  { %4548 = vmatmul.mubr.msk.bf16.vlgmr.msra.gmra.mrb[12].mxu0 %vm108_vm2, %v474_v56 }
  0x82   :  { %4558 = vmatpush3.bf16.msra.mxu0 %v610_v57  ;;  %4559 = vmatprep.mubr.msk.bf16.mxu0 %vm5063_vm1, %v6049_v9  ;;  %v1912_v57 = vsel %vm112_vm0, %v89_v55, 0 }
  0x83   :  { %4569 = vmatprep.subr.bf16.mxu0 %v6049_v9 }
  0x84   :  { %v970_v17 = vpop.trf.xlu0  ;;  %v1032_v20 = vpop.trf.xlu1 }
  0x85   :  { %4554 = vmatmul.mubr.msk.bf16.vlgmr.msra.gmra.mrb[12].mxu1 %vm108_vm2, %v536_v59 }
  0x86   :  { %4564 = vmatpush3.bf16.msra.mxu1 %v672_v60  ;;  %4565 = vmatprep.mubr.msk.bf16.mxu1 %vm5063_vm1, %v6049_v9  ;;  %v1974_v60 = vsel %vm112_vm0, %v90_v58, 0 }
  0x87   :  { %4575 = vmatprep.subr.bf16.mxu1 %v6049_v9 }
  0x88   :  { %v1094_v23 = vpop.trf.xlu0  ;;  %v1156_v26 = vpop.trf.xlu1 }
  0x89   :  { %4560 = vmatmul.mubr.msk.bf16.vlgmr.msra.gmra.mrb[16].mxu0 %vm108_vm2, %v598_v62 }
  0x8a   :  { %4570 = vmatpush3.bf16.msra.mxu0 %v734_v63  ;;  %4571 = vmatprep.mubr.msk.bf16.mxu0 %vm5063_vm1, %v6049_v9  ;;  %v2036_v63 = vsel %vm112_vm0, %v91_v61, 0 }
  0x8b   :  { %4581 = vmatprep.subr.bf16.mxu0 %v6049_v9 }
  0x8c   :  { %v1218_v29 = vpop.trf.xlu0  ;;  %v1280_v32 = vpop.trf.xlu1 }
  0x8d   :  { %4566 = vmatmul.mubr.msk.bf16.vlgmr.msra.gmra.mrb[16].mxu1 %vm108_vm2, %v660_v1 }
  0x8e   :  { %4576 = vmatpush3.bf16.msra.mxu1 %v796_v2  ;;  %4577 = vmatprep.mubr.msk.bf16.mxu1 %vm5063_vm1, %v6049_v9  ;;  %v19_v2 = vld [vmem:[%s6044_s2] sm:$0xff] }
  0x8f   :  { %4587 = vmatprep.subr.bf16.mxu1 %v6049_v9 }
  0x90   :  { %v1342_v35 = vpop.trf.xlu0  ;;  %v1404_v38 = vpop.trf.xlu1 }
  0x91   :  { %4572 = vmatmul.mubr.msk.bf16.vlgmr.msra.gmra.mrb[20].mxu0 %vm108_vm2, %v722_v4  ;;  %v5454_v4 = vpack.c.bf16 %v20_v3, %v19_v2 }
  0x92   :  { %4582 = vmatpush3.bf16.msra.mxu0 %v858_v5  ;;  %4583 = vmatprep.mubr.msk.bf16.mxu0 %vm5063_vm1, %v6049_v9  ;;  %v6047_v5 = vmov 0.0|0.0  }
  0x93   :  { %4593 = vmatprep.subr.bf16.mxu0 %v6049_v9 }
  0x94   :  { %v1466_v41 = vpop.trf.xlu0  ;;  %v1528_v44 = vpop.trf.xlu1 }
  0x95   :  { %4578 = vmatmul.mubr.msk.bf16.vlgmr.msra.gmra.mrb[20].mxu1 %vm108_vm2, %v784_v7  ;;  %v22_v7 = vld [vmem:[%s6044_s2 + $0x18] sm:$0xff] }
  0x96   :  { %4588 = vmatpush3.bf16.msra.mxu1 %v920_v8  ;;  %4589 = vmatprep.mubr.msk.bf16.mxu1 %vm5063_vm1, %v6049_v9  ;;  %v5465_v8 = vpack.c.bf16 %v22_v7, %v21_v6 }
  0x97   :  { %4599 = vmatprep.subr.bf16.mxu1 %v6049_v9 }
  0x98   :  { %v1590_v47 = vpop.trf.xlu0  ;;  %v1652_v50 = vpop.trf.xlu1 }
  0x99   :  { %4584 = vmatmul.mubr.msk.bf16.vlgmr.msra.gmra.mrb[24].mxu0 %vm108_vm2, %v846_v11  ;;  %v24_v11 = vld [vmem:[%s6044_s2 + $0x28] sm:$0xff] }
  0x9a   :  { %4594 = vmatpush3.bf16.msra.mxu0 %v982_v12  ;;  %4595 = vmatprep.mubr.msk.bf16.mxu0 %vm5063_vm1, %v6049_v9  ;;  %v5475_v12 = vpack.c.bf16 %v24_v11, %v23_v10 }
  0x9b   :  { %4605 = vmatprep.subr.bf16.mxu0 %v6049_v9 }
  0x9c   :  { %v1714_v53 = vpop.trf.xlu0  ;;  %v1776_v56 = vpop.trf.xlu1 }
  0x9d   :  { %4590 = vmatmul.mubr.msk.bf16.vlgmr.msra.gmra.mrb[24].mxu1 %vm108_vm2, %v908_v14  ;;  %v26_v14 = vld [vmem:[%s6044_s2 + $0x38] sm:$0xff] }
  0x9e   :  { %4600 = vmatpush3.bf16.msra.mxu1 %v1044_v15  ;;  %4601 = vmatprep.mubr.msk.bf16.mxu1 %vm5063_vm1, %v6049_v9  ;;  %v5485_v15 = vpack.c.bf16 %v26_v14, %v25_v13 }
  0x9f   :  { %4611 = vmatprep.subr.bf16.mxu1 %v6049_v9 }
  0xa0   :  { %v1838_v59 = vpop.trf.xlu0  ;;  %v1900_v62 = vpop.trf.xlu1 }
  0xa1   :  { %4596 = vmatmul.mubr.msk.bf16.vlgmr.msra.gmra.mrb[28].mxu0 %vm108_vm2, %v970_v17 }
  0xa2   :  { %4606 = vmatpush3.bf16.msra.mxu0 %v1106_v18  ;;  %4607 = vmatprep.mubr.msk.bf16.mxu0 %vm5063_vm1, %v6049_v9 }
  0xa3   :  { %4617 = vmatprep.subr.bf16.mxu0 %v6049_v9 }
  0xa4   :  { %v1962_v0 = vpop.trf.xlu0  ;;  %v2024_v1 = vpop.trf.xlu1 }
  0xa5   :  { %4602 = vmatmul.mubr.msk.bf16.vlgmr.msra.gmra.mrb[28].mxu1 %vm108_vm2, %v1032_v20 }
  0xa6   :  { %4612 = vmatpush3.bf16.msra.mxu1 %v1168_v21  ;;  %4613 = vmatprep.mubr.msk.bf16.mxu1 %vm5063_vm1, %v6049_v9 }
  0xa7   :  { %4623 = vmatprep.subr.bf16.mxu1 %v6049_v9 }
  0xa9   :  { %4608 = vmatmul.mubr.msk.bf16.vlgmr.msra.gmra.mrb[32].mxu0 %vm108_vm2, %v1094_v23 }
  0xaa   :  { %4618 = vmatpush3.bf16.msra.mxu0 %v1230_v24  ;;  %4619 = vmatprep.mubr.msk.bf16.mxu0 %vm5063_vm1, %v6049_v9 }
  0xab   :  { %4629 = vmatprep.subr.bf16.mxu0 %v6049_v9 }
  0xad   :  { %4614 = vmatmul.mubr.msk.bf16.vlgmr.msra.gmra.mrb[32].mxu1 %vm108_vm2, %v1156_v26 }
  0xae   :  { %4624 = vmatpush3.bf16.msra.mxu1 %v1292_v27  ;;  %4625 = vmatprep.mubr.msk.bf16.mxu1 %vm5063_vm1, %v6049_v9 }
  0xaf   :  { %4635 = vmatprep.subr.bf16.mxu1 %v6049_v9 }
  0xb1   :  { %4620 = vmatmul.mubr.msk.bf16.vlgmr.msra.gmra.mrb[36].mxu0 %vm108_vm2, %v1218_v29 }
  0xb2   :  { %4630 = vmatpush3.bf16.msra.mxu0 %v1354_v30  ;;  %4631 = vmatprep.mubr.msk.bf16.mxu0 %vm5063_vm1, %v6049_v9 }
  0xb3   :  { %4641 = vmatprep.subr.bf16.mxu0 %v6049_v9 }
  0xb5   :  { %4626 = vmatmul.mubr.msk.bf16.vlgmr.msra.gmra.mrb[36].mxu1 %vm108_vm2, %v1280_v32 }
  0xb6   :  { %4636 = vmatpush3.bf16.msra.mxu1 %v1416_v33  ;;  %4637 = vmatprep.mubr.msk.bf16.mxu1 %vm5063_vm1, %v6049_v9 }
  0xb7   :  { %4647 = vmatprep.subr.bf16.mxu1 %v6049_v9 }
  0xb9   :  { %4632 = vmatmul.mubr.msk.bf16.vlgmr.msra.gmra.mrb[40].mxu0 %vm108_vm2, %v1342_v35 }
  0xba   :  { %4642 = vmatpush3.bf16.msra.mxu0 %v1478_v36  ;;  %4643 = vmatprep.mubr.msk.bf16.mxu0 %vm5063_vm1, %v6049_v9 }
  0xbb   :  { %4653 = vmatprep.subr.bf16.mxu0 %v6049_v9 }
  0xbd   :  { %4638 = vmatmul.mubr.msk.bf16.vlgmr.msra.gmra.mrb[40].mxu1 %vm108_vm2, %v1404_v38 }
  0xbe   :  { %4648 = vmatpush3.bf16.msra.mxu1 %v1540_v39  ;;  %4649 = vmatprep.mubr.msk.bf16.mxu1 %vm5063_vm1, %v6049_v9 }
  0xbf   :  { %4659 = vmatprep.subr.bf16.mxu1 %v6049_v9 }
  0xc1   :  { %4644 = vmatmul.mubr.msk.bf16.vlgmr.msra.gmra.mrb[44].mxu0 %vm108_vm2, %v1466_v41 }
  0xc2   :  { %4654 = vmatpush3.bf16.msra.mxu0 %v1602_v42  ;;  %4655 = vmatprep.mubr.msk.bf16.mxu0 %vm5063_vm1, %v6049_v9 }
  0xc3   :  { %4665 = vmatprep.subr.bf16.mxu0 %v6049_v9 }
  0xc5   :  { %4650 = vmatmul.mubr.msk.bf16.vlgmr.msra.gmra.mrb[44].mxu1 %vm108_vm2, %v1528_v44 }
  0xc6   :  { %4660 = vmatpush3.bf16.msra.mxu1 %v1664_v45  ;;  %4661 = vmatprep.mubr.msk.bf16.mxu1 %vm5063_vm1, %v6049_v9 }
  0xc7   :  { %4671 = vmatprep.subr.bf16.mxu1 %v6049_v9 }
  0xc9   :  { %4656 = vmatmul.mubr.msk.bf16.vlgmr.msra.gmra.mrb[48].mxu0 %vm108_vm2, %v1590_v47 }
  0xca   :  { %4666 = vmatpush3.bf16.msra.mxu0 %v1726_v48  ;;  %4667 = vmatprep.mubr.msk.bf16.mxu0 %vm5063_vm1, %v6049_v9 }
  0xcb   :  { %4677 = vmatprep.subr.bf16.mxu0 %v6049_v9 }
  0xcd   :  { %4662 = vmatmul.mubr.msk.bf16.vlgmr.msra.gmra.mrb[48].mxu1 %vm108_vm2, %v1652_v50 }
  0xce   :  { %4672 = vmatpush3.bf16.msra.mxu1 %v1788_v51  ;;  %4673 = vmatprep.mubr.msk.bf16.mxu1 %vm5063_vm1, %v6049_v9 }
  0xcf   :  { %4683 = vmatprep.subr.bf16.mxu1 %v6049_v9 }
  0xd1   :  { %4668 = vmatmul.mubr.msk.bf16.vlgmr.msra.gmra.mrb[52].mxu0 %vm108_vm2, %v1714_v53 }
  0xd2   :  { %4678 = vmatpush3.bf16.msra.mxu0 %v1850_v54  ;;  %4679 = vmatprep.mubr.msk.bf16.mxu0 %vm5063_vm1, %v6049_v9 }
  0xd3   :  { %4689 = vmatprep.subr.bf16.mxu0 %v6049_v9 }
  0xd5   :  { %4674 = vmatmul.mubr.msk.bf16.vlgmr.msra.gmra.mrb[52].mxu1 %vm108_vm2, %v1776_v56 }
  0xd6   :  { %4684 = vmatpush3.bf16.msra.mxu1 %v1912_v57  ;;  %4685 = vmatprep.mubr.msk.bf16.mxu1 %vm5063_vm1, %v6049_v9 }
  0xd7   :  { %4695 = vmatprep.subr.bf16.mxu1 %v6049_v9 }
  0xd9   :  { %4680 = vmatmul.mubr.msk.bf16.vlgmr.msra.gmra.mrb[56].mxu0 %vm108_vm2, %v1838_v59 }
  0xda   :  { %4690 = vmatpush3.bf16.msra.mxu0 %v1974_v60  ;;  %4691 = vmatprep.mubr.msk.bf16.mxu0 %vm5063_vm1, %v6049_v9 }
  0xdb   :  { %4873 = vmatprep.subr.bf16.mxu0 %v6047_v5 }
  0xdd   :  { %4686 = vmatmul.mubr.msk.bf16.vlgmr.msra.gmra.mrb[56].mxu1 %vm108_vm2, %v1900_v62 }
  0xde   :  { %4696 = vmatpush3.bf16.msra.mxu1 %v2036_v63  ;;  %4697 = vmatprep.mubr.msk.bf16.mxu1 %vm5063_vm1, %v6049_v9 }
  0xdf   :  { %4720 = vmatprep.subr.mxu1 %v6049_v9 }
  0xe1   :  { %4692 = vmatmul.mubr.msk.bf16.vlgmr.msra.gmra.mrb[60].mxu0 %vm108_vm2, %v1962_v0 }
  0xe2   :  { %4717 = vmatprep.mubr.msk.f32.mxu0 %vm5063_vm1, %v6049_v9  ;;  %4875 = vmatpush3.bf16.msra.mxu0 %v5454_v4 }
  0xe3   :  { %4876 = vmatprep.subr.bf16.mxu0 %v6047_v5 }
  0xe5   :  { %4698 = vmatmul.mubr.msk.bf16.vlgmr.msra.gmra.mrb[60].mxu1 %vm108_vm2, %v2024_v1 }
  0xe6   :  { %4722 = vmatprep.mubr.msk.f32.mxu1 %vm5063_vm1, %v6049_v9  ;;  %4878 = vmatpush3.bf16.msra.mxu0 %v5465_v8 }
  0xe7   :  { %4879 = vmatprep.subr.bf16.mxu0 %v6047_v5 }
  0xea   :  { %4881 = vmatpush3.bf16.msra.mxu0 %v5475_v12 }
  0xeb   :  { %4882 = vmatprep.subr.bf16.mxu0 %v6047_v5 }
  0xee   :  { %4884 = vmatpush3.bf16.msra.mxu0 %v5485_v15 }
 0x13c   :  { %v5487_v16 = vpop.f32.mrb[0].mxu0 }
 0x13d   :  { %v4513_v17 = vpop.f32.mrb[1].mxu0  ;;  %v2079_v21 = vsel %vm2078_vm3, %v5487_v16, 0.0 }
 0x13e   :  { %v153_v18 = vpop.f32.mrb[2].mxu0 }
 0x13f   :  { %v4514_v19 = vpop.f32.mrb[3].mxu0 }
 0x140   :  { %v5490_v20 = vpop.f32.mrb[0].mxu1 }
 0x141   :  { %v2080_v22 = vsel %vm2078_vm3, %v5490_v20, 0.0  ;;  %v4519_v23 = vpop.f32.mrb[1].mxu1 }
 0x142   :  { %v2081_v24 = vadd.f32 %v2080_v22, %v2079_v21  ;;  %v215_v25 = vpop.f32.mrb[2].mxu1 }
 0x143   :  { %v4520_v26 = vpop.f32.mrb[3].mxu1 }
 0x144   :  { %v5496_v27 = vpop.f32.mrb[4].mxu0 }
 0x145   :  { %6118 = vst [vmem:[#allocation6_spill] sm:$0xff] %v5496_v27  ;;  %v2082_v28 = vsel %vm2078_vm3, %v5496_v27, 0.0  ;;  %v4525_v29 = vpop.f32.mrb[5].mxu0 }
 0x146   :  { %v2083_v30 = vadd.f32 %v2082_v28, %v2081_v24  ;;  %v277_v31 = vpop.f32.mrb[6].mxu0 }
 0x147   :  { %v4526_v32 = vpop.f32.mrb[7].mxu0 }
 0x148   :  { %v5500_v33 = vpop.f32.mrb[4].mxu1 }
 0x149   :  { %v2084_v34 = vsel %vm2078_vm3, %v5500_v33, 0.0  ;;  %v4531_v35 = vpop.f32.mrb[5].mxu1 }
 0x14a   :  { %v2085_v36 = vadd.f32 %v2084_v34, %v2083_v30  ;;  %v339_v37 = vpop.f32.mrb[6].mxu1 }
 0x14b   :  { %v4532_v38 = vpop.f32.mrb[7].mxu1 }
 0x14c   :  { %v5504_v39 = vpop.f32.mrb[8].mxu0 }
 0x14d   :  { %6119 = vst [vmem:[#allocation7_spill] sm:$0xff] %v5504_v39  ;;  %v2086_v40 = vsel %vm2078_vm3, %v5504_v39, 0.0  ;;  %v4537_v41 = vpop.f32.mrb[9].mxu0 }
 0x14e   :  { %v2087_v42 = vadd.f32 %v2086_v40, %v2085_v36  ;;  %v401_v43 = vpop.f32.mrb[10].mxu0 }
 0x14f   :  { %v4538_v44 = vpop.f32.mrb[11].mxu0 }
 0x150   :  { %v5508_v45 = vpop.f32.mrb[8].mxu1 }
 0x151   :  { %6120 = vst [vmem:[#allocation8_spill] sm:$0xff] %v5508_v45  ;;  %v2088_v46 = vsel %vm2078_vm3, %v5508_v45, 0.0  ;;  %v4543_v47 = vpop.f32.mrb[9].mxu1 }
 0x152   :  { %v2089_v48 = vadd.f32 %v2088_v46, %v2087_v42  ;;  %v463_v49 = vpop.f32.mrb[10].mxu1 }
 0x153   :  { %v4544_v50 = vpop.f32.mrb[11].mxu1 }
 0x154   :  { %v5512_v51 = vpop.f32.mrb[12].mxu0 }
 0x155   :  { %6121 = vst [vmem:[#allocation9_spill] sm:$0xff] %v5512_v51  ;;  %v2090_v52 = vsel %vm2078_vm3, %v5512_v51, 0.0  ;;  %v4549_v53 = vpop.f32.mrb[13].mxu0 }
 0x156   :  { %v2091_v54 = vadd.f32 %v2090_v52, %v2089_v48  ;;  %v525_v55 = vpop.f32.mrb[14].mxu0 }
 0x157   :  { %v4550_v56 = vpop.f32.mrb[15].mxu0 }
 0x158   :  { %v5516_v57 = vpop.f32.mrb[12].mxu1 }
 0x159   :  { %6122 = vst [vmem:[#allocation10_spill] sm:$0xff] %v5516_v57  ;;  %v2092_v58 = vsel %vm2078_vm3, %v5516_v57, 0.0  ;;  %v4555_v59 = vpop.f32.mrb[13].mxu1 }
 0x15a   :  { %v2093_v60 = vadd.f32 %v2092_v58, %v2091_v54  ;;  %v587_v61 = vpop.f32.mrb[14].mxu1 }
 0x15b   :  { %v4556_v62 = vpop.f32.mrb[15].mxu1 }
 0x15c   :  { %v5520_v63 = vpop.f32.mrb[16].mxu0 }
 0x15d   :  { %6123 = vst [vmem:[#allocation11_spill] sm:$0xff] %v5520_v63  ;;  %v2094_v0 = vsel %vm2078_vm3, %v5520_v63, 0.0  ;;  %v4561_v1 = vpop.f32.mrb[17].mxu0 }
 0x15e   :  { %v2095_v2 = vadd.f32 %v2094_v0, %v2093_v60  ;;  %v649_v3 = vpop.f32.mrb[18].mxu0 }
 0x15f   :  { %v4562_v6 = vpop.f32.mrb[19].mxu0 }
 0x160   :  { %v5524_v7 = vpop.f32.mrb[16].mxu1 }
 0x161   :  { %6124 = vst [vmem:[#allocation12_spill] sm:$0xff] %v5524_v7  ;;  %v2096_v10 = vsel %vm2078_vm3, %v5524_v7, 0.0  ;;  %v4567_v11 = vpop.f32.mrb[17].mxu1 }
 0x162   :  { %v2097_v13 = vadd.f32 %v2096_v10, %v2095_v2  ;;  %v711_v14 = vpop.f32.mrb[18].mxu1 }
 0x163   :  { %v4568_v17 = vpop.f32.mrb[19].mxu1 }
 0x164   :  { %v5528_v18 = vpop.f32.mrb[20].mxu0 }
 0x165   :  { %6125 = vst [vmem:[#allocation13_spill] sm:$0xff] %v5528_v18  ;;  %v2098_v19 = vsel %vm2078_vm3, %v5528_v18, 0.0  ;;  %v4573_v21 = vpop.f32.mrb[21].mxu0 }
 0x166   :  { %v2099_v22 = vadd.f32 %v2098_v19, %v2097_v13  ;;  %v773_v23 = vpop.f32.mrb[22].mxu0 }
 0x167   :  { %v4574_v24 = vpop.f32.mrb[23].mxu0 }
 0x168   :  { %v5532_v25 = vpop.f32.mrb[20].mxu1 }
 0x169   :  { %6126 = vst [vmem:[#allocation14_spill] sm:$0xff] %v5532_v25  ;;  %v2100_v26 = vsel %vm2078_vm3, %v5532_v25, 0.0  ;;  %v4579_v28 = vpop.f32.mrb[21].mxu1 }
 0x16a   :  { %v2101_v29 = vadd.f32 %v2100_v26, %v2099_v22  ;;  %v835_v30 = vpop.f32.mrb[22].mxu1 }
 0x16b   :  { %v4580_v31 = vpop.f32.mrb[23].mxu1 }
 0x16c   :  { %v5536_v32 = vpop.f32.mrb[24].mxu0 }
 0x16d   :  { %6127 = vst [vmem:[#allocation15_spill] sm:$0xff] %v5536_v32  ;;  %v2102_v34 = vsel %vm2078_vm3, %v5536_v32, 0.0  ;;  %v4585_v35 = vpop.f32.mrb[25].mxu0 }
 0x16e   :  { %v2103_v36 = vadd.f32 %v2102_v34, %v2101_v29  ;;  %v897_v37 = vpop.f32.mrb[26].mxu0 }
 0x16f   :  { %v4586_v38 = vpop.f32.mrb[27].mxu0 }
 0x170   :  { %v5540_v40 = vpop.f32.mrb[24].mxu1 }
 0x171   :  { %6128 = vst [vmem:[#allocation16_spill] sm:$0xff] %v5540_v40  ;;  %v2104_v41 = vsel %vm2078_vm3, %v5540_v40, 0.0  ;;  %v4591_v42 = vpop.f32.mrb[25].mxu1 }
 0x172   :  { %v2105_v43 = vadd.f32 %v2104_v41, %v2103_v36  ;;  %v959_v44 = vpop.f32.mrb[26].mxu1 }
 0x173   :  { %v4592_v46 = vpop.f32.mrb[27].mxu1 }
 0x174   :  { %v5544_v47 = vpop.f32.mrb[28].mxu0 }
 0x175   :  { %6129 = vst [vmem:[#allocation17_spill] sm:$0xff] %v5544_v47  ;;  %v2106_v48 = vsel %vm2078_vm3, %v5544_v47, 0.0  ;;  %v4597_v49 = vpop.f32.mrb[29].mxu0 }
 0x176   :  { %v2107_v50 = vadd.f32 %v2106_v48, %v2105_v43  ;;  %v1021_v52 = vpop.f32.mrb[30].mxu0 }
 0x177   :  { %v4598_v53 = vpop.f32.mrb[31].mxu0 }
 0x178   :  { %v5548_v54 = vpop.f32.mrb[28].mxu1 }
 0x179   :  { %6130 = vst [vmem:[#allocation18_spill] sm:$0xff] %v5548_v54  ;;  %v2108_v55 = vsel %vm2078_vm3, %v5548_v54, 0.0  ;;  %v4603_v56 = vpop.f32.mrb[29].mxu1 }
 0x17a   :  { %v2109_v58 = vadd.f32 %v2108_v55, %v2107_v50  ;;  %v1083_v59 = vpop.f32.mrb[30].mxu1 }
 0x17b   :  { %v4604_v60 = vpop.f32.mrb[31].mxu1 }
 0x17c   :  { %v5552_v61 = vpop.f32.mrb[32].mxu0 }
 0x17d   :  { %6131 = vst [vmem:[#allocation19_spill] sm:$0xff] %v5552_v61  ;;  %v2110_v62 = vsel %vm2078_vm3, %v5552_v61, 0.0  ;;  %v4609_v0 = vpop.f32.mrb[33].mxu0 }
 0x17e   :  { %v2111_v1 = vadd.f32 %v2110_v62, %v2109_v58  ;;  %v1145_v2 = vpop.f32.mrb[34].mxu0 }
 0x17f   :  { %v4610_v3 = vpop.f32.mrb[35].mxu0 }
 0x180   :  { %v5556_v6 = vpop.f32.mrb[32].mxu1 }
 0x181   :  { %6132 = vst [vmem:[#allocation20_spill] sm:$0xff] %v5556_v6  ;;  %v2112_v10 = vsel %vm2078_vm3, %v5556_v6, 0.0  ;;  %v4615_v11 = vpop.f32.mrb[33].mxu1 }
 0x182   :  { %v2113_v13 = vadd.f32 %v2112_v10, %v2111_v1  ;;  %v1207_v14 = vpop.f32.mrb[34].mxu1 }
 0x183   :  { %v4616_v17 = vpop.f32.mrb[35].mxu1 }
 0x184   :  { %v5560_v19 = vpop.f32.mrb[36].mxu0 }
 0x185   :  { %6133 = vst [vmem:[#allocation21_spill] sm:$0xff] %v5560_v19  ;;  %v2114_v21 = vsel %vm2078_vm3, %v5560_v19, 0.0  ;;  %v4621_v22 = vpop.f32.mrb[37].mxu0 }
 0x186   :  { %v2115_v23 = vadd.f32 %v2114_v21, %v2113_v13  ;;  %v1269_v24 = vpop.f32.mrb[38].mxu0 }
 0x187   :  { %v4622_v26 = vpop.f32.mrb[39].mxu0 }
 0x188   :  { %v5564_v28 = vpop.f32.mrb[36].mxu1 }
 0x189   :  { %6134 = vst [vmem:[#allocation22_spill] sm:$0xff] %v5564_v28  ;;  %v2116_v29 = vsel %vm2078_vm3, %v5564_v28, 0.0  ;;  %v4627_v30 = vpop.f32.mrb[37].mxu1 }
 0x18a   :  { %v2117_v31 = vadd.f32 %v2116_v29, %v2115_v23  ;;  %v1331_v34 = vpop.f32.mrb[38].mxu1 }
 0x18b   :  { %v4628_v35 = vpop.f32.mrb[39].mxu1 }
 0x18c   :  { %v5568_v36 = vpop.f32.mrb[40].mxu0 }
 0x18d   :  { %6135 = vst [vmem:[#allocation23_spill] sm:$0xff] %v5568_v36  ;;  %v2118_v37 = vsel %vm2078_vm3, %v5568_v36, 0.0  ;;  %v4633_v38 = vpop.f32.mrb[41].mxu0 }
 0x18e   :  { %v2119_v41 = vadd.f32 %v2118_v37, %v2117_v31  ;;  %v1393_v42 = vpop.f32.mrb[42].mxu0 }
 0x18f   :  { %v4634_v43 = vpop.f32.mrb[43].mxu0 }
 0x190   :  { %v5572_v44 = vpop.f32.mrb[40].mxu1 }
 0x191   :  { %6136 = vst [vmem:[#allocation24_spill] sm:$0xff] %v5572_v44  ;;  %v2120_v46 = vsel %vm2078_vm3, %v5572_v44, 0.0  ;;  %v4639_v48 = vpop.f32.mrb[41].mxu1 }
 0x192   :  { %v2121_v49 = vadd.f32 %v2120_v46, %v2119_v41  ;;  %v1455_v50 = vpop.f32.mrb[42].mxu1 }
 0x193   :  { %v4640_v52 = vpop.f32.mrb[43].mxu1 }
 0x194   :  { %v5576_v53 = vpop.f32.mrb[44].mxu0 }
 0x195   :  { %6137 = vst [vmem:[#allocation25_spill] sm:$0xff] %v5576_v53  ;;  %v2122_v55 = vsel %vm2078_vm3, %v5576_v53, 0.0  ;;  %v4645_v56 = vpop.f32.mrb[45].mxu0 }
 0x196   :  { %v2123_v58 = vadd.f32 %v2122_v55, %v2121_v49  ;;  %v1517_v59 = vpop.f32.mrb[46].mxu0 }
 0x197   :  { %v4646_v60 = vpop.f32.mrb[47].mxu0 }
 0x198   :  { %v5580_v62 = vpop.f32.mrb[44].mxu1 }
 0x199   :  { %6138 = vst [vmem:[#allocation26_spill] sm:$0xff] %v5580_v62  ;;  %v2124_v0 = vsel %vm2078_vm3, %v5580_v62, 0.0  ;;  %v4651_v1 = vpop.f32.mrb[45].mxu1 }
 0x19a   :  { %v2125_v2 = vadd.f32 %v2124_v0, %v2123_v58  ;;  %v1579_v3 = vpop.f32.mrb[46].mxu1 }
 0x19b   :  { %v4652_v10 = vpop.f32.mrb[47].mxu1 }
 0x19c   :  { %v5584_v11 = vpop.f32.mrb[48].mxu0 }
 0x19d   :  { %6139 = vst [vmem:[#allocation27_spill] sm:$0xff] %v5584_v11  ;;  %v2126_v13 = vsel %vm2078_vm3, %v5584_v11, 0.0  ;;  %v4657_v14 = vpop.f32.mrb[49].mxu0 }
 0x19e   :  { %v2127_v17 = vadd.f32 %v2126_v13, %v2125_v2  ;;  %v1641_v21 = vpop.f32.mrb[50].mxu0 }
 0x19f   :  { %v4658_v22 = vpop.f32.mrb[51].mxu0 }
 0x1a0   :  { %v5588_v23 = vpop.f32.mrb[48].mxu1 }
 0x1a1   :  { %6140 = vst [vmem:[#allocation28_spill] sm:$0xff] %v5588_v23  ;;  %v2128_v24 = vsel %vm2078_vm3, %v5588_v23, 0.0  ;;  %v4663_v26 = vpop.f32.mrb[49].mxu1 }
 0x1a2   :  { %v2129_v29 = vadd.f32 %v2128_v24, %v2127_v17  ;;  %v1703_v30 = vpop.f32.mrb[50].mxu1 }
 0x1a3   :  { %v4664_v31 = vpop.f32.mrb[51].mxu1 }
 0x1a4   :  { %v5592_v34 = vpop.f32.mrb[52].mxu0 }
 0x1a5   :  { %6141 = vst [vmem:[#allocation29_spill] sm:$0xff] %v5592_v34  ;;  %v2130_v35 = vsel %vm2078_vm3, %v5592_v34, 0.0  ;;  %v4669_v37 = vpop.f32.mrb[53].mxu0 }
 0x1a6   :  { %v2131_v38 = vadd.f32 %v2130_v35, %v2129_v29  ;;  %v1765_v41 = vpop.f32.mrb[54].mxu0 }
 0x1a7   :  { %v4670_v42 = vpop.f32.mrb[55].mxu0 }
 0x1a8   :  { %v5596_v43 = vpop.f32.mrb[52].mxu1 }
 0x1a9   :  { %6142 = vst [vmem:[#allocation30_spill] sm:$0xff] %v5596_v43  ;;  %v2132_v46 = vsel %vm2078_vm3, %v5596_v43, 0.0  ;;  %v4675_v48 = vpop.f32.mrb[53].mxu1 }
 0x1aa   :  { %v2133_v49 = vadd.f32 %v2132_v46, %v2131_v38  ;;  %v1827_v50 = vpop.f32.mrb[54].mxu1  ;;  %v5620_v48 = vld [vmem:[%s6045_s3] sm:$0xf]  ;;  %s5065_s3 = smov [#allocation3]  }
 0x1ab   :  { %v4676_v52 = vpop.f32.mrb[55].mxu1  ;;  %4721 = vmatpush3.msk.msra.mxu1 %vm112_vm0, %v5620_v48  ;;  %4725 = vmatprep.subr.msk.mxu0 %vm112_vm0, %v5620_v48  ;;  %s4097_s26 = sshll.u32 %s5065_s3, 4  ;;  %s4098_s26 = int_to_ptr.vmem [resolvable:$true] %s4097_s26 }
 0x1ac   :  { %v5600_v55 = vpop.f32.mrb[56].mxu0  ;;  %s5038_s27 = scalar_lea.vmem %s4098_s26, 128  ;;  %p5043_p1 = scmp.lt.s32.totalorder %s4098_s26, %s4098_s26 }
 0x1ad   :  { %6143 = vst [vmem:[#allocation31_spill] sm:$0xff] %v5600_v55  ;;  %v2134_v56 = vsel %vm2078_vm3, %v5600_v55, 0.0  ;;  %v4681_v58 = vpop.f32.mrb[57].mxu0  ;;  %p5039_p0 = scmp.ne.s32.totalorder %s4098_s26, %s5038_s27  ;;  %p5044_p2 = scmp.lt.s32.totalorder %s5038_s27, %s5038_s27 }
 0x1ae   :  { %v2135_v59 = vadd.f32 %v2134_v56, %v2133_v49  ;;  %v1889_v60 = vpop.f32.mrb[58].mxu0 }
 0x1af   :  { %v4682_v0 = vpop.f32.mrb[59].mxu0  ;;  %p5045_p3 = por %p5044_p2, %p5043_p1 }
 0x1b0   :  { %v5604_v1 = vpop.f32.mrb[56].mxu1 }
 0x1b1   :  { %6144 = vst [vmem:[#allocation32_spill] sm:$0xff] %v5604_v1  ;;  %v2136_v2 = vsel %vm2078_vm3, %v5604_v1, 0.0  ;;  %v4687_v3 = vpop.f32.mrb[57].mxu1  ;;  %p5046_p4 = pnand %p5045_p3, %p5039_p0 }
 0x1b2   :  { %v2137_v10 = vadd.f32 %v2136_v2, %v2135_v59  ;;  %v1951_v13 = vpop.f32.mrb[58].mxu1 }
 0x1b3   :  { %v4688_v14 = vpop.f32.mrb[59].mxu1 }
 0x1b4   :  { %v5608_v17 = vpop.f32.mrb[60].mxu0 }
 0x1b5   :  { %6145 = vst [vmem:[#allocation33_spill] sm:$0xff] %v5608_v17  ;;  %v2138_v21 = vsel %vm2078_vm3, %v5608_v17, 0.0  ;;  %v4693_v22 = vpop.f32.mrb[61].mxu0 }
 0x1b6   :  { %v2139_v24 = vadd.f32 %v2138_v21, %v2137_v10  ;;  %v2013_v26 = vpop.f32.mrb[62].mxu0 }
 0x1b7   :  { %v4694_v29 = vpop.f32.mrb[63].mxu0 }
 0x1b8   :  { %v5612_v30 = vpop.f32.mrb[60].mxu1 }
 0x1b9   :  { %v2140_v31 = vsel %vm2078_vm3, %v5612_v30, 0.0  ;;  %v4699_v35 = vpop.f32.mrb[61].mxu1 }
 0x1ba   :  { %v2141_v37 = vadd.f32 %v2140_v31, %v2139_v24  ;;  %v2075_v38 = vpop.f32.mrb[62].mxu1 }
 0x1bb   :  { %v4700_v41 = vpop.f32.mrb[63].mxu1 }
 0x1bc   :  { %v2143_v42 = vmul.f32 0.25, %v2141_v37 }
 0x1be   :  { %v2144_v46 = vmul.f32 %v2143_v42, %v2143_v42 }
 0x1c0   :  { %4718 = vmatmul.mubr.msk.f32.vlgmr.msra.gmra.mrb[64].mxu0 %vm2078_vm3, %v2144_v46 }
 0x1c1   :  { %4726 = vmatpush3.msk.msra.mxu0 %vm112_vm0, %v5620_v48 }
 0x1c2   :  { %4933 = vmatprep.subr.bf16.mxu0 %v6047_v5 }
 0x293   :  { %v2214_v49 = vpop.f32.mrb[64].mxu0 }
 0x294   :  { %5012 = vrsqrt.f32 %v2214_v49  ;;  %v4719_v50 = vpop.f32.mrb[65].mxu0  ;;  %vm2221_vm4 = vcmp.eq.f32.partialorder %v2214_v49, inf  ;;  %v2224_v58 = vand.u32 2147483648, %v2214_v49  ;;  %vm2223_vm5 = vcmp.eq.f32.partialorder %v2214_v49, 0.0 }
 0x295   :  { %v2218_v0 = vadd.f32 1.0, %v2214_v49 }
 0x29e   :  { %v5013_v52 = vpop.eup %5012 }
 0x29f   :  { %v2220_v56 = vmul.f32 %v5013_v52, %v2214_v49 }
 0x2a1   :  { %v2222_v59 = vsel %vm2221_vm4, %v2214_v49, %v2220_v56 }
 0x2a2   :  { %v2225_v60 = vsel %vm2223_vm5, %v2224_v58, %v2222_v59 }
 0x2a3   :  { %v2226_v2 = vadd.f32 1e-08, %v2225_v60 }
 0x2a5   :  { %v2227_v3 = vmul.f32 %v2226_v2, %v2218_v0 }
 0x2a7   :  { %5014 = vrcp.f32 %v2227_v3 }
 0x2b1   :  { %v5015_v10 = vpop.eup %5014 }
 0x2b2   :  { %v2229_v13 = vmul.f32 %v5015_v10, %v2214_v49 }
 0x2b4   :  { %4723 = vmatmul.mubr.msk.f32.vlgmr.msra.gmra.mrb[64].mxu1 %vm2230_vm6, %v2229_v13 }
 0x2b5   :  { %4385 = vmatprep.mubr.msk.f32.mxu1 %vm2078_vm3, %v5620_v48 }
 0x387   :  { %v2303_v14 = vpop.f32.mrb[64].mxu1 }
 0x388   :  { %v2307_v21 = vmul.f32 %v2303_v14, %v2143_v42  ;;  %v4724_v22 = vpop.f32.mrb[65].mxu1 }
 0x38a   :  { %v2308_v24 = vmul.f32 %v2307_v21, %v5487_v16  ;;  %v2309_v26 = vmul.f32 %v2307_v21, %v5490_v20  ;;  %v2310_v29 = vmul.f32 %v2307_v21, %v5496_v27  ;;  %v2311_v31 = vmul.f32 %v2307_v21, %v5500_v33 }
 0x38b   :  { %v2312_v35 = vmul.f32 %v2307_v21, %v5504_v39  ;;  %v2313_v37 = vmul.f32 %v2307_v21, %v5508_v45  ;;  %v2314_v38 = vmul.f32 %v2307_v21, %v5512_v51  ;;  %v2315_v41 = vmul.f32 %v2307_v21, %v5516_v57 }
 0x38c   :  { %v2316_v46 = vmul.f32 %v2307_v21, %v5520_v63  ;;  %v2317_v42 = vmul.f32 %v2307_v21, %v5524_v7  ;;  %v2318_v49 = vmul.f32 %v2307_v21, %v5528_v18  ;;  %v2319_v50 = vmul.f32 %v2307_v21, %v5532_v25 }
 0x38d   :  { %v2320_v52 = vmul.f32 %v2307_v21, %v5536_v32  ;;  %v2321_v56 = vmul.f32 %v2307_v21, %v5540_v40  ;;  %v2322_v58 = vmul.f32 %v2307_v21, %v5544_v47  ;;  %v2323_v59 = vmul.f32 %v2307_v21, %v5548_v54 }
 0x38e   :  { %v2324_v60 = vmul.f32 %v2307_v21, %v5552_v61  ;;  %v2325_v0 = vmul.f32 %v2307_v21, %v5556_v6  ;;  %v2326_v2 = vmul.f32 %v2307_v21, %v5560_v19  ;;  %v2327_v3 = vmul.f32 %v2307_v21, %v5564_v28 }
 0x38f   :  { %v2328_v10 = vmul.f32 %v2307_v21, %v5568_v36  ;;  %v2329_v13 = vmul.f32 %v2307_v21, %v5572_v44  ;;  %v2330_v14 = vmul.f32 %v2307_v21, %v5576_v53  ;;  %v2331_v22 = vmul.f32 %v2307_v21, %v5580_v62 }
 0x390   :  { %v2332_v5 = vmul.f32 %v2307_v21, %v5584_v11  ;;  %v2333_v9 = vmul.f32 %v2307_v21, %v5588_v23  ;;  %v2334_v61 = vmul.f32 %v2307_v21, %v5592_v34  ;;  %v2335_v6 = vmul.f32 %v2307_v21, %v5596_v43 }
 0x391   :  { %v2336_v19 = vmul.f32 %v2307_v21, %v5600_v55  ;;  %v2337_v28 = vmul.f32 %v2307_v21, %v5604_v1  ;;  %v2338_v36 = vmul.f32 %v2307_v21, %v5608_v17  ;;  %v2339_v44 = vmul.f32 %v2307_v21, %v5612_v30 }
 0x392   :  { %v4888_v47 = vpack.c.bf16 %v2309_v26, %v2308_v24  ;;  %v4894_v53 = vpack.c.bf16 %v2311_v31, %v2310_v29  ;;  %v4900_v54 = vpack.c.bf16 %v2313_v37, %v2312_v35  ;;  %v4906_v62 = vpack.c.bf16 %v2315_v41, %v2314_v38 }
 0x393   :  { %v4912_v32 = vpack.c.bf16 %v2317_v42, %v2316_v46  ;;  %v4918_v11 = vpack.c.bf16 %v2319_v50, %v2318_v49  ;;  %v4924_v40 = vpack.c.bf16 %v2321_v56, %v2320_v52  ;;  %v4930_v23 = vpack.c.bf16 %v2323_v59, %v2322_v58 }
 0x394   :  { %v4885_v55 = vpack.c.bf16 %v2325_v0, %v2324_v60  ;;  %v4891_v1 = vpack.c.bf16 %v2327_v3, %v2326_v2  ;;  %v4897_v43 = vpack.c.bf16 %v2329_v13, %v2328_v10  ;;  %v4903_v17 = vpack.c.bf16 %v2331_v22, %v2330_v14 }
 0x395   :  { %v4909_v18 = vpack.c.bf16 %v2333_v9, %v2332_v5  ;;  %v4915_v21 = vpack.c.bf16 %v2335_v6, %v2334_v61  ;;  %v4921_v24 = vpack.c.bf16 %v2337_v28, %v2336_v19  ;;  %v4927_v26 = vpack.c.bf16 %v2339_v44, %v2338_v36 }
 0x396   :  { %4887 = vmatprep.subr.msk.bf16.mxu1 %vm5666_vm7, %v4885_v55  ;;  %v6148_v9 = vmov 0.0  }
 0x397   :  { %4890 = vmatpush3.bf16.xpose.msk.msra.mxu1 %vm5666_vm7, %v4888_v47 }
 0x398   :  { %4893 = vmatprep.subr.msk.bf16.mxu1 %vm5666_vm7, %v4891_v1 }
 0x39f   :  { %4896 = vmatpush3.bf16.xpose.msk.msra.mxu1 %vm5666_vm7, %v4894_v53 }
 0x3a0   :  { %4899 = vmatprep.subr.msk.bf16.mxu1 %vm5666_vm7, %v4897_v43 }
 0x3a7   :  { %4902 = vmatpush3.bf16.xpose.msk.msra.mxu1 %vm5666_vm7, %v4900_v54 }
 0x3a8   :  { %4905 = vmatprep.subr.msk.bf16.mxu1 %vm5666_vm7, %v4903_v17 }
 0x3af   :  { %4908 = vmatpush3.bf16.xpose.msk.msra.mxu1 %vm5666_vm7, %v4906_v62 }
 0x3b0   :  { %4911 = vmatprep.subr.msk.bf16.mxu1 %vm5666_vm7, %v4909_v18 }
 0x3b7   :  { %4914 = vmatpush3.bf16.xpose.msk.msra.mxu1 %vm5666_vm7, %v4912_v32 }
 0x3b8   :  { %4917 = vmatprep.subr.msk.bf16.mxu1 %vm5666_vm7, %v4915_v21 }
 0x3bf   :  { %4920 = vmatpush3.bf16.xpose.msk.msra.mxu1 %vm5666_vm7, %v4918_v11 }
 0x3c0   :  { %4923 = vmatprep.subr.msk.bf16.mxu1 %vm5666_vm7, %v4921_v24 }
 0x3c7   :  { %4926 = vmatpush3.bf16.xpose.msk.msra.mxu1 %vm5666_vm7, %v4924_v40 }
 0x3c8   :  { %4929 = vmatprep.subr.msk.bf16.mxu1 %vm5666_vm7, %v4927_v26 }
 0x3cf   :  { %4932 = vmatpush3.bf16.xpose.msk.msra.mxu1 %vm5666_vm7, %v4930_v23 }
 0x3d0   :  { %5005 = vmatprep.subr.msk.mxu1 %vm112_vm0, %v5620_v48 }
 0x3d6   :  { %4386 = vmatmul.mubr.msk.f32.vlgmr.msra.gmra.mrb[66].mxu1 %vm2078_vm3, %v5620_v48 }
 0x3d7   :  { %5006 = vmatpush3.msk.msra.mxu1 %vm112_vm0, %v5620_v48 }
 0x3d8   :  { %4794 = vmatprep.subr.mxu1 %v6148_v9 }
 0x4a9   :  { %v5709_v5 = vpop.f32.mrb[66].mxu1 }
 0x4aa   :  { %v2514_v18 = vsel %vm112_vm0, %v5709_v5, -inf  ;;  %v5713_v32 = vpop.f32.mrb[67].mxu1 }
 0x4ab   :  { %v2515_v40 = vrot.slane %v2514_v18, 4  ;;  %v2521_v54 = vsel %vm112_vm0, %v5713_v32, -inf }
 0x4ac   :  { %v2522_v61 = vrot.slane %v2521_v54, 4 }
 0x4ad   :  { %v2516_v6 = vmax.f32 %v2514_v18, %v2515_v40  ;;  %v6149_v18 = vmov 0.0|0.0  }
 0x4ae   :  { %v2523_v19 = vmax.f32 %v2521_v54, %v2522_v61 }
 0x4af   :  { %v2517_v28 = vrot.slane %v2516_v6, 2 }
 0x4b0   :  { %v2524_v36 = vrot.slane %v2523_v19, 2 }
 0x4b1   :  { %v2518_v44 = vmax.f32 %v2516_v6, %v2517_v28 }
 0x4b2   :  { %v2525_v53 = vmax.f32 %v2523_v19, %v2524_v36 }
 0x4b3   :  { %v2519_v62 = vrot.slane %v2518_v44, 1 }
 0x4b4   :  { %v2526_v11 = vrot.slane %v2525_v53, 1 }
 0x4b5   :  { %v2520_v23 = vmax.f32 %v2518_v44, %v2519_v62 }
 0x4b6   :  { %v2527_v43 = vmax.f32 %v2525_v53, %v2526_v11 }
 0x4b7   :  { %v2528_v55 = vsub.f32 %v5709_v5, %v2520_v23 }
 0x4b8   :  { %v2529_v1 = vsub.f32 %v5713_v32, %v2527_v43 }
 0x4b9   :  { %v2530_v17 = vmul.f32 1.442695, %v2528_v55 }
 0x4ba   :  { %v2532_v29 = vmul.f32 1.442695, %v2529_v1 }
 0x4bb   :  { %5016 = vpow2.f32 %v2530_v17 }
 0x4bc   :  { %5018 = vpow2.f32 %v2532_v29 }
 0x4c5   :  { %v5017_v31 = vpop.eup %5016 }
 0x4c6   :  { %v5019_v35 = vpop.eup %5018  ;;  %v2534_v37 = vsel %vm112_vm0, %v5017_v31, 0.0 }
 0x4c7   :  { %v2535_v38 = vrot.slane %v2534_v37, 4  ;;  %v2541_v41 = vsel %vm112_vm0, %v5019_v35, 0.0 }
 0x4c8   :  { %v2542_v46 = vrot.slane %v2541_v41, 4 }
 0x4c9   :  { %v2536_v42 = vadd.f32 %v2535_v38, %v2534_v37 }
 0x4ca   :  { %v2543_v49 = vadd.f32 %v2542_v46, %v2541_v41 }
 0x4cb   :  { %v2537_v50 = vrot.slane %v2536_v42, 2 }
 0x4cc   :  { %v2544_v52 = vrot.slane %v2543_v49, 2 }
 0x4cd   :  { %v2538_v56 = vadd.f32 %v2537_v50, %v2536_v42 }
 0x4ce   :  { %v2545_v58 = vadd.f32 %v2544_v52, %v2543_v49 }
 0x4cf   :  { %v2539_v59 = vrot.slane %v2538_v56, 1 }
 0x4d0   :  { %v2546_v60 = vrot.slane %v2545_v58, 1 }
 0x4d1   :  { %v2540_v0 = vadd.f32 %v2539_v59, %v2538_v56 }
 0x4d2   :  { %v2547_v2 = vadd.f32 %v2546_v60, %v2545_v58 }
 0x4d3   :  { %5020 = vrcp.f32 %v2540_v0 }
 0x4d4   :  { %5022 = vrcp.f32 %v2547_v2 }
 0x4dd   :  { %v5021_v3 = vpop.eup %5020 }
 0x4de   :  { %v5023_v10 = vpop.eup %5022  ;;  %v2550_v13 = vmul.f32 %v5021_v3, %v5017_v31 }
 0x4df   :  { %v2551_v14 = vmul.f32 %v5023_v10, %v5019_v35 }
 0x4e0   :  { %2552 = vxpose.xlu0.b32.start.end [1/1] (short) %v2550_v13, 128 }
 0x4e1   :  { %2584 = vxpose.xlu1.b32.start.end [1/1] (short) %v2551_v14, 128 }
 0x560   :  { %v2568_v22 = vpop.trf.xlu0 }
 0x561   :  { %4727 = vmatprep.mubr.msk.f32.mxu0 %vm2230_vm6, %v2568_v22  ;;  %v2600_v21 = vpop.trf.xlu1 }
 0x564   :  { %v2569_v24 = vpop.trf.xlu0 }
 0x565   :  { %4728 = vmatmul.mubr.msk.f32.vlgmr.msra.gmra.mrb[66].mxu0 %vm2230_vm6, %v2569_v24  ;;  %v2601_v26 = vpop.trf.xlu1 }
 0x566   :  { %4935 = vmatpush3.bf16.msra.mxu0 %v5454_v4 }
 0x567   :  { %4936 = vmatprep.subr.bf16.mxu0 %v6149_v18 }
 0x568   :  { %v2570_v40 = vpop.trf.xlu0 }
 0x569   :  { %4730 = vmatprep.mubr.msk.f32.mxu0 %vm2230_vm6, %v2570_v40  ;;  %v2602_v54 = vpop.trf.xlu1 }
 0x56a   :  { %4938 = vmatpush3.bf16.msra.mxu0 %v5465_v8 }
 0x56b   :  { %4939 = vmatprep.subr.bf16.mxu0 %v6149_v18 }
 0x56c   :  { %v2571_v61 = vpop.trf.xlu0 }
 0x56d   :  { %4731 = vmatmul.mubr.msk.f32.gmra.mrb[68].mxu0 %vm2230_vm6, %v2571_v61  ;;  %v2603_v6 = vpop.trf.xlu1 }
 0x56e   :  { %4941 = vmatpush3.bf16.msra.mxu0 %v5475_v12 }
 0x56f   :  { %4942 = vmatprep.subr.bf16.mxu0 %v6149_v18 }
 0x570   :  { %v2572_v19 = vpop.trf.xlu0 }
 0x571   :  { %4733 = vmatprep.mubr.msk.f32.mxu0 %vm2230_vm6, %v2572_v19  ;;  %v2604_v28 = vpop.trf.xlu1 }
 0x572   :  { %4944 = vmatpush3.bf16.msra.mxu0 %v5485_v15 }
 0x573   :  { %4799 = vmatprep.subr.msk.mxu0 %vm112_vm0, %v5620_v48 }
 0x574   :  { %v2573_v36 = vpop.trf.xlu0 }
 0x575   :  { %4734 = vmatmul.mubr.msk.f32.gmra.mrb[70].mxu0 %vm2230_vm6, %v2573_v36  ;;  %v2605_v44 = vpop.trf.xlu1 }
 0x578   :  { %v2574_v53 = vpop.trf.xlu0 }
 0x579   :  { %4736 = vmatprep.mubr.msk.f32.mxu0 %vm2230_vm6, %v2574_v53  ;;  %v2606_v62 = vpop.trf.xlu1 }
 0x57c   :  { %v2575_v11 = vpop.trf.xlu0 }
 0x57d   :  { %4737 = vmatmul.mubr.msk.f32.gmra.mrb[72].mxu0 %vm2230_vm6, %v2575_v11  ;;  %v2607_v23 = vpop.trf.xlu1 }
 0x580   :  { %v2576_v43 = vpop.trf.xlu0 }
 0x581   :  { %4739 = vmatprep.mubr.msk.f32.mxu0 %vm2230_vm6, %v2576_v43  ;;  %v2608_v55 = vpop.trf.xlu1 }
 0x584   :  { %v2577_v1 = vpop.trf.xlu0 }
 0x585   :  { %4740 = vmatmul.mubr.msk.f32.gmra.mrb[74].mxu0 %vm2230_vm6, %v2577_v1  ;;  %v2609_v17 = vpop.trf.xlu1 }
 0x588   :  { %v2578_v29 = vpop.trf.xlu0 }
 0x589   :  { %4742 = vmatprep.mubr.msk.f32.mxu0 %vm2230_vm6, %v2578_v29  ;;  %v2610_v31 = vpop.trf.xlu1 }
 0x58c   :  { %v2579_v35 = vpop.trf.xlu0 }
 0x58d   :  { %4743 = vmatmul.mubr.msk.f32.gmra.mrb[76].mxu0 %vm2230_vm6, %v2579_v35  ;;  %v2611_v37 = vpop.trf.xlu1 }
 0x590   :  { %v2580_v38 = vpop.trf.xlu0 }
 0x591   :  { %4745 = vmatprep.mubr.msk.f32.mxu0 %vm2230_vm6, %v2580_v38  ;;  %v2612_v41 = vpop.trf.xlu1 }
 0x594   :  { %v2581_v46 = vpop.trf.xlu0 }
 0x595   :  { %4746 = vmatmul.mubr.msk.f32.gmra.mrb[78].mxu0 %vm2230_vm6, %v2581_v46  ;;  %v2613_v42 = vpop.trf.xlu1 }
 0x598   :  { %v2582_v49 = vpop.trf.xlu0 }
 0x599   :  { %4748 = vmatprep.mubr.msk.f32.mxu0 %vm2230_vm6, %v2582_v49  ;;  %v2614_v50 = vpop.trf.xlu1 }
 0x59a   :  { %4772 = vmatprep.mubr.msk.f32.mxu1 %vm2230_vm6, %v2614_v50 }
 0x59c   :  { %v2583_v52 = vpop.trf.xlu0 }
 0x59d   :  { %4749 = vmatmul.mubr.msk.f32.gmra.mrb[80].mxu0 %vm2230_vm6, %v2583_v52  ;;  %v2615_v56 = vpop.trf.xlu1 }
 0x59e   :  { %4751 = vmatprep.mubr.msk.f32.mxu0 %vm2230_vm6, %v2600_v21  ;;  %4773 = vmatmul.mubr.msk.f32.vlgmr.msra.gmra.mrb[68].mxu1 %vm2230_vm6, %v2615_v56 }
 0x59f   :  { %4795 = vmatpush3.msk.msra.mxu1 %vm112_vm0, %v5620_v48  ;;  %4796 = vmatprep.mubr.msk.f32.mxu1 %vm5063_vm1, %v6148_v9 }
 0x5a1   :  { %4752 = vmatmul.mubr.msk.f32.gmra.mrb[82].mxu0 %vm2230_vm6, %v2601_v26 }
 0x5a2   :  { %4754 = vmatprep.mubr.msk.f32.mxu0 %vm2230_vm6, %v2602_v54 }
 0x5a5   :  { %4755 = vmatmul.mubr.msk.f32.gmra.mrb[84].mxu0 %vm2230_vm6, %v2603_v6 }
 0x5a6   :  { %4757 = vmatprep.mubr.msk.f32.mxu0 %vm2230_vm6, %v2604_v28 }
 0x5a9   :  { %4758 = vmatmul.mubr.msk.f32.gmra.mrb[86].mxu0 %vm2230_vm6, %v2605_v44 }
 0x5aa   :  { %4760 = vmatprep.mubr.msk.f32.mxu0 %vm2230_vm6, %v2606_v62 }
 0x5ad   :  { %4761 = vmatmul.mubr.msk.f32.gmra.mrb[88].mxu0 %vm2230_vm6, %v2607_v23 }
 0x5ae   :  { %4763 = vmatprep.mubr.msk.f32.mxu0 %vm2230_vm6, %v2608_v55 }
 0x5b1   :  { %4764 = vmatmul.mubr.msk.f32.gmra.mrb[90].mxu0 %vm2230_vm6, %v2609_v17 }
 0x5b2   :  { %4766 = vmatprep.mubr.msk.f32.mxu0 %vm2230_vm6, %v2610_v31 }
 0x5b5   :  { %4767 = vmatmul.mubr.msk.f32.gmra.mrb[92].mxu0 %vm2230_vm6, %v2611_v37 }
 0x5b6   :  { %4769 = vmatprep.mubr.msk.f32.mxu0 %vm2230_vm6, %v2612_v41 }
 0x5b9   :  { %4770 = vmatmul.mubr.msk.f32.gmra.mrb[94].mxu0 %vm2230_vm6, %v2613_v42 }
 0x5ba   :  { %4791 = vmatprep.mubr.msk.f32.mxu0 %vm5063_vm1, %v6148_v9 }
 0x638   :  { %v4729_v58 = vpop.f32.mrb[66].mxu0 }
 0x639   :  { %v2938_v59 = vmul.f32 %v4729_v58, %v5490_v20  ;;  %v2778_v60 = vpop.f32.mrb[67].mxu0 }
 0x63a   :  { %v2937_v0 = vmul.f32 %v2778_v60, %v5487_v16 }
 0x63b   :  { %v2970_v2 = vsel %vm2078_vm3, %v2938_v59, 0.0  ;;  %v6150_v59 = vld [vmem:[#allocation13_spill] sm:$0xff] }
 0x63c   :  { %v2969_v3 = vsel %vm2078_vm3, %v2937_v0, 0.0 }
 0x63d   :  { %v2971_v10 = vadd.f32 %v2970_v2, %v2969_v3 }
 0x640   :  { %v4732_v13 = vpop.f32.mrb[68].mxu0 }
 0x641   :  { %v2940_v14 = vmul.f32 %v4732_v13, %v5500_v33  ;;  %v2788_v22 = vpop.f32.mrb[69].mxu0 }
 0x642   :  { %v2939_v21 = vmul.f32 %v2788_v22, %v5496_v27 }
 0x643   :  { %v2974_v40 = vsel %vm2078_vm3, %v2940_v14, 0.0  ;;  %v6151_v14 = vld [vmem:[#allocation16_spill] sm:$0xff] }
 0x644   :  { %v2972_v24 = vsel %vm2078_vm3, %v2939_v21, 0.0 }
 0x645   :  { %v2973_v26 = vadd.f32 %v2972_v24, %v2971_v10  ;;  %v6152_v24 = vld [vmem:[#allocation15_spill] sm:$0xff] }
 0x647   :  { %v2975_v54 = vadd.f32 %v2974_v40, %v2973_v26 }
 0x648   :  { %v4735_v61 = vpop.f32.mrb[70].mxu0 }
 0x649   :  { %v2942_v6 = vmul.f32 %v4735_v61, %v5508_v45  ;;  %v2798_v19 = vpop.f32.mrb[71].mxu0 }
 0x64a   :  { %v2941_v28 = vmul.f32 %v2798_v19, %v5504_v39 }
 0x64b   :  { %v2978_v53 = vsel %vm2078_vm3, %v2942_v6, 0.0 }
 0x64c   :  { %v2976_v36 = vsel %vm2078_vm3, %v2941_v28, 0.0  ;;  %v6153_v28 = vld [vmem:[#allocation18_spill] sm:$0xff] }
 0x64d   :  { %v2977_v44 = vadd.f32 %v2976_v36, %v2975_v54 }
 0x64f   :  { %v2979_v62 = vadd.f32 %v2978_v53, %v2977_v44 }
 0x650   :  { %v4738_v11 = vpop.f32.mrb[72].mxu0 }
 0x651   :  { %v2944_v23 = vmul.f32 %v4738_v11, %v5516_v57  ;;  %v2808_v43 = vpop.f32.mrb[73].mxu0 }
 0x652   :  { %v2943_v55 = vmul.f32 %v2808_v43, %v5512_v51 }
 0x653   :  { %v2982_v29 = vsel %vm2078_vm3, %v2944_v23, 0.0 }
 0x654   :  { %v2980_v1 = vsel %vm2078_vm3, %v2943_v55, 0.0  ;;  %v6155_v55 = vld [vmem:[#allocation33_spill] sm:$0xff] }
 0x655   :  { %v2981_v17 = vadd.f32 %v2980_v1, %v2979_v62  ;;  %v6154_v62 = vld [vmem:[#allocation17_spill] sm:$0xff] }
 0x657   :  { %v2983_v31 = vadd.f32 %v2982_v29, %v2981_v17 }
 0x658   :  { %v4741_v35 = vpop.f32.mrb[74].mxu0 }
 0x659   :  { %v2946_v37 = vmul.f32 %v4741_v35, %v5524_v7  ;;  %v2818_v38 = vpop.f32.mrb[75].mxu0  ;;  %v6156_v35 = vld [vmem:[#allocation20_spill] sm:$0xff] }
 0x65a   :  { %v2945_v41 = vmul.f32 %v2818_v38, %v5520_v63 }
 0x65b   :  { %v2986_v49 = vsel %vm2078_vm3, %v2946_v37, 0.0 }
 0x65c   :  { %v2984_v46 = vsel %vm2078_vm3, %v2945_v41, 0.0 }
 0x65d   :  { %v2985_v42 = vadd.f32 %v2984_v46, %v2983_v31  ;;  %v6157_v46 = vld [vmem:[#allocation19_spill] sm:$0xff] }
 0x65f   :  { %v2987_v50 = vadd.f32 %v2986_v49, %v2985_v42 }
 0x660   :  { %v4744_v52 = vpop.f32.mrb[76].mxu0 }
 0x661   :  { %v2948_v56 = vmul.f32 %v4744_v52, %v5532_v25  ;;  %v2828_v58 = vpop.f32.mrb[77].mxu0 }
 0x662   :  { %v2947_v60 = vmul.f32 %v2828_v58, %v6150_v59  ;;  %v6158_v58 = vld [vmem:[#allocation22_spill] sm:$0xff] }
 0x663   :  { %v2990_v3 = vsel %vm2078_vm3, %v2948_v56, 0.0 }
 0x664   :  { %v2988_v0 = vsel %vm2078_vm3, %v2947_v60, 0.0 }
 0x665   :  { %v2989_v2 = vadd.f32 %v2988_v0, %v2987_v50 }
 0x667   :  { %v2991_v10 = vadd.f32 %v2990_v3, %v2989_v2  ;;  %v6159_v3 = vld [vmem:[#allocation21_spill] sm:$0xff] }
 0x668   :  { %v4747_v13 = vpop.f32.mrb[78].mxu0 }
 0x669   :  { %v2950_v22 = vmul.f32 %v4747_v13, %v6151_v14  ;;  %v2838_v21 = vpop.f32.mrb[79].mxu0 }
 0x66a   :  { %v2949_v26 = vmul.f32 %v2838_v21, %v6152_v24 }
 0x66b   :  { %v2994_v61 = vsel %vm2078_vm3, %v2950_v22, 0.0 }
 0x66c   :  { %v2992_v40 = vsel %vm2078_vm3, %v2949_v26, 0.0 }
 0x66d   :  { %v2993_v54 = vadd.f32 %v2992_v40, %v2991_v10  ;;  %v6160_v40 = vld [vmem:[#allocation24_spill] sm:$0xff] }
 0x66f   :  { %v2995_v6 = vadd.f32 %v2994_v61, %v2993_v54 }
 0x670   :  { %v4750_v19 = vpop.f32.mrb[80].mxu0 }
 0x671   :  { %v2952_v36 = vmul.f32 %v4750_v19, %v6153_v28  ;;  %v2848_v44 = vpop.f32.mrb[81].mxu0  ;;  %v4774_v53 = vpop.f32.mrb[68].mxu1  ;;  %v6161_v19 = vld [vmem:[#allocation23_spill] sm:$0xff] }
 0x672   :  { %v2951_v11 = vmul.f32 %v2848_v44, %v6154_v62  ;;  %v5801_v23 = vmul.f32 %v4774_v53, %v5612_v30  ;;  %v2928_v43 = vpop.f32.mrb[69].mxu1 }
 0x673   :  { %v2967_v1 = vmul.f32 %v2928_v43, %v6155_v55  ;;  %v2998_v41 = vsel %vm2078_vm3, %v2952_v36, 0.0 }
 0x674   :  { %v2996_v17 = vsel %vm2078_vm3, %v2951_v11, 0.0  ;;  %v4753_v29 = vpop.f32.mrb[82].mxu0 }
 0x675   :  { %v2997_v31 = vadd.f32 %v2996_v17, %v2995_v6  ;;  %v2954_v37 = vmul.f32 %v4753_v29, %v6156_v35  ;;  %v2858_v38 = vpop.f32.mrb[83].mxu0  ;;  %v6162_v17 = vld [vmem:[#allocation26_spill] sm:$0xff] }
 0x676   :  { %v2953_v42 = vmul.f32 %v2858_v38, %v6157_v46  ;;  %v6163_v38 = vld [vmem:[#allocation25_spill] sm:$0xff] }
 0x677   :  { %v2999_v49 = vadd.f32 %v2998_v41, %v2997_v31  ;;  %v3002_v2 = vsel %vm2078_vm3, %v2954_v37, 0.0 }
 0x678   :  { %v3000_v50 = vsel %vm2078_vm3, %v2953_v42, 0.0  ;;  %v4756_v52 = vpop.f32.mrb[84].mxu0 }
 0x679   :  { %v3001_v56 = vadd.f32 %v3000_v50, %v2999_v49  ;;  %v2956_v60 = vmul.f32 %v4756_v52, %v6158_v58  ;;  %v2868_v0 = vpop.f32.mrb[85].mxu0 }
 0x67a   :  { %v2955_v10 = vmul.f32 %v2868_v0, %v6159_v3 }
 0x67b   :  { %v3003_v13 = vadd.f32 %v3002_v2, %v3001_v56  ;;  %v3006_v6 = vsel %vm2078_vm3, %v2956_v60, 0.0  ;;  %v6164_v56 = vld [vmem:[#allocation28_spill] sm:$0xff] }
 0x67c   :  { %v3004_v22 = vsel %vm2078_vm3, %v2955_v10, 0.0  ;;  %v4759_v21 = vpop.f32.mrb[86].mxu0  ;;  %v6165_v10 = vld [vmem:[#allocation27_spill] sm:$0xff] }
 0x67d   :  { %v3005_v26 = vadd.f32 %v3004_v22, %v3003_v13  ;;  %v2958_v54 = vmul.f32 %v4759_v21, %v6160_v40  ;;  %v2878_v61 = vpop.f32.mrb[87].mxu0 }
 0x67e   :  { %v2957_v36 = vmul.f32 %v2878_v61, %v6161_v19 }
 0x67f   :  { %v3007_v44 = vadd.f32 %v3006_v6, %v3005_v26  ;;  %v3010_v37 = vsel %vm2078_vm3, %v2958_v54, 0.0  ;;  %v6166_v54 = vld [vmem:[#allocation30_spill] sm:$0xff] }
 0x680   :  { %v3008_v53 = vsel %vm2078_vm3, %v2957_v36, 0.0  ;;  %v4762_v11 = vpop.f32.mrb[88].mxu0 }
 0x681   :  { %v3009_v43 = vadd.f32 %v3008_v53, %v3007_v44  ;;  %v2960_v29 = vmul.f32 %v4762_v11, %v6162_v17  ;;  %v2888_v31 = vpop.f32.mrb[89].mxu0  ;;  %v6167_v53 = vld [vmem:[#allocation29_spill] sm:$0xff] }
 0x682   :  { %v2959_v41 = vmul.f32 %v2888_v31, %v6163_v38 }
 0x683   :  { %v3011_v42 = vadd.f32 %v3010_v37, %v3009_v43  ;;  %v3014_v2 = vsel %vm2078_vm3, %v2960_v29, 0.0  ;;  %v6168_v29 = vld [vmem:[#allocation32_spill] sm:$0xff] }
 0x684   :  { %v3012_v49 = vsel %vm2078_vm3, %v2959_v41, 0.0  ;;  %v4765_v50 = vpop.f32.mrb[90].mxu0 }
 0x685   :  { %v3013_v52 = vadd.f32 %v3012_v49, %v3011_v42  ;;  %v2962_v60 = vmul.f32 %v4765_v50, %v6164_v56  ;;  %v2898_v0 = vpop.f32.mrb[91].mxu0 }
 0x686   :  { %v2961_v13 = vmul.f32 %v2898_v0, %v6165_v10 }
 0x687   :  { %v3015_v22 = vadd.f32 %v3014_v2, %v3013_v52  ;;  %v3018_v44 = vsel %vm2078_vm3, %v2962_v60, 0.0  ;;  %v6169_v52 = vld [vmem:[#allocation31_spill] sm:$0xff] }
 0x688   :  { %v3016_v21 = vsel %vm2078_vm3, %v2961_v13, 0.0  ;;  %v4768_v26 = vpop.f32.mrb[92].mxu0 }
 0x689   :  { %v3017_v61 = vadd.f32 %v3016_v21, %v3015_v22  ;;  %v2964_v6 = vmul.f32 %v4768_v26, %v6166_v54  ;;  %v2908_v36 = vpop.f32.mrb[93].mxu0  ;;  %v3028_v26 = vsel %vm2078_vm3, %v2967_v1, 0.0 }
 0x68a   :  { %v2963_v11 = vmul.f32 %v2908_v36, %v6167_v53  ;;  %v3030_v36 = vsel %vm2078_vm3, %v5801_v23, 0.0 }
 0x68b   :  { %v3019_v43 = vadd.f32 %v3018_v44, %v3017_v61  ;;  %v3022_v50 = vsel %vm2078_vm3, %v2964_v6, 0.0 }
 0x68c   :  { %v3020_v31 = vsel %vm2078_vm3, %v2963_v11, 0.0  ;;  %v4771_v37 = vpop.f32.mrb[94].mxu0 }
 0x68d   :  { %v3021_v41 = vadd.f32 %v3020_v31, %v3019_v43  ;;  %v2966_v42 = vmul.f32 %v4771_v37, %v6168_v29  ;;  %v2918_v49 = vpop.f32.mrb[95].mxu0 }
 0x68e   :  { %v2965_v0 = vmul.f32 %v2918_v49, %v6169_v52 }
 0x68f   :  { %v3023_v2 = vadd.f32 %v3022_v50, %v3021_v41  ;;  %v3026_v60 = vsel %vm2078_vm3, %v2966_v42, 0.0 }
 0x690   :  { %v3024_v13 = vsel %vm2078_vm3, %v2965_v0, 0.0 }
 0x691   :  { %v3025_v22 = vadd.f32 %v3024_v13, %v3023_v2 }
 0x693   :  { %v3027_v21 = vadd.f32 %v3026_v60, %v3025_v22 }
 0x695   :  { %v3029_v61 = vadd.f32 %v3028_v26, %v3027_v21 }
 0x697   :  { %v3031_v44 = vadd.f32 %v3030_v36, %v3029_v61 }
 0x699   :  { %v3033_v11 = vmul.f32 %v3031_v44, %v3031_v44 }
 0x69b   :  { %4792 = vmatmul.mubr.msk.f32.vlgmr.msra.gmra.mrb[96].mxu0 %vm2078_vm3, %v3033_v11 }
 0x69c   :  { %4800 = vmatpush3.msk.msra.mxu0 %vm112_vm0, %v5620_v48 }
 0x69d   :  { %4993 = vmatprep.subr.bf16.mxu0 %v6149_v18 }
 0x76e   :  { %v3103_v6 = vpop.f32.mrb[96].mxu0 }
 0x76f   :  { %5024 = vrsqrt.f32 %v3103_v6  ;;  %v4793_v43 = vpop.f32.mrb[97].mxu0  ;;  %vm3110_vm8 = vcmp.eq.f32.partialorder %v3103_v6, inf  ;;  %v3113_v1 = vand.u32 2147483648, %v3103_v6  ;;  %vm3112_vm9 = vcmp.eq.f32.partialorder %v3103_v6, 0.0 }
 0x770   :  { %v3107_v23 = vadd.f32 1.0, %v3103_v6 }
 0x779   :  { %v5025_v31 = vpop.eup %5024 }
 0x77a   :  { %v3109_v37 = vmul.f32 %v5025_v31, %v3103_v6 }
 0x77c   :  { %v3111_v41 = vsel %vm3110_vm8, %v3103_v6, %v3109_v37 }
 0x77d   :  { %v3114_v42 = vsel %vm3112_vm9, %v3113_v1, %v3111_v41 }
 0x77e   :  { %v3115_v49 = vadd.f32 1e-08, %v3114_v42 }
 0x780   :  { %v3116_v50 = vmul.f32 %v3115_v49, %v3107_v23 }
 0x782   :  { %5026 = vrcp.f32 %v3116_v50 }
 0x78c   :  { %v5027_v0 = vpop.eup %5026 }
 0x78d   :  { %v3118_v2 = vmul.f32 %v5027_v0, %v3103_v6 }
 0x78f   :  { %4797 = vmatmul.mubr.msk.f32.vlgmr.msra.gmra.mrb[70].mxu1 %vm2230_vm6, %v3118_v2 }
 0x790   :  { %4463 = vmatprep.mubr.msk.f32.mxu1 %vm2078_vm3, %v5620_v48 }
 0x862   :  { %v3188_v13 = vpop.f32.mrb[70].mxu1 }
 0x863   :  { %v3192_v22 = vmul.f32 %v3188_v13, %v3031_v44  ;;  %v4798_v60 = vpop.f32.mrb[71].mxu1 }
 0x865   :  { %v3193_v21 = vmul.f32 %v3192_v22, %v5487_v16  ;;  %v3194_v26 = vmul.f32 %v3192_v22, %v5490_v20  ;;  %v3195_v61 = vmul.f32 %v3192_v22, %v5496_v27  ;;  %v3196_v36 = vmul.f32 %v3192_v22, %v5500_v33 }
 0x866   :  { %v3197_v11 = vmul.f32 %v3192_v22, %v5504_v39  ;;  %v3198_v6 = vmul.f32 %v3192_v22, %v5508_v45  ;;  %v3199_v43 = vmul.f32 %v3192_v22, %v5512_v51  ;;  %v3200_v31 = vmul.f32 %v3192_v22, %v5516_v57 }
 0x867   :  { %v3201_v37 = vmul.f32 %v3192_v22, %v5520_v63  ;;  %v3202_v44 = vmul.f32 %v3192_v22, %v5524_v7  ;;  %v3203_v1 = vmul.f32 %v3192_v22, %v6150_v59  ;;  %v3204_v41 = vmul.f32 %v3192_v22, %v5532_v25 }
 0x868   :  { %v3205_v42 = vmul.f32 %v3192_v22, %v6152_v24  ;;  %v3206_v23 = vmul.f32 %v3192_v22, %v6151_v14  ;;  %v3207_v49 = vmul.f32 %v3192_v22, %v6154_v62  ;;  %v3208_v50 = vmul.f32 %v3192_v22, %v6153_v28 }
 0x869   :  { %v3209_v0 = vmul.f32 %v3192_v22, %v6157_v46  ;;  %v3210_v2 = vmul.f32 %v3192_v22, %v6156_v35  ;;  %v3211_v13 = vmul.f32 %v3192_v22, %v6159_v3  ;;  %v3212_v60 = vmul.f32 %v3192_v22, %v6158_v58 }
 0x86a   :  { %v3213_v47 = vmul.f32 %v3192_v22, %v6161_v19  ;;  %v3214_v59 = vmul.f32 %v3192_v22, %v6160_v40  ;;  %v3215_v24 = vmul.f32 %v3192_v22, %v6163_v38  ;;  %v3216_v14 = vmul.f32 %v3192_v22, %v6162_v17 }
 0x86b   :  { %v3217_v62 = vmul.f32 %v3192_v22, %v6165_v10  ;;  %v3218_v28 = vmul.f32 %v3192_v22, %v6164_v56  ;;  %v3219_v46 = vmul.f32 %v3192_v22, %v6167_v53  ;;  %v3220_v35 = vmul.f32 %v3192_v22, %v6166_v54 }
 0x86c   :  { %v3221_v3 = vmul.f32 %v3192_v22, %v6169_v52  ;;  %v3222_v58 = vmul.f32 %v3192_v22, %v6168_v29  ;;  %v3223_v19 = vmul.f32 %v3192_v22, %v6155_v55  ;;  %v3224_v40 = vmul.f32 %v3192_v22, %v5612_v30 }
 0x86d   :  { %v4948_v25 = vpack.c.bf16 %v3194_v26, %v3193_v21  ;;  %v4954_v38 = vpack.c.bf16 %v3196_v36, %v3195_v61  ;;  %v4960_v63 = vpack.c.bf16 %v3198_v6, %v3197_v11  ;;  %v4966_v17 = vpack.c.bf16 %v3200_v31, %v3199_v43 }
 0x86e   :  { %v4972_v7 = vpack.c.bf16 %v3202_v44, %v3201_v37  ;;  %v4978_v10 = vpack.c.bf16 %v3204_v41, %v3203_v1  ;;  %v4984_v51 = vpack.c.bf16 %v3206_v23, %v3205_v42  ;;  %v4990_v56 = vpack.c.bf16 %v3208_v50, %v3207_v49 }
 0x86f   :  { %v4945_v57 = vpack.c.bf16 %v3210_v2, %v3209_v0  ;;  %v4951_v53 = vpack.c.bf16 %v3212_v60, %v3211_v13  ;;  %v4957_v39 = vpack.c.bf16 %v3214_v59, %v3213_v47  ;;  %v4963_v54 = vpack.c.bf16 %v3216_v14, %v3215_v24 }
 0x870   :  { %v4969_v45 = vpack.c.bf16 %v3218_v28, %v3217_v62  ;;  %v4975_v52 = vpack.c.bf16 %v3220_v35, %v3219_v46  ;;  %v4981_v27 = vpack.c.bf16 %v3222_v58, %v3221_v3  ;;  %v4987_v29 = vpack.c.bf16 %v3224_v40, %v3223_v19 }
 0x871   :  { %4947 = vmatprep.subr.msk.bf16.mxu1 %vm5666_vm7, %v4945_v57 }
 0x872   :  { %4950 = vmatpush3.bf16.xpose.msk.msra.mxu1 %vm5666_vm7, %v4948_v25 }
 0x873   :  { %4953 = vmatprep.subr.msk.bf16.mxu1 %vm5666_vm7, %v4951_v53 }
 0x87a   :  { %4956 = vmatpush3.bf16.xpose.msk.msra.mxu1 %vm5666_vm7, %v4954_v38 }
 0x87b   :  { %4959 = vmatprep.subr.msk.bf16.mxu1 %vm5666_vm7, %v4957_v39 }
 0x882   :  { %4962 = vmatpush3.bf16.xpose.msk.msra.mxu1 %vm5666_vm7, %v4960_v63 }
 0x883   :  { %4965 = vmatprep.subr.msk.bf16.mxu1 %vm5666_vm7, %v4963_v54 }
 0x88a   :  { %4968 = vmatpush3.bf16.xpose.msk.msra.mxu1 %vm5666_vm7, %v4966_v17 }
 0x88b   :  { %4971 = vmatprep.subr.msk.bf16.mxu1 %vm5666_vm7, %v4969_v45 }
 0x892   :  { %4974 = vmatpush3.bf16.xpose.msk.msra.mxu1 %vm5666_vm7, %v4972_v7 }
 0x893   :  { %4977 = vmatprep.subr.msk.bf16.mxu1 %vm5666_vm7, %v4975_v52 }
 0x89a   :  { %4980 = vmatpush3.bf16.xpose.msk.msra.mxu1 %vm5666_vm7, %v4978_v10 }
 0x89b   :  { %4983 = vmatprep.subr.msk.bf16.mxu1 %vm5666_vm7, %v4981_v27 }
 0x8a2   :  { %4986 = vmatpush3.bf16.xpose.msk.msra.mxu1 %vm5666_vm7, %v4984_v51  ;;  %v6170_v51 = vcombine.low %v5709_v5, %v5713_v32 }
 0x8a3   :  { %4989 = vmatprep.subr.msk.bf16.mxu1 %vm5666_vm7, %v4987_v29 }
 0x8aa   :  { %4992 = vmatpush3.bf16.xpose.msk.msra.mxu1 %vm5666_vm7, %v4990_v56 }
 0x8ab   :  { %4868 = vmatprep.subr.mxu1 %v6148_v9 }
 0x8b1   :  { %4464 = vmatmul.mubr.msk.f32.vlgmr.msra.gmra.mrb[72].mxu1 %vm2078_vm3, %v5620_v48 }
 0x8b2   :  { %4869 = vmatpush3.msk.msra.mxu1 %vm112_vm0, %v5620_v48  ;;  %4870 = vmatprep.mubr.msk.f32.mxu1 %vm5063_vm1, %v6148_v9 }
 0x984   :  { %v3387_v27 = vpop.f32.mrb[72].mxu1 }
 0x985   :  { %v3389_v39 = vpop.f32.mrb[73].mxu1 }
 0x986   :  { %v3395_v45 = vcombine.low %v3387_v27, %v3389_v39 }
 0x988   :  { %v3397_v57 = vadd.f32 %v3395_v45, %v6170_v51 }
 0x98a   :  { %v3399_v63 = vcombine.high %v3397_v57, %v3397_v57  ;;  %v3401_v7 = vsel %vm112_vm0, %v3397_v57, -inf }
 0x98b   :  { %v3402_v25 = vrot.slane %v3401_v7, 4 }
 0x98c   :  { %v3408_v34 = vsel %vm112_vm0, %v3399_v63, -inf }
 0x98d   :  { %v3403_v47 = vmax.f32 %v3401_v7, %v3402_v25  ;;  %v3409_v59 = vrot.slane %v3408_v34, 4 }
 0x98f   :  { %v3404_v14 = vrot.slane %v3403_v47, 2  ;;  %v3410_v48 = vmax.f32 %v3408_v34, %v3409_v59 }
 0x991   :  { %v3405_v24 = vmax.f32 %v3403_v47, %v3404_v14  ;;  %v3411_v28 = vrot.slane %v3410_v48, 2 }
 0x993   :  { %v3406_v62 = vrot.slane %v3405_v24, 1  ;;  %v3412_v35 = vmax.f32 %v3410_v48, %v3411_v28 }
 0x995   :  { %v3413_v46 = vrot.slane %v3412_v35, 1  ;;  %v3407_v58 = vmax.f32 %v3405_v24, %v3406_v62 }
 0x997   :  { %v3414_v3 = vmax.f32 %v3412_v35, %v3413_v46 }
 0x999   :  { %v3417_v40 = vcombine.low %v3407_v58, %v3414_v3 }
 0x99b   :  { %v3419_v5 = vsub.f32 %v3397_v57, %v3417_v40 }
 0x99d   :  { %v3420_v32 = vmul.f32 1.442695, %v3419_v5 }
 0x99f   :  { %5028 = vpow2.f32 %v3420_v32 }
 0x9a9   :  { %v5029_v19 = vpop.eup %5028 }
 0x9aa   :  { %v3423_v17 = vcombine.high %v5029_v19, %v5029_v19  ;;  %v3425_v38 = vsel %vm112_vm0, %v5029_v19, 0.0 }
 0x9ab   :  { %v3426_v56 = vrot.slane %v3425_v38, 4 }
 0x9ac   :  { %v3432_v10 = vsel %vm112_vm0, %v3423_v17, 0.0 }
 0x9ad   :  { %v3427_v54 = vadd.f32 %v3426_v56, %v3425_v38  ;;  %v3433_v53 = vrot.slane %v3432_v10, 4 }
 0x9af   :  { %v3428_v29 = vrot.slane %v3427_v54, 2  ;;  %v3434_v52 = vadd.f32 %v3433_v53, %v3432_v10 }
 0x9b1   :  { %v3429_v22 = vadd.f32 %v3428_v29, %v3427_v54  ;;  %v3435_v21 = vrot.slane %v3434_v52, 2  ;;  %v6171_v54 = vld [vmem:[#allocation6_spill] sm:$0xff] }
 0x9b3   :  { %v3430_v26 = vrot.slane %v3429_v22, 1  ;;  %v3436_v61 = vadd.f32 %v3435_v21, %v3434_v52  ;;  %v6172_v21 = vld [vmem:[#allocation8_spill] sm:$0xff] }
 0x9b5   :  { %v3431_v36 = vadd.f32 %v3430_v26, %v3429_v22  ;;  %v3437_v11 = vrot.slane %v3436_v61, 1 }
 0x9b7   :  { %v3438_v6 = vadd.f32 %v3437_v11, %v3436_v61  ;;  %5030 = vrcp.f32 %v3431_v36  ;;  %v6173_v61 = vld [vmem:[#allocation7_spill] sm:$0xff] }
 0x9b9   :  { %5032 = vrcp.f32 %v3438_v6 }
 0x9c1   :  { %v5031_v43 = vpop.eup %5030 }
 0x9c3   :  { %v5033_v31 = vpop.eup %5032 }
 0x9c4   :  { %v3443_v37 = vcombine.low %v5031_v43, %v5033_v31 }
 0x9c6   :  { %v3445_v44 = vmul.f32 %v5029_v19, %v3443_v37  ;;  %v6174_v37 = vld [vmem:[#allocation10_spill] sm:$0xff] }
 0x9c8   :  { %3449 = vxpose.xlu0.b32.start.end [1/1] (short) %v3445_v44, 128  ;;  %v3447_v1 = vcombine.high %v3445_v44, %v3445_v44 }
 0x9ca   :  { %3481 = vxpose.xlu1.b32.start.end [1/1] (short) %v3447_v1, 128 }
 0xa48   :  { %v3465_v41 = vpop.trf.xlu0 }
 0xa49   :  { %4801 = vmatprep.mubr.msk.f32.mxu0 %vm2230_vm6, %v3465_v41  ;;  %v6175_v41 = vld [vmem:[#allocation9_spill] sm:$0xff] }
 0xa4a   :  { %v3497_v42 = vpop.trf.xlu1 }
 0xa4c   :  { %v3466_v23 = vpop.trf.xlu0 }
 0xa4d   :  { %4802 = vmatmul.mubr.msk.f32.vlgmr.msra.gmra.mrb[98].mxu0 %vm2230_vm6, %v3466_v23 }
 0xa4e   :  { %v3498_v49 = vpop.trf.xlu1  ;;  %4995 = vmatpush3.bf16.msra.mxu0 %v5454_v4 }
 0xa4f   :  { %4996 = vmatprep.subr.bf16.mxu0 %v6149_v18 }
 0xa50   :  { %v3467_v50 = vpop.trf.xlu0 }
 0xa51   :  { %4804 = vmatprep.mubr.msk.f32.mxu0 %vm2230_vm6, %v3467_v50 }
 0xa52   :  { %4998 = vmatpush3.bf16.msra.mxu0 %v5465_v8  ;;  %v3499_v2 = vpop.trf.xlu1 }
 0xa53   :  { %4999 = vmatprep.subr.bf16.mxu0 %v6149_v18 }
 0xa54   :  { %v3468_v0 = vpop.trf.xlu0 }
 0xa55   :  { %4805 = vmatmul.mubr.msk.f32.gmra.mrb[100].mxu0 %vm2230_vm6, %v3468_v0 }
 0xa56   :  { %5001 = vmatpush3.bf16.msra.mxu0 %v5475_v12  ;;  %v3500_v4 = vpop.trf.xlu1 }
 0xa57   :  { %5002 = vmatprep.subr.bf16.mxu0 %v6149_v18 }
 0xa58   :  { %v3469_v13 = vpop.trf.xlu0 }
 0xa59   :  { %4807 = vmatprep.mubr.msk.f32.mxu0 %vm2230_vm6, %v3469_v13  ;;  %v6176_v13 = vld [vmem:[#allocation12_spill] sm:$0xff] }
 0xa5a   :  { %5004 = vmatpush3.bf16.msra.mxu0 %v5485_v15  ;;  %v3501_v27 = vpop.trf.xlu1 }
 0xa5c   :  { %v3470_v60 = vpop.trf.xlu0 }
 0xa5d   :  { %4808 = vmatmul.mubr.msk.f32.gmra.mrb[102].mxu0 %vm2230_vm6, %v3470_v60 }
 0xa5e   :  { %v3502_v45 = vpop.trf.xlu1 }
 0xa60   :  { %v3471_v8 = vpop.trf.xlu0 }
 0xa61   :  { %4810 = vmatprep.mubr.msk.f32.mxu0 %vm2230_vm6, %v3471_v8  ;;  %v6177_v8 = vld [vmem:[#allocation11_spill] sm:$0xff] }
 0xa62   :  { %v3503_v51 = vpop.trf.xlu1 }
 0xa64   :  { %v3472_v39 = vpop.trf.xlu0 }
 0xa65   :  { %4811 = vmatmul.mubr.msk.f32.gmra.mrb[104].mxu0 %vm2230_vm6, %v3472_v39 }
 0xa66   :  { %v3504_v15 = vpop.trf.xlu1 }
 0xa68   :  { %v3473_v12 = vpop.trf.xlu0 }
 0xa69   :  { %4813 = vmatprep.mubr.msk.f32.mxu0 %vm2230_vm6, %v3473_v12 }
 0xa6a   :  { %v3505_v25 = vpop.trf.xlu1 }
 0xa6c   :  { %v3474_v18 = vpop.trf.xlu0 }
 0xa6d   :  { %4814 = vmatmul.mubr.msk.f32.gmra.mrb[106].mxu0 %vm2230_vm6, %v3474_v18 }
 0xa6e   :  { %v3506_v47 = vpop.trf.xlu1 }
 0xa70   :  { %v3475_v57 = vpop.trf.xlu0 }
 0xa71   :  { %4816 = vmatprep.mubr.msk.f32.mxu0 %vm2230_vm6, %v3475_v57  ;;  %v6178_v57 = vld [vmem:[#allocation14_spill] sm:$0xff] }
 0xa72   :  { %v3507_v48 = vpop.trf.xlu1 }
 0xa74   :  { %v3476_v63 = vpop.trf.xlu0 }
 0xa75   :  { %4817 = vmatmul.mubr.msk.f32.gmra.mrb[108].mxu0 %vm2230_vm6, %v3476_v63 }
 0xa76   :  { %v3508_v24 = vpop.trf.xlu1 }
 0xa78   :  { %v3477_v7 = vpop.trf.xlu0 }
 0xa79   :  { %4819 = vmatprep.mubr.msk.f32.mxu0 %vm2230_vm6, %v3477_v7  ;;  %v6179_v7 = vld [vmem:[#allocation13_spill] sm:$0xff] }
 0xa7a   :  { %v3509_v28 = vpop.trf.xlu1 }
 0xa7c   :  { %v3478_v34 = vpop.trf.xlu0 }
 0xa7d   :  { %4820 = vmatmul.mubr.msk.f32.gmra.mrb[110].mxu0 %vm2230_vm6, %v3478_v34 }
 0xa7e   :  { %v3510_v62 = vpop.trf.xlu1 }
 0xa80   :  { %v3479_v59 = vpop.trf.xlu0 }
 0xa81   :  { %4822 = vmatprep.mubr.msk.f32.mxu0 %vm2230_vm6, %v3479_v59 }
 0xa82   :  { %v3511_v35 = vpop.trf.xlu1 }
 0xa84   :  { %v3480_v14 = vpop.trf.xlu0 }
 0xa85   :  { %4823 = vmatmul.mubr.msk.f32.gmra.mrb[112].mxu0 %vm2230_vm6, %v3480_v14 }
 0xa86   :  { %4825 = vmatprep.mubr.msk.f32.mxu0 %vm2230_vm6, %v3497_v42  ;;  %v3512_v46 = vpop.trf.xlu1 }
 0xa89   :  { %4826 = vmatmul.mubr.msk.f32.gmra.mrb[114].mxu0 %vm2230_vm6, %v3498_v49 }
 0xa8a   :  { %4828 = vmatprep.mubr.msk.f32.mxu0 %vm2230_vm6, %v3499_v2 }
 0xa8d   :  { %4829 = vmatmul.mubr.msk.f32.gmra.mrb[116].mxu0 %vm2230_vm6, %v3500_v4 }
 0xa8e   :  { %4831 = vmatprep.mubr.msk.f32.mxu0 %vm2230_vm6, %v3501_v27 }
 0xa91   :  { %4832 = vmatmul.mubr.msk.f32.gmra.mrb[118].mxu0 %vm2230_vm6, %v3502_v45 }
 0xa92   :  { %4834 = vmatprep.mubr.msk.f32.mxu0 %vm2230_vm6, %v3503_v51 }
 0xa95   :  { %4835 = vmatmul.mubr.msk.f32.gmra.mrb[120].mxu0 %vm2230_vm6, %v3504_v15 }
 0xa96   :  { %4837 = vmatprep.mubr.msk.f32.mxu0 %vm2230_vm6, %v3505_v25 }
 0xa99   :  { %4838 = vmatmul.mubr.msk.f32.gmra.mrb[122].mxu0 %vm2230_vm6, %v3506_v47 }
 0xa9a   :  { %4840 = vmatprep.mubr.msk.f32.mxu0 %vm2230_vm6, %v3507_v48 }
 0xa9d   :  { %4841 = vmatmul.mubr.msk.f32.gmra.mrb[124].mxu0 %vm2230_vm6, %v3508_v24  ;;  %v6180_v24 = vld [vmem:[#allocation16_spill] sm:$0xff] }
 0xa9e   :  { %4843 = vmatprep.mubr.msk.f32.mxu0 %vm2230_vm6, %v3509_v28 }
 0xaa1   :  { %4844 = vmatmul.mubr.msk.f32.gmra.mrb[126].mxu0 %vm2230_vm6, %v3510_v62 }
 0xaa2   :  { %4846 = vmatprep.mubr.msk.f32.mxu0 %vm2230_vm6, %v3511_v35  ;;  %v6181_v35 = vld [vmem:[#allocation15_spill] sm:$0xff] }
 0xaa5   :  { %4847 = vmatmul.mubr.msk.f32.gmra.mrb[128].mxu0 %vm2230_vm6, %v3512_v46 }
 0xaa6   :  { %4865 = vmatprep.mubr.msk.f32.mxu0 %vm5063_vm1, %v6148_v9 }
 0xb20   :  { %v4803_v58 = vpop.f32.mrb[98].mxu0 }
 0xb21   :  { %v3835_v3 = vmul.f32 %v4803_v58, %v5490_v20  ;;  %v3675_v40 = vpop.f32.mrb[99].mxu0 }
 0xb22   :  { %v3834_v5 = vmul.f32 %v3675_v40, %v5487_v16 }
 0xb23   :  { %v3867_v32 = vsel %vm2078_vm3, %v3835_v3, 0.0 }
 0xb24   :  { %v3866_v19 = vsel %vm2078_vm3, %v3834_v5, 0.0 }
 0xb25   :  { %v3868_v17 = vadd.f32 %v3867_v32, %v3866_v19  ;;  %v6182_v19 = vld [vmem:[#allocation18_spill] sm:$0xff] }
 0xb28   :  { %v4806_v38 = vpop.f32.mrb[100].mxu0 }
 0xb29   :  { %v3837_v56 = vmul.f32 %v4806_v38, %v5500_v33  ;;  %v3685_v10 = vpop.f32.mrb[101].mxu0 }
 0xb2a   :  { %v3836_v53 = vmul.f32 %v3685_v10, %v6171_v54 }
 0xb2b   :  { %v3871_v52 = vsel %vm2078_vm3, %v3837_v56, 0.0  ;;  %v6183_v56 = vld [vmem:[#allocation17_spill] sm:$0xff] }
 0xb2c   :  { %v3869_v29 = vsel %vm2078_vm3, %v3836_v53, 0.0 }
 0xb2d   :  { %v3870_v9 = vadd.f32 %v3869_v29, %v3868_v17 }
 0xb2f   :  { %v3872_v20 = vadd.f32 %v3871_v52, %v3870_v9  ;;  %v6184_v9 = vld [vmem:[#allocation20_spill] sm:$0xff] }
 0xb30   :  { %v4809_v22 = vpop.f32.mrb[102].mxu0 }
 0xb31   :  { %v3839_v16 = vmul.f32 %v4809_v22, %v6172_v21  ;;  %v3695_v26 = vpop.f32.mrb[103].mxu0  ;;  %v6185_v21 = vld [vmem:[#allocation19_spill] sm:$0xff] }
 0xb32   :  { %v3838_v36 = vmul.f32 %v3695_v26, %v6173_v61 }
 0xb33   :  { %v3875_v33 = vsel %vm2078_vm3, %v3839_v16, 0.0 }
 0xb34   :  { %v3873_v11 = vsel %vm2078_vm3, %v3838_v36, 0.0 }
 0xb35   :  { %v3874_v6 = vadd.f32 %v3873_v11, %v3872_v20 }
 0xb37   :  { %v3876_v43 = vadd.f32 %v3875_v33, %v3874_v6  ;;  %v6186_v6 = vld [vmem:[#allocation22_spill] sm:$0xff] }
 0xb38   :  { %v4812_v31 = vpop.f32.mrb[104].mxu0 }
 0xb39   :  { %v3841_v44 = vmul.f32 %v4812_v31, %v6174_v37  ;;  %v3705_v1 = vpop.f32.mrb[105].mxu0  ;;  %v6187_v37 = vld [vmem:[#allocation21_spill] sm:$0xff] }
 0xb3a   :  { %v3840_v42 = vmul.f32 %v3705_v1, %v6175_v41 }
 0xb3b   :  { %v3879_v50 = vsel %vm2078_vm3, %v3841_v44, 0.0 }
 0xb3c   :  { %v3877_v23 = vsel %vm2078_vm3, %v3840_v42, 0.0 }
 0xb3d   :  { %v3878_v49 = vadd.f32 %v3877_v23, %v3876_v43 }
 0xb3f   :  { %v3880_v0 = vadd.f32 %v3879_v50, %v3878_v49  ;;  %v6188_v49 = vld [vmem:[#allocation24_spill] sm:$0xff] }
 0xb40   :  { %v4815_v2 = vpop.f32.mrb[106].mxu0 }
 0xb41   :  { %v3843_v4 = vmul.f32 %v4815_v2, %v6176_v13  ;;  %v3715_v60 = vpop.f32.mrb[107].mxu0  ;;  %v6189_v13 = vld [vmem:[#allocation23_spill] sm:$0xff] }
 0xb42   :  { %v3842_v27 = vmul.f32 %v3715_v60, %v6177_v8 }
 0xb43   :  { %v3883_v12 = vsel %vm2078_vm3, %v3843_v4, 0.0 }
 0xb44   :  { %v3881_v39 = vsel %vm2078_vm3, %v3842_v27, 0.0 }
 0xb45   :  { %v3882_v45 = vadd.f32 %v3881_v39, %v3880_v0 }
 0xb47   :  { %v3884_v18 = vadd.f32 %v3883_v12, %v3882_v45  ;;  %v6190_v45 = vld [vmem:[#allocation26_spill] sm:$0xff] }
 0xb48   :  { %v4818_v51 = vpop.f32.mrb[108].mxu0 }
 0xb49   :  { %v3845_v15 = vmul.f32 %v4818_v51, %v6178_v57  ;;  %v3725_v63 = vpop.f32.mrb[109].mxu0  ;;  %v6191_v57 = vld [vmem:[#allocation25_spill] sm:$0xff] }
 0xb4a   :  { %v3844_v25 = vmul.f32 %v3725_v63, %v6179_v7 }
 0xb4b   :  { %v3887_v59 = vsel %vm2078_vm3, %v3845_v15, 0.0 }
 0xb4c   :  { %v3885_v34 = vsel %vm2078_vm3, %v3844_v25, 0.0 }
 0xb4d   :  { %v3886_v47 = vadd.f32 %v3885_v34, %v3884_v18 }
 0xb4f   :  { %v3888_v14 = vadd.f32 %v3887_v59, %v3886_v47  ;;  %v6192_v47 = vld [vmem:[#allocation28_spill] sm:$0xff] }
 0xb50   :  { %v4821_v48 = vpop.f32.mrb[110].mxu0 }
 0xb51   :  { %v3847_v28 = vmul.f32 %v4821_v48, %v6180_v24  ;;  %v3735_v62 = vpop.f32.mrb[111].mxu0  ;;  %v6193_v24 = vld [vmem:[#allocation27_spill] sm:$0xff] }
 0xb52   :  { %v3846_v46 = vmul.f32 %v3735_v62, %v6181_v35 }
 0xb53   :  { %v3891_v40 = vsel %vm2078_vm3, %v3847_v28, 0.0 }
 0xb54   :  { %v3889_v58 = vsel %vm2078_vm3, %v3846_v46, 0.0 }
 0xb55   :  { %v3890_v3 = vadd.f32 %v3889_v58, %v3888_v14 }
 0xb57   :  { %v3892_v5 = vadd.f32 %v3891_v40, %v3890_v3  ;;  %v6194_v3 = vld [vmem:[#allocation30_spill] sm:$0xff] }
 0xb58   :  { %v4824_v32 = vpop.f32.mrb[112].mxu0 }
 0xb59   :  { %v3849_v17 = vmul.f32 %v4824_v32, %v6182_v19  ;;  %v3745_v38 = vpop.f32.mrb[113].mxu0  ;;  %v6195_v19 = vld [vmem:[#allocation29_spill] sm:$0xff] }
 0xb5a   :  { %v3848_v10 = vmul.f32 %v3745_v38, %v6183_v56 }
 0xb5b   :  { %v3895_v22 = vsel %vm2078_vm3, %v3849_v17, 0.0 }
 0xb5c   :  { %v3893_v54 = vsel %vm2078_vm3, %v3848_v10, 0.0  ;;  %v4827_v53 = vpop.f32.mrb[114].mxu0 }
 0xb5d   :  { %v3894_v29 = vadd.f32 %v3893_v54, %v3892_v5  ;;  %v3851_v52 = vmul.f32 %v4827_v53, %v6184_v9  ;;  %v3755_v20 = vpop.f32.mrb[115].mxu0  ;;  %v6196_v53 = vld [vmem:[#allocation32_spill] sm:$0xff] }
 0xb5e   :  { %v3850_v16 = vmul.f32 %v3755_v20, %v6185_v21  ;;  %v6197_v20 = vld [vmem:[#allocation31_spill] sm:$0xff] }
 0xb5f   :  { %v3896_v26 = vadd.f32 %v3895_v22, %v3894_v29  ;;  %v3899_v31 = vsel %vm2078_vm3, %v3851_v52, 0.0 }
 0xb60   :  { %v3897_v61 = vsel %vm2078_vm3, %v3850_v16, 0.0  ;;  %v4830_v36 = vpop.f32.mrb[116].mxu0 }
 0xb61   :  { %v3898_v11 = vadd.f32 %v3897_v61, %v3896_v26  ;;  %v3853_v33 = vmul.f32 %v4830_v36, %v6186_v6  ;;  %v3765_v43 = vpop.f32.mrb[117].mxu0 }
 0xb62   :  { %v3852_v44 = vmul.f32 %v3765_v43, %v6187_v37 }
 0xb63   :  { %v3900_v1 = vadd.f32 %v3899_v31, %v3898_v11  ;;  %v3903_v2 = vsel %vm2078_vm3, %v3853_v33, 0.0 }
 0xb64   :  { %v3901_v41 = vsel %vm2078_vm3, %v3852_v44, 0.0  ;;  %v4833_v42 = vpop.f32.mrb[118].mxu0 }
 0xb65   :  { %v3902_v23 = vadd.f32 %v3901_v41, %v3900_v1  ;;  %v3855_v50 = vmul.f32 %v4833_v42, %v6188_v49  ;;  %v3775_v0 = vpop.f32.mrb[119].mxu0 }
 0xb66   :  { %v3854_v4 = vmul.f32 %v3775_v0, %v6189_v13 }
 0xb67   :  { %v3904_v60 = vadd.f32 %v3903_v2, %v3902_v23  ;;  %v3907_v51 = vsel %vm2078_vm3, %v3855_v50, 0.0 }
 0xb68   :  { %v3905_v8 = vsel %vm2078_vm3, %v3854_v4, 0.0  ;;  %v4836_v27 = vpop.f32.mrb[120].mxu0 }
 0xb69   :  { %v3906_v39 = vadd.f32 %v3905_v8, %v3904_v60  ;;  %v3857_v12 = vmul.f32 %v4836_v27, %v6190_v45  ;;  %v3785_v18 = vpop.f32.mrb[121].mxu0 }
 0xb6a   :  { %v3856_v15 = vmul.f32 %v3785_v18, %v6191_v57 }
 0xb6b   :  { %v3908_v63 = vadd.f32 %v3907_v51, %v3906_v39  ;;  %v3911_v48 = vsel %vm2078_vm3, %v3857_v12, 0.0 }
 0xb6c   :  { %v3909_v7 = vsel %vm2078_vm3, %v3856_v15, 0.0  ;;  %v4839_v25 = vpop.f32.mrb[122].mxu0 }
 0xb6d   :  { %v3910_v34 = vadd.f32 %v3909_v7, %v3908_v63  ;;  %v3859_v59 = vmul.f32 %v4839_v25, %v6192_v47  ;;  %v3795_v14 = vpop.f32.mrb[123].mxu0 }
 0xb6e   :  { %v3858_v28 = vmul.f32 %v3795_v14, %v6193_v24 }
 0xb6f   :  { %v3912_v62 = vadd.f32 %v3911_v48, %v3910_v34  ;;  %v3915_v32 = vsel %vm2078_vm3, %v3859_v59, 0.0 }
 0xb70   :  { %v3913_v35 = vsel %vm2078_vm3, %v3858_v28, 0.0  ;;  %v4842_v46 = vpop.f32.mrb[124].mxu0 }
 0xb71   :  { %v3914_v58 = vadd.f32 %v3913_v35, %v3912_v62  ;;  %v3861_v40 = vmul.f32 %v4842_v46, %v6194_v3  ;;  %v3805_v5 = vpop.f32.mrb[125].mxu0 }
 0xb72   :  { %v3860_v17 = vmul.f32 %v3805_v5, %v6195_v19 }
 0xb73   :  { %v3916_v38 = vadd.f32 %v3915_v32, %v3914_v58  ;;  %v3919_v52 = vsel %vm2078_vm3, %v3861_v40, 0.0 }
 0xb74   :  { %v3917_v56 = vsel %vm2078_vm3, %v3860_v17, 0.0  ;;  %v4845_v10 = vpop.f32.mrb[126].mxu0 }
 0xb75   :  { %v3918_v54 = vadd.f32 %v3917_v56, %v3916_v38  ;;  %v3863_v29 = vmul.f32 %v4845_v10, %v6196_v53  ;;  %v3815_v9 = vpop.f32.mrb[127].mxu0 }
 0xb76   :  { %v3862_v22 = vmul.f32 %v3815_v9, %v6197_v20 }
 0xb77   :  { %v3920_v21 = vadd.f32 %v3919_v52, %v3918_v54  ;;  %v3923_v6 = vsel %vm2078_vm3, %v3863_v29, 0.0 }
 0xb78   :  { %v3921_v16 = vsel %vm2078_vm3, %v3862_v22, 0.0  ;;  %v4848_v26 = vpop.f32.mrb[128].mxu0 }
 0xb79   :  { %v3922_v61 = vadd.f32 %v3921_v16, %v3920_v21  ;;  %v3865_v36 = vmul.f32 %v4848_v26, %v5612_v30  ;;  %v3825_v11 = vpop.f32.mrb[129].mxu0 }
 0xb7a   :  { %v3864_v33 = vmul.f32 %v3825_v11, %v6155_v55 }
 0xb7b   :  { %v3924_v43 = vadd.f32 %v3923_v6, %v3922_v61  ;;  %v3927_v44 = vsel %vm2078_vm3, %v3865_v36, 0.0 }
 0xb7c   :  { %v3925_v31 = vsel %vm2078_vm3, %v3864_v33, 0.0 }
 0xb7d   :  { %v3926_v37 = vadd.f32 %v3925_v31, %v3924_v43 }
 0xb7f   :  { %v3928_v1 = vadd.f32 %v3927_v44, %v3926_v37 }
 0xb81   :  { %v3930_v41 = vmul.f32 %v3928_v1, %v3928_v1 }
 0xb83   :  { %4866 = vmatmul.mubr.msk.f32.vlgmr.msra.gmra.mrb[130].mxu0 %vm2078_vm3, %v3930_v41 }
 0xc56   :  { %v4000_v42 = vpop.f32.mrb[130].mxu0 }
 0xc57   :  { %5034 = vrsqrt.f32 %v4000_v42  ;;  %v4867_v23 = vpop.f32.mrb[131].mxu0  ;;  %vm4007_vm10 = vcmp.eq.f32.partialorder %v4000_v42, inf  ;;  %v4010_v50 = vand.u32 2147483648, %v4000_v42  ;;  %vm4009_vm11 = vcmp.eq.f32.partialorder %v4000_v42, 0.0 }
 0xc58   :  { %v4004_v2 = vadd.f32 1.0, %v4000_v42 }
 0xc61   :  { %v5035_v49 = vpop.eup %5034 }
 0xc62   :  { %v4006_v30 = vmul.f32 %v5035_v49, %v4000_v42 }
 0xc64   :  { %v4008_v0 = vsel %vm4007_vm10, %v4000_v42, %v4006_v30 }
 0xc65   :  { %v4011_v55 = vsel %vm4009_vm11, %v4010_v50, %v4008_v0 }
 0xc66   :  { %v4012_v13 = vadd.f32 1e-08, %v4011_v55 }
 0xc68   :  { %v4013_v4 = vmul.f32 %v4012_v13, %v4004_v2 }
 0xc6a   :  { %5036 = vrcp.f32 %v4013_v4 }
 0xc74   :  { %v5037_v60 = vpop.eup %5036 }
 0xc75   :  { %v4015_v8 = vmul.f32 %v5037_v60, %v4000_v42 }
 0xc77   :  { %4871 = vmatmul.mubr.msk.f32.vlgmr.msra.gmra.mrb[74].mxu1 %vm2230_vm6, %v4015_v8 }
 0xd4a   :  { %v4085_v27 = vpop.f32.mrb[74].mxu1 }
 0xd4b   :  { %v4089_v39 = vmul.f32 %v4085_v27, %v3928_v1  ;;  %v4872_v45 = vpop.f32.mrb[75].mxu1 }
 0xd4d   :  { %4090 = vst.msk [vmem:[#allocation3] sm:$0xff] %vm2078_vm3, %v4089_v39 }
 0xd4e   :  { %5049 = shalt.err (!%p5046_p4)
}
 0xd4f   :  { %s5050_s30 = scalar_lea.hbm %s6046_s4, 128 }
 0xd50   :  { %p5051_p5 = scmp.ne.s32.totalorder %s6046_s4, %s5050_s30  ;;  %p5054_p6 = scmp.lt.u32.totalorder %s5050_s30, %s6046_s4 }
 0xd52   :  { %p5056_p7 = pnand %p5054_p6, %p5051_p5 }
 0xd54   :  { %5059 = shalt.err (!%p5056_p7)
}
 0xd55   :  { %4100 = dma.vmem_to_hbm [thread:$0]  %s4098_s26, 128, %s6046_s4, [#allocation4]  }
 0xd56   :  { %5060 = dma.done.wait [#allocation4], 128  }
 0xd57   :  { %5061 = vsyncadd [#allocation4], 4294967168 }
 0xd58   :  { %4104 = vsyncpa [#allocation4], 1 }

// kernel: tpu_custom_call.1
= control target key start
LH: loop header
LB: loop body
LE: loop exit
PB: predicated region body
PF: predicated region fallthrough
CT: control target
= control target key end

     0   :  { %v6049_v9 = vmov 0.0   ;;  %vm112_vm0 = vcmask 1043456   ;;  %vm5063_vm1 = vmmov 0   ;;  %s6042_s0 = inlined_call_operand.vmem [shape: bf16[32,8,8], index: 0, kind: input, shape index: {}]   ;;  %s6043_s1 = inlined_call_operand.vmem [shape: bf16[32,8,64], index: 1, kind: input, shape index: {}]   ;;  %s6044_s2 = inlined_call_operand.vmem [shape: f32[64,4], index: 2, kind: input, shape index: {}]   ;;  %s6045_s3 = inlined_call_operand.vmem [shape: f32[4,64], index: 3, kind: input, shape index: {}]   ;;  %s6046_s4 = inlined_call_operand.hbm [shape: f32[8,64], index: 4, kind: output, shape index: {}]  }
   0x1   :  { %v28_v0 = vld [vmem:[%s6042_s0] sm:$0xf]  ;;  %v30_v1 = vld [vmem:[%s6042_s0 + $0x8] sm:$0xf]  ;;  %v29_v2 = vld [vmem:[%s6042_s0 + $0x4] sm:$0xf]  ;;  %4509 = vmatprep.subr.bf16.mxu0 %v6049_v9  ;;  %4515 = vmatprep.subr.bf16.mxu1 %v6049_v9 }
   0x2   :  { %92 = vxpose.xlu0.c.b16.start.end [1/1] (short) (narrow) %v28_v0, 16  ;;  %218 = vxpose.xlu1.c.b16.start.end [1/1] (short) (narrow) %v30_v1, 16  ;;  %v31_v3 = vld [vmem:[%s6042_s0 + $0xc] sm:$0xf]  ;;  %v32_v4 = vld [vmem:[%s6042_s0 + $0x10] sm:$0xf] }
   0x3   :  { %v33_v5 = vld [vmem:[%s6042_s0 + $0x14] sm:$0xf]  ;;  %v60_v6 = vld [vmem:[%s6043_s1] sm:$0xf]  ;;  %v34_v7 = vld [vmem:[%s6042_s0 + $0x18] sm:$0xf]  ;;  %4511 = vmatprep.mubr.msk.bf16.mxu0 %vm5063_vm1, %v6049_v9  ;;  %4517 = vmatprep.mubr.msk.bf16.mxu1 %vm5063_vm1, %v6049_v9 }
   0x4   :  { %v35_v8 = vld [vmem:[%s6042_s0 + $0x1c] sm:$0xf]  ;;  %v114_v10 = vsel %vm112_vm0, %v60_v6, 0  ;;  %v61_v11 = vld [vmem:[%s6043_s1 + $0x4] sm:$0xf] }
   0x5   :  { %4510 = vmatpush3.bf16.msra.mxu0 %v114_v10  ;;  %v176_v12 = vsel %vm112_vm0, %v61_v11, 0  ;;  %v36_v13 = vld [vmem:[%s6042_s0 + $0x20] sm:$0xf]  ;;  %v37_v14 = vld [vmem:[%s6042_s0 + $0x24] sm:$0xf] }
   0x6   :  { %156 = vxpose.xlu0.c.b16.start.end [1/1] (short) (narrow) %v29_v2, 16  ;;  %280 = vxpose.xlu1.c.b16.start.end [1/1] (short) (narrow) %v31_v3, 16  ;;  %v38_v15 = vld [vmem:[%s6042_s0 + $0x28] sm:$0xf]  ;;  %v39_v16 = vld [vmem:[%s6042_s0 + $0x2c] sm:$0xf] }
   0x7   :  { %4516 = vmatpush3.bf16.msra.mxu1 %v176_v12  ;;  %4521 = vmatprep.subr.bf16.mxu0 %v6049_v9 }
   0x8   :  { %4527 = vmatprep.subr.bf16.mxu1 %v6049_v9 }
   0xa   :  { %342 = vxpose.xlu0.c.b16.start.end [1/1] (short) (narrow) %v32_v4, 16  ;;  %404 = vxpose.xlu1.c.b16.start.end [1/1] (short) (narrow) %v33_v5, 16 }
   0xe   :  { %466 = vxpose.xlu0.c.b16.start.end [1/1] (short) (narrow) %v34_v7, 16  ;;  %528 = vxpose.xlu1.c.b16.start.end [1/1] (short) (narrow) %v35_v8, 16 }
  0x12   :  { %590 = vxpose.xlu0.c.b16.start.end [1/1] (short) (narrow) %v36_v13, 16  ;;  %652 = vxpose.xlu1.c.b16.start.end [1/1] (short) (narrow) %v37_v14, 16 }
  0x13   :  { %9 = vsyncpa [#allocation4], 0  ;;  %v40_v17 = vld [vmem:[%s6042_s0 + $0x30] sm:$0xf]  ;;  %v41_v18 = vld [vmem:[%s6042_s0 + $0x34] sm:$0xf] }
  0x14   :  { %v42_v19 = vld [vmem:[%s6042_s0 + $0x38] sm:$0xf]  ;;  %v43_v20 = vld [vmem:[%s6042_s0 + $0x3c] sm:$0xf]  ;;  %v44_v21 = vld [vmem:[%s6042_s0 + $0x40] sm:$0xf] }
  0x15   :  { %v45_v22 = vld [vmem:[%s6042_s0 + $0x44] sm:$0xf]  ;;  %v46_v23 = vld [vmem:[%s6042_s0 + $0x48] sm:$0xf]  ;;  %v47_v24 = vld [vmem:[%s6042_s0 + $0x4c] sm:$0xf] }
  0x16   :  { %714 = vxpose.xlu0.c.b16.start.end [1/1] (short) (narrow) %v38_v15, 16  ;;  %776 = vxpose.xlu1.c.b16.start.end [1/1] (short) (narrow) %v39_v16, 16  ;;  %v48_v25 = vld [vmem:[%s6042_s0 + $0x50] sm:$0xf]  ;;  %v49_v26 = vld [vmem:[%s6042_s0 + $0x54] sm:$0xf] }
  0x17   :  { %v50_v27 = vld [vmem:[%s6042_s0 + $0x58] sm:$0xf]  ;;  %v51_v28 = vld [vmem:[%s6042_s0 + $0x5c] sm:$0xf]  ;;  %v52_v29 = vld [vmem:[%s6042_s0 + $0x60] sm:$0xf] }
  0x18   :  { %v53_v30 = vld [vmem:[%s6042_s0 + $0x64] sm:$0xf]  ;;  %v54_v31 = vld [vmem:[%s6042_s0 + $0x68] sm:$0xf]  ;;  %v55_v32 = vld [vmem:[%s6042_s0 + $0x6c] sm:$0xf] }
  0x19   :  { %v56_v33 = vld [vmem:[%s6042_s0 + $0x70] sm:$0xf]  ;;  %v57_v34 = vld [vmem:[%s6042_s0 + $0x74] sm:$0xf]  ;;  %v58_v35 = vld [vmem:[%s6042_s0 + $0x78] sm:$0xf] }
  0x1a   :  { %838 = vxpose.xlu0.c.b16.start.end [1/1] (short) (narrow) %v40_v17, 16  ;;  %900 = vxpose.xlu1.c.b16.start.end [1/1] (short) (narrow) %v41_v18, 16  ;;  %v59_v36 = vld [vmem:[%s6042_s0 + $0x7c] sm:$0xf]  ;;  %v62_v37 = vld [vmem:[%s6043_s1 + $0x8] sm:$0xf] }
  0x1b   :  { %vm108_vm2 = vcmask 64512   ;;  %v238_v38 = vsel %vm112_vm0, %v62_v37, 0  ;;  %v63_v40 = vld [vmem:[%s6043_s1 + $0xc] sm:$0xf]  ;;  %v64_v44 = vld [vmem:[%s6043_s1 + $0x10] sm:$0xf] }
  0x1c   :  { %v300_v41 = vsel %vm112_vm0, %v63_v40, 0  ;;  %v362_v45 = vsel %vm112_vm0, %v64_v44, 0  ;;  %v65_v46 = vld [vmem:[%s6043_s1 + $0x14] sm:$0xf]  ;;  %v66_v49 = vld [vmem:[%s6043_s1 + $0x18] sm:$0xf] }
  0x1d   :  { %v424_v48 = vsel %vm112_vm0, %v65_v46, 0  ;;  %v486_v51 = vsel %vm112_vm0, %v66_v49, 0  ;;  %v67_v52 = vld [vmem:[%s6043_s1 + $0x1c] sm:$0xf]  ;;  %v68_v55 = vld [vmem:[%s6043_s1 + $0x20] sm:$0xf] }
  0x1e   :  { %962 = vxpose.xlu0.c.b16.start.end [1/1] (short) (narrow) %v42_v19, 16  ;;  %1024 = vxpose.xlu1.c.b16.start.end [1/1] (short) (narrow) %v43_v20, 16  ;;  %v548_v54 = vsel %vm112_vm0, %v67_v52, 0  ;;  %v610_v57 = vsel %vm112_vm0, %v68_v55, 0  ;;  %v69_v58 = vld [vmem:[%s6043_s1 + $0x24] sm:$0xf] }
  0x1f   :  { %v672_v60 = vsel %vm112_vm0, %v69_v58, 0  ;;  %v70_v61 = vld [vmem:[%s6043_s1 + $0x28] sm:$0xf]  ;;  %v71_v0 = vld [vmem:[%s6043_s1 + $0x2c] sm:$0xf]  ;;  %vm2078_vm3 = vcmask 523264  }
  0x20   :  { %v734_v63 = vsel %vm112_vm0, %v70_v61, 0  ;;  %v796_v2 = vsel %vm112_vm0, %v71_v0, 0  ;;  %v72_v3 = vld [vmem:[%s6043_s1 + $0x30] sm:$0xf]  ;;  %v73_v6 = vld [vmem:[%s6043_s1 + $0x34] sm:$0xf]  ;;  %vm5666_vm7 = vmpackc.low %vm2078_vm3, %vm2078_vm3 }
  0x21   :  { %v858_v5 = vsel %vm112_vm0, %v72_v3, 0  ;;  %v920_v8 = vsel %vm112_vm0, %v73_v6, 0  ;;  %v74_v10 = vld [vmem:[%s6043_s1 + $0x38] sm:$0xf]  ;;  %v75_v13 = vld [vmem:[%s6043_s1 + $0x3c] sm:$0xf] }
  0x22   :  { %1086 = vxpose.xlu0.c.b16.start.end [1/1] (short) (narrow) %v44_v21, 16  ;;  %1148 = vxpose.xlu1.c.b16.start.end [1/1] (short) (narrow) %v45_v22, 16  ;;  %v982_v12 = vsel %vm112_vm0, %v74_v10, 0  ;;  %v1044_v15 = vsel %vm112_vm0, %v75_v13, 0  ;;  %v76_v16 = vld [vmem:[%s6043_s1 + $0x40] sm:$0xf] }
  0x23   :  { %v1106_v18 = vsel %vm112_vm0, %v76_v16, 0  ;;  %v77_v19 = vld [vmem:[%s6043_s1 + $0x44] sm:$0xf]  ;;  %v78_v22 = vld [vmem:[%s6043_s1 + $0x48] sm:$0xf]  ;;  %v21_v6 = vld [vmem:[%s6044_s2 + $0x10] sm:$0xff] }
  0x24   :  { %v1168_v21 = vsel %vm112_vm0, %v77_v19, 0  ;;  %v83_v37 = vld [vmem:[%s6043_s1 + $0x5c] sm:$0xf]  ;;  %v84_v40 = vld [vmem:[%s6043_s1 + $0x60] sm:$0xf]  ;;  %v20_v3 = vld [vmem:[%s6044_s2 + $0x8] sm:$0xff] }
  0x25   :  { %v86_v46 = vld [vmem:[%s6043_s1 + $0x68] sm:$0xf]  ;;  %v87_v49 = vld [vmem:[%s6043_s1 + $0x6c] sm:$0xf]  ;;  %v88_v52 = vld [vmem:[%s6043_s1 + $0x70] sm:$0xf] }
  0x26   :  { %1210 = vxpose.xlu0.c.b16.start.end [1/1] (short) (narrow) %v46_v23, 16  ;;  %1272 = vxpose.xlu1.c.b16.start.end [1/1] (short) (narrow) %v47_v24, 16  ;;  %v1230_v24 = vsel %vm112_vm0, %v78_v22, 0  ;;  %v89_v55 = vld [vmem:[%s6043_s1 + $0x74] sm:$0xf]  ;;  %v23_v10 = vld [vmem:[%s6044_s2 + $0x20] sm:$0xff] }
  0x27   :  { %v90_v58 = vld [vmem:[%s6043_s1 + $0x78] sm:$0xf]  ;;  %v91_v61 = vld [vmem:[%s6043_s1 + $0x7c] sm:$0xf]  ;;  %v25_v13 = vld [vmem:[%s6044_s2 + $0x30] sm:$0xff]  ;;  %vm2230_vm6 = vcmask 31744  }
  0x2a   :  { %1334 = vxpose.xlu0.c.b16.start.end [1/1] (short) (narrow) %v48_v25, 16  ;;  %1396 = vxpose.xlu1.c.b16.start.end [1/1] (short) (narrow) %v49_v26, 16  ;;  %v79_v25 = vld [vmem:[%s6043_s1 + $0x4c] sm:$0xf] }
  0x2e   :  { %1458 = vxpose.xlu0.c.b16.start.end [1/1] (short) (narrow) %v50_v27, 16  ;;  %1520 = vxpose.xlu1.c.b16.start.end [1/1] (short) (narrow) %v51_v28, 16  ;;  %v1292_v27 = vsel %vm112_vm0, %v79_v25, 0  ;;  %v80_v28 = vld [vmem:[%s6043_s1 + $0x50] sm:$0xf] }
  0x32   :  { %1582 = vxpose.xlu0.c.b16.start.end [1/1] (short) (narrow) %v52_v29, 16  ;;  %1644 = vxpose.xlu1.c.b16.start.end [1/1] (short) (narrow) %v53_v30, 16  ;;  %v1354_v30 = vsel %vm112_vm0, %v80_v28, 0 }
  0x36   :  { %1706 = vxpose.xlu0.c.b16.start.end [1/1] (short) (narrow) %v54_v31, 16  ;;  %1768 = vxpose.xlu1.c.b16.start.end [1/1] (short) (narrow) %v55_v32, 16  ;;  %v81_v31 = vld [vmem:[%s6043_s1 + $0x54] sm:$0xf] }
  0x3a   :  { %1830 = vxpose.xlu0.c.b16.start.end [1/1] (short) (narrow) %v56_v33, 16  ;;  %1892 = vxpose.xlu1.c.b16.start.end [1/1] (short) (narrow) %v57_v34, 16  ;;  %v1416_v33 = vsel %vm112_vm0, %v81_v31, 0  ;;  %v82_v34 = vld [vmem:[%s6043_s1 + $0x58] sm:$0xf] }
  0x3e   :  { %1954 = vxpose.xlu0.c.b16.start.end [1/1] (short) (narrow) %v58_v35, 16  ;;  %2016 = vxpose.xlu1.c.b16.start.end [1/1] (short) (narrow) %v59_v36, 16  ;;  %v1478_v36 = vsel %vm112_vm0, %v82_v34, 0 }
  0x68   :  { %v100_v39 = vpop.trf.xlu0  ;;  %v226_v43 = vpop.trf.xlu1 }
  0x69   :  { %4512 = vmatmul.mubr.msk.bf16.vlgmr.msra.gmra.mrb[0].mxu0 %vm108_vm2, %v100_v39  ;;  %v1540_v39 = vsel %vm112_vm0, %v83_v37, 0 }
  0x6a   :  { %4522 = vmatpush3.bf16.msra.mxu0 %v238_v38  ;;  %4523 = vmatprep.mubr.msk.bf16.mxu0 %vm5063_vm1, %v6049_v9 }
  0x6b   :  { %4533 = vmatprep.subr.bf16.mxu0 %v6049_v9 }
  0x6c   :  { %v164_v42 = vpop.trf.xlu0  ;;  %v288_v47 = vpop.trf.xlu1 }
  0x6d   :  { %4518 = vmatmul.mubr.msk.bf16.vlgmr.msra.gmra.mrb[0].mxu1 %vm108_vm2, %v164_v42  ;;  %v1602_v42 = vsel %vm112_vm0, %v84_v40, 0 }
  0x6e   :  { %4528 = vmatpush3.bf16.msra.mxu1 %v300_v41  ;;  %4529 = vmatprep.mubr.msk.bf16.mxu1 %vm5063_vm1, %v6049_v9 }
  0x6f   :  { %4539 = vmatprep.subr.bf16.mxu1 %v6049_v9 }
  0x70   :  { %v350_v50 = vpop.trf.xlu0  ;;  %v412_v53 = vpop.trf.xlu1 }
  0x71   :  { %4524 = vmatmul.mubr.msk.bf16.vlgmr.msra.gmra.mrb[4].mxu0 %vm108_vm2, %v226_v43  ;;  %v85_v43 = vld [vmem:[%s6043_s1 + $0x64] sm:$0xf] }
  0x72   :  { %4534 = vmatpush3.bf16.msra.mxu0 %v362_v45  ;;  %4535 = vmatprep.mubr.msk.bf16.mxu0 %vm5063_vm1, %v6049_v9  ;;  %v1664_v45 = vsel %vm112_vm0, %v85_v43, 0 }
  0x73   :  { %4545 = vmatprep.subr.bf16.mxu0 %v6049_v9 }
  0x74   :  { %v474_v56 = vpop.trf.xlu0  ;;  %v536_v59 = vpop.trf.xlu1 }
  0x75   :  { %4530 = vmatmul.mubr.msk.bf16.vlgmr.msra.gmra.mrb[4].mxu1 %vm108_vm2, %v288_v47 }
  0x76   :  { %4540 = vmatpush3.bf16.msra.mxu1 %v424_v48  ;;  %4541 = vmatprep.mubr.msk.bf16.mxu1 %vm5063_vm1, %v6049_v9  ;;  %v1726_v48 = vsel %vm112_vm0, %v86_v46, 0 }
  0x77   :  { %4551 = vmatprep.subr.bf16.mxu1 %v6049_v9 }
  0x78   :  { %v598_v62 = vpop.trf.xlu0  ;;  %v660_v1 = vpop.trf.xlu1 }
  0x79   :  { %4536 = vmatmul.mubr.msk.bf16.vlgmr.msra.gmra.mrb[8].mxu0 %vm108_vm2, %v350_v50 }
  0x7a   :  { %4546 = vmatpush3.bf16.msra.mxu0 %v486_v51  ;;  %4547 = vmatprep.mubr.msk.bf16.mxu0 %vm5063_vm1, %v6049_v9  ;;  %v1788_v51 = vsel %vm112_vm0, %v87_v49, 0 }
  0x7b   :  { %4557 = vmatprep.subr.bf16.mxu0 %v6049_v9 }
  0x7c   :  { %v722_v4 = vpop.trf.xlu0  ;;  %v784_v7 = vpop.trf.xlu1 }
  0x7d   :  { %4542 = vmatmul.mubr.msk.bf16.vlgmr.msra.gmra.mrb[8].mxu1 %vm108_vm2, %v412_v53 }
  0x7e   :  { %4552 = vmatpush3.bf16.msra.mxu1 %v548_v54  ;;  %4553 = vmatprep.mubr.msk.bf16.mxu1 %vm5063_vm1, %v6049_v9  ;;  %v1850_v54 = vsel %vm112_vm0, %v88_v52, 0 }
  0x7f   :  { %4563 = vmatprep.subr.bf16.mxu1 %v6049_v9 }
  0x80   :  { %v846_v11 = vpop.trf.xlu0  ;;  %v908_v14 = vpop.trf.xlu1 }
  0x81   :  { %4548 = vmatmul.mubr.msk.bf16.vlgmr.msra.gmra.mrb[12].mxu0 %vm108_vm2, %v474_v56 }
  0x82   :  { %4558 = vmatpush3.bf16.msra.mxu0 %v610_v57  ;;  %4559 = vmatprep.mubr.msk.bf16.mxu0 %vm5063_vm1, %v6049_v9  ;;  %v1912_v57 = vsel %vm112_vm0, %v89_v55, 0 }
  0x83   :  { %4569 = vmatprep.subr.bf16.mxu0 %v6049_v9 }
  0x84   :  { %v970_v17 = vpop.trf.xlu0  ;;  %v1032_v20 = vpop.trf.xlu1 }
  0x85   :  { %4554 = vmatmul.mubr.msk.bf16.vlgmr.msra.gmra.mrb[12].mxu1 %vm108_vm2, %v536_v59 }
  0x86   :  { %4564 = vmatpush3.bf16.msra.mxu1 %v672_v60  ;;  %4565 = vmatprep.mubr.msk.bf16.mxu1 %vm5063_vm1, %v6049_v9  ;;  %v1974_v60 = vsel %vm112_vm0, %v90_v58, 0 }
  0x87   :  { %4575 = vmatprep.subr.bf16.mxu1 %v6049_v9 }
  0x88   :  { %v1094_v23 = vpop.trf.xlu0  ;;  %v1156_v26 = vpop.trf.xlu1 }
  0x89   :  { %4560 = vmatmul.mubr.msk.bf16.vlgmr.msra.gmra.mrb[16].mxu0 %vm108_vm2, %v598_v62 }
  0x8a   :  { %4570 = vmatpush3.bf16.msra.mxu0 %v734_v63  ;;  %4571 = vmatprep.mubr.msk.bf16.mxu0 %vm5063_vm1, %v6049_v9  ;;  %v2036_v63 = vsel %vm112_vm0, %v91_v61, 0 }
  0x8b   :  { %4581 = vmatprep.subr.bf16.mxu0 %v6049_v9 }
  0x8c   :  { %v1218_v29 = vpop.trf.xlu0  ;;  %v1280_v32 = vpop.trf.xlu1 }
  0x8d   :  { %4566 = vmatmul.mubr.msk.bf16.vlgmr.msra.gmra.mrb[16].mxu1 %vm108_vm2, %v660_v1 }
  0x8e   :  { %4576 = vmatpush3.bf16.msra.mxu1 %v796_v2  ;;  %4577 = vmatprep.mubr.msk.bf16.mxu1 %vm5063_vm1, %v6049_v9  ;;  %v19_v2 = vld [vmem:[%s6044_s2] sm:$0xff] }
  0x8f   :  { %4587 = vmatprep.subr.bf16.mxu1 %v6049_v9 }
  0x90   :  { %v1342_v35 = vpop.trf.xlu0  ;;  %v1404_v38 = vpop.trf.xlu1 }
  0x91   :  { %4572 = vmatmul.mubr.msk.bf16.vlgmr.msra.gmra.mrb[20].mxu0 %vm108_vm2, %v722_v4  ;;  %v5454_v4 = vpack.c.bf16 %v20_v3, %v19_v2 }
  0x92   :  { %4582 = vmatpush3.bf16.msra.mxu0 %v858_v5  ;;  %4583 = vmatprep.mubr.msk.bf16.mxu0 %vm5063_vm1, %v6049_v9  ;;  %v6047_v5 = vmov 0.0|0.0  }
  0x93   :  { %4593 = vmatprep.subr.bf16.mxu0 %v6049_v9 }
  0x94   :  { %v1466_v41 = vpop.trf.xlu0  ;;  %v1528_v44 = vpop.trf.xlu1 }
  0x95   :  { %4578 = vmatmul.mubr.msk.bf16.vlgmr.msra.gmra.mrb[20].mxu1 %vm108_vm2, %v784_v7  ;;  %v22_v7 = vld [vmem:[%s6044_s2 + $0x18] sm:$0xff] }
  0x96   :  { %4588 = vmatpush3.bf16.msra.mxu1 %v920_v8  ;;  %4589 = vmatprep.mubr.msk.bf16.mxu1 %vm5063_vm1, %v6049_v9  ;;  %v5465_v8 = vpack.c.bf16 %v22_v7, %v21_v6 }
  0x97   :  { %4599 = vmatprep.subr.bf16.mxu1 %v6049_v9 }
  0x98   :  { %v1590_v47 = vpop.trf.xlu0  ;;  %v1652_v50 = vpop.trf.xlu1 }
  0x99   :  { %4584 = vmatmul.mubr.msk.bf16.vlgmr.msra.gmra.mrb[24].mxu0 %vm108_vm2, %v846_v11  ;;  %v24_v11 = vld [vmem:[%s6044_s2 + $0x28] sm:$0xff] }
  0x9a   :  { %4594 = vmatpush3.bf16.msra.mxu0 %v982_v12  ;;  %4595 = vmatprep.mubr.msk.bf16.mxu0 %vm5063_vm1, %v6049_v9  ;;  %v5475_v12 = vpack.c.bf16 %v24_v11, %v23_v10 }
  0x9b   :  { %4605 = vmatprep.subr.bf16.mxu0 %v6049_v9 }
  0x9c   :  { %v1714_v53 = vpop.trf.xlu0  ;;  %v1776_v56 = vpop.trf.xlu1 }
  0x9d   :  { %4590 = vmatmul.mubr.msk.bf16.vlgmr.msra.gmra.mrb[24].mxu1 %vm108_vm2, %v908_v14  ;;  %v26_v14 = vld [vmem:[%s6044_s2 + $0x38] sm:$0xff] }
  0x9e   :  { %4600 = vmatpush3.bf16.msra.mxu1 %v1044_v15  ;;  %4601 = vmatprep.mubr.msk.bf16.mxu1 %vm5063_vm1, %v6049_v9  ;;  %v5485_v15 = vpack.c.bf16 %v26_v14, %v25_v13 }
  0x9f   :  { %4611 = vmatprep.subr.bf16.mxu1 %v6049_v9 }
  0xa0   :  { %v1838_v59 = vpop.trf.xlu0  ;;  %v1900_v62 = vpop.trf.xlu1 }
  0xa1   :  { %4596 = vmatmul.mubr.msk.bf16.vlgmr.msra.gmra.mrb[28].mxu0 %vm108_vm2, %v970_v17 }
  0xa2   :  { %4606 = vmatpush3.bf16.msra.mxu0 %v1106_v18  ;;  %4607 = vmatprep.mubr.msk.bf16.mxu0 %vm5063_vm1, %v6049_v9 }
  0xa3   :  { %4617 = vmatprep.subr.bf16.mxu0 %v6049_v9 }
  0xa4   :  { %v1962_v0 = vpop.trf.xlu0  ;;  %v2024_v1 = vpop.trf.xlu1 }
  0xa5   :  { %4602 = vmatmul.mubr.msk.bf16.vlgmr.msra.gmra.mrb[28].mxu1 %vm108_vm2, %v1032_v20 }
  0xa6   :  { %4612 = vmatpush3.bf16.msra.mxu1 %v1168_v21  ;;  %4613 = vmatprep.mubr.msk.bf16.mxu1 %vm5063_vm1, %v6049_v9 }
  0xa7   :  { %4623 = vmatprep.subr.bf16.mxu1 %v6049_v9 }
  0xa9   :  { %4608 = vmatmul.mubr.msk.bf16.vlgmr.msra.gmra.mrb[32].mxu0 %vm108_vm2, %v1094_v23 }
  0xaa   :  { %4618 = vmatpush3.bf16.msra.mxu0 %v1230_v24  ;;  %4619 = vmatprep.mubr.msk.bf16.mxu0 %vm5063_vm1, %v6049_v9 }
  0xab   :  { %4629 = vmatprep.subr.bf16.mxu0 %v6049_v9 }
  0xad   :  { %4614 = vmatmul.mubr.msk.bf16.vlgmr.msra.gmra.mrb[32].mxu1 %vm108_vm2, %v1156_v26 }
  0xae   :  { %4624 = vmatpush3.bf16.msra.mxu1 %v1292_v27  ;;  %4625 = vmatprep.mubr.msk.bf16.mxu1 %vm5063_vm1, %v6049_v9 }
  0xaf   :  { %4635 = vmatprep.subr.bf16.mxu1 %v6049_v9 }
  0xb1   :  { %4620 = vmatmul.mubr.msk.bf16.vlgmr.msra.gmra.mrb[36].mxu0 %vm108_vm2, %v1218_v29 }
  0xb2   :  { %4630 = vmatpush3.bf16.msra.mxu0 %v1354_v30  ;;  %4631 = vmatprep.mubr.msk.bf16.mxu0 %vm5063_vm1, %v6049_v9 }
  0xb3   :  { %4641 = vmatprep.subr.bf16.mxu0 %v6049_v9 }
  0xb5   :  { %4626 = vmatmul.mubr.msk.bf16.vlgmr.msra.gmra.mrb[36].mxu1 %vm108_vm2, %v1280_v32 }
  0xb6   :  { %4636 = vmatpush3.bf16.msra.mxu1 %v1416_v33  ;;  %4637 = vmatprep.mubr.msk.bf16.mxu1 %vm5063_vm1, %v6049_v9 }
  0xb7   :  { %4647 = vmatprep.subr.bf16.mxu1 %v6049_v9 }
  0xb9   :  { %4632 = vmatmul.mubr.msk.bf16.vlgmr.msra.gmra.mrb[40].mxu0 %vm108_vm2, %v1342_v35 }
  0xba   :  { %4642 = vmatpush3.bf16.msra.mxu0 %v1478_v36  ;;  %4643 = vmatprep.mubr.msk.bf16.mxu0 %vm5063_vm1, %v6049_v9 }
  0xbb   :  { %4653 = vmatprep.subr.bf16.mxu0 %v6049_v9 }
  0xbd   :  { %4638 = vmatmul.mubr.msk.bf16.vlgmr.msra.gmra.mrb[40].mxu1 %vm108_vm2, %v1404_v38 }
  0xbe   :  { %4648 = vmatpush3.bf16.msra.mxu1 %v1540_v39  ;;  %4649 = vmatprep.mubr.msk.bf16.mxu1 %vm5063_vm1, %v6049_v9 }
  0xbf   :  { %4659 = vmatprep.subr.bf16.mxu1 %v6049_v9 }
  0xc1   :  { %4644 = vmatmul.mubr.msk.bf16.vlgmr.msra.gmra.mrb[44].mxu0 %vm108_vm2, %v1466_v41 }
  0xc2   :  { %4654 = vmatpush3.bf16.msra.mxu0 %v1602_v42  ;;  %4655 = vmatprep.mubr.msk.bf16.mxu0 %vm5063_vm1, %v6049_v9 }
  0xc3   :  { %4665 = vmatprep.subr.bf16.mxu0 %v6049_v9 }
  0xc5   :  { %4650 = vmatmul.mubr.msk.bf16.vlgmr.msra.gmra.mrb[44].mxu1 %vm108_vm2, %v1528_v44 }
  0xc6   :  { %4660 = vmatpush3.bf16.msra.mxu1 %v1664_v45  ;;  %4661 = vmatprep.mubr.msk.bf16.mxu1 %vm5063_vm1, %v6049_v9 }
  0xc7   :  { %4671 = vmatprep.subr.bf16.mxu1 %v6049_v9 }
  0xc9   :  { %4656 = vmatmul.mubr.msk.bf16.vlgmr.msra.gmra.mrb[48].mxu0 %vm108_vm2, %v1590_v47 }
  0xca   :  { %4666 = vmatpush3.bf16.msra.mxu0 %v1726_v48  ;;  %4667 = vmatprep.mubr.msk.bf16.mxu0 %vm5063_vm1, %v6049_v9 }
  0xcb   :  { %4677 = vmatprep.subr.bf16.mxu0 %v6049_v9 }
  0xcd   :  { %4662 = vmatmul.mubr.msk.bf16.vlgmr.msra.gmra.mrb[48].mxu1 %vm108_vm2, %v1652_v50 }
  0xce   :  { %4672 = vmatpush3.bf16.msra.mxu1 %v1788_v51  ;;  %4673 = vmatprep.mubr.msk.bf16.mxu1 %vm5063_vm1, %v6049_v9 }
  0xcf   :  { %4683 = vmatprep.subr.bf16.mxu1 %v6049_v9 }
  0xd1   :  { %4668 = vmatmul.mubr.msk.bf16.vlgmr.msra.gmra.mrb[52].mxu0 %vm108_vm2, %v1714_v53 }
  0xd2   :  { %4678 = vmatpush3.bf16.msra.mxu0 %v1850_v54  ;;  %4679 = vmatprep.mubr.msk.bf16.mxu0 %vm5063_vm1, %v6049_v9 }
  0xd3   :  { %4689 = vmatprep.subr.bf16.mxu0 %v6049_v9 }
  0xd5   :  { %4674 = vmatmul.mubr.msk.bf16.vlgmr.msra.gmra.mrb[52].mxu1 %vm108_vm2, %v1776_v56 }
  0xd6   :  { %4684 = vmatpush3.bf16.msra.mxu1 %v1912_v57  ;;  %4685 = vmatprep.mubr.msk.bf16.mxu1 %vm5063_vm1, %v6049_v9 }
  0xd7   :  { %4695 = vmatprep.subr.bf16.mxu1 %v6049_v9 }
  0xd9   :  { %4680 = vmatmul.mubr.msk.bf16.vlgmr.msra.gmra.mrb[56].mxu0 %vm108_vm2, %v1838_v59 }
  0xda   :  { %4690 = vmatpush3.bf16.msra.mxu0 %v1974_v60  ;;  %4691 = vmatprep.mubr.msk.bf16.mxu0 %vm5063_vm1, %v6049_v9 }
  0xdb   :  { %4873 = vmatprep.subr.bf16.mxu0 %v6047_v5 }
  0xdd   :  { %4686 = vmatmul.mubr.msk.bf16.vlgmr.msra.gmra.mrb[56].mxu1 %vm108_vm2, %v1900_v62 }
  0xde   :  { %4696 = vmatpush3.bf16.msra.mxu1 %v2036_v63  ;;  %4697 = vmatprep.mubr.msk.bf16.mxu1 %vm5063_vm1, %v6049_v9 }
  0xdf   :  { %4720 = vmatprep.subr.mxu1 %v6049_v9 }
  0xe1   :  { %4692 = vmatmul.mubr.msk.bf16.vlgmr.msra.gmra.mrb[60].mxu0 %vm108_vm2, %v1962_v0 }
  0xe2   :  { %4717 = vmatprep.mubr.msk.f32.mxu0 %vm5063_vm1, %v6049_v9  ;;  %4875 = vmatpush3.bf16.msra.mxu0 %v5454_v4 }
  0xe3   :  { %4876 = vmatprep.subr.bf16.mxu0 %v6047_v5 }
  0xe5   :  { %4698 = vmatmul.mubr.msk.bf16.vlgmr.msra.gmra.mrb[60].mxu1 %vm108_vm2, %v2024_v1 }
  0xe6   :  { %4722 = vmatprep.mubr.msk.f32.mxu1 %vm5063_vm1, %v6049_v9  ;;  %4878 = vmatpush3.bf16.msra.mxu0 %v5465_v8 }
  0xe7   :  { %4879 = vmatprep.subr.bf16.mxu0 %v6047_v5 }
  0xea   :  { %4881 = vmatpush3.bf16.msra.mxu0 %v5475_v12 }
  0xeb   :  { %4882 = vmatprep.subr.bf16.mxu0 %v6047_v5 }
  0xee   :  { %4884 = vmatpush3.bf16.msra.mxu0 %v5485_v15 }
 0x13c   :  { %v5487_v16 = vpop.f32.mrb[0].mxu0 }
 0x13d   :  { %v4513_v17 = vpop.f32.mrb[1].mxu0  ;;  %v2079_v21 = vsel %vm2078_vm3, %v5487_v16, 0.0 }
 0x13e   :  { %v153_v18 = vpop.f32.mrb[2].mxu0 }
 0x13f   :  { %v4514_v19 = vpop.f32.mrb[3].mxu0 }
 0x140   :  { %v5490_v20 = vpop.f32.mrb[0].mxu1 }
 0x141   :  { %v2080_v22 = vsel %vm2078_vm3, %v5490_v20, 0.0  ;;  %v4519_v23 = vpop.f32.mrb[1].mxu1 }
 0x142   :  { %v2081_v24 = vadd.f32 %v2080_v22, %v2079_v21  ;;  %v215_v25 = vpop.f32.mrb[2].mxu1 }
 0x143   :  { %v4520_v26 = vpop.f32.mrb[3].mxu1 }
 0x144   :  { %v5496_v27 = vpop.f32.mrb[4].mxu0 }
 0x145   :  { %6118 = vst [vmem:[#allocation6_spill] sm:$0xff] %v5496_v27  ;;  %v2082_v28 = vsel %vm2078_vm3, %v5496_v27, 0.0  ;;  %v4525_v29 = vpop.f32.mrb[5].mxu0 }
 0x146   :  { %v2083_v30 = vadd.f32 %v2082_v28, %v2081_v24  ;;  %v277_v31 = vpop.f32.mrb[6].mxu0 }
 0x147   :  { %v4526_v32 = vpop.f32.mrb[7].mxu0 }
 0x148   :  { %v5500_v33 = vpop.f32.mrb[4].mxu1 }
 0x149   :  { %v2084_v34 = vsel %vm2078_vm3, %v5500_v33, 0.0  ;;  %v4531_v35 = vpop.f32.mrb[5].mxu1 }
 0x14a   :  { %v2085_v36 = vadd.f32 %v2084_v34, %v2083_v30  ;;  %v339_v37 = vpop.f32.mrb[6].mxu1 }
 0x14b   :  { %v4532_v38 = vpop.f32.mrb[7].mxu1 }
 0x14c   :  { %v5504_v39 = vpop.f32.mrb[8].mxu0 }
 0x14d   :  { %6119 = vst [vmem:[#allocation7_spill] sm:$0xff] %v5504_v39  ;;  %v2086_v40 = vsel %vm2078_vm3, %v5504_v39, 0.0  ;;  %v4537_v41 = vpop.f32.mrb[9].mxu0 }
 0x14e   :  { %v2087_v42 = vadd.f32 %v2086_v40, %v2085_v36  ;;  %v401_v43 = vpop.f32.mrb[10].mxu0 }
 0x14f   :  { %v4538_v44 = vpop.f32.mrb[11].mxu0 }
 0x150   :  { %v5508_v45 = vpop.f32.mrb[8].mxu1 }
 0x151   :  { %6120 = vst [vmem:[#allocation8_spill] sm:$0xff] %v5508_v45  ;;  %v2088_v46 = vsel %vm2078_vm3, %v5508_v45, 0.0  ;;  %v4543_v47 = vpop.f32.mrb[9].mxu1 }
 0x152   :  { %v2089_v48 = vadd.f32 %v2088_v46, %v2087_v42  ;;  %v463_v49 = vpop.f32.mrb[10].mxu1 }
 0x153   :  { %v4544_v50 = vpop.f32.mrb[11].mxu1 }
 0x154   :  { %v5512_v51 = vpop.f32.mrb[12].mxu0 }
 0x155   :  { %6121 = vst [vmem:[#allocation9_spill] sm:$0xff] %v5512_v51  ;;  %v2090_v52 = vsel %vm2078_vm3, %v5512_v51, 0.0  ;;  %v4549_v53 = vpop.f32.mrb[13].mxu0 }
 0x156   :  { %v2091_v54 = vadd.f32 %v2090_v52, %v2089_v48  ;;  %v525_v55 = vpop.f32.mrb[14].mxu0 }
 0x157   :  { %v4550_v56 = vpop.f32.mrb[15].mxu0 }
 0x158   :  { %v5516_v57 = vpop.f32.mrb[12].mxu1 }
 0x159   :  { %6122 = vst [vmem:[#allocation10_spill] sm:$0xff] %v5516_v57  ;;  %v2092_v58 = vsel %vm2078_vm3, %v5516_v57, 0.0  ;;  %v4555_v59 = vpop.f32.mrb[13].mxu1 }
 0x15a   :  { %v2093_v60 = vadd.f32 %v2092_v58, %v2091_v54  ;;  %v587_v61 = vpop.f32.mrb[14].mxu1 }
 0x15b   :  { %v4556_v62 = vpop.f32.mrb[15].mxu1 }
 0x15c   :  { %v5520_v63 = vpop.f32.mrb[16].mxu0 }
 0x15d   :  { %6123 = vst [vmem:[#allocation11_spill] sm:$0xff] %v5520_v63  ;;  %v2094_v0 = vsel %vm2078_vm3, %v5520_v63, 0.0  ;;  %v4561_v1 = vpop.f32.mrb[17].mxu0 }
 0x15e   :  { %v2095_v2 = vadd.f32 %v2094_v0, %v2093_v60  ;;  %v649_v3 = vpop.f32.mrb[18].mxu0 }
 0x15f   :  { %v4562_v6 = vpop.f32.mrb[19].mxu0 }
 0x160   :  { %v5524_v7 = vpop.f32.mrb[16].mxu1 }
 0x161   :  { %6124 = vst [vmem:[#allocation12_spill] sm:$0xff] %v5524_v7  ;;  %v2096_v10 = vsel %vm2078_vm3, %v5524_v7, 0.0  ;;  %v4567_v11 = vpop.f32.mrb[17].mxu1 }
 0x162   :  { %v2097_v13 = vadd.f32 %v2096_v10, %v2095_v2  ;;  %v711_v14 = vpop.f32.mrb[18].mxu1 }
 0x163   :  { %v4568_v17 = vpop.f32.mrb[19].mxu1 }
 0x164   :  { %v5528_v18 = vpop.f32.mrb[20].mxu0 }
 0x165   :  { %6125 = vst [vmem:[#allocation13_spill] sm:$0xff] %v5528_v18  ;;  %v2098_v19 = vsel %vm2078_vm3, %v5528_v18, 0.0  ;;  %v4573_v21 = vpop.f32.mrb[21].mxu0 }
 0x166   :  { %v2099_v22 = vadd.f32 %v2098_v19, %v2097_v13  ;;  %v773_v23 = vpop.f32.mrb[22].mxu0 }
 0x167   :  { %v4574_v24 = vpop.f32.mrb[23].mxu0 }
 0x168   :  { %v5532_v25 = vpop.f32.mrb[20].mxu1 }
 0x169   :  { %6126 = vst [vmem:[#allocation14_spill] sm:$0xff] %v5532_v25  ;;  %v2100_v26 = vsel %vm2078_vm3, %v5532_v25, 0.0  ;;  %v4579_v28 = vpop.f32.mrb[21].mxu1 }
 0x16a   :  { %v2101_v29 = vadd.f32 %v2100_v26, %v2099_v22  ;;  %v835_v30 = vpop.f32.mrb[22].mxu1 }
 0x16b   :  { %v4580_v31 = vpop.f32.mrb[23].mxu1 }
 0x16c   :  { %v5536_v32 = vpop.f32.mrb[24].mxu0 }
 0x16d   :  { %6127 = vst [vmem:[#allocation15_spill] sm:$0xff] %v5536_v32  ;;  %v2102_v34 = vsel %vm2078_vm3, %v5536_v32, 0.0  ;;  %v4585_v35 = vpop.f32.mrb[25].mxu0 }
 0x16e   :  { %v2103_v36 = vadd.f32 %v2102_v34, %v2101_v29  ;;  %v897_v37 = vpop.f32.mrb[26].mxu0 }
 0x16f   :  { %v4586_v38 = vpop.f32.mrb[27].mxu0 }
 0x170   :  { %v5540_v40 = vpop.f32.mrb[24].mxu1 }
 0x171   :  { %6128 = vst [vmem:[#allocation16_spill] sm:$0xff] %v5540_v40  ;;  %v2104_v41 = vsel %vm2078_vm3, %v5540_v40, 0.0  ;;  %v4591_v42 = vpop.f32.mrb[25].mxu1 }
 0x172   :  { %v2105_v43 = vadd.f32 %v2104_v41, %v2103_v36  ;;  %v959_v44 = vpop.f32.mrb[26].mxu1 }
 0x173   :  { %v4592_v46 = vpop.f32.mrb[27].mxu1 }
 0x174   :  { %v5544_v47 = vpop.f32.mrb[28].mxu0 }
 0x175   :  { %6129 = vst [vmem:[#allocation17_spill] sm:$0xff] %v5544_v47  ;;  %v2106_v48 = vsel %vm2078_vm3, %v5544_v47, 0.0  ;;  %v4597_v49 = vpop.f32.mrb[29].mxu0 }
 0x176   :  { %v2107_v50 = vadd.f32 %v2106_v48, %v2105_v43  ;;  %v1021_v52 = vpop.f32.mrb[30].mxu0 }
 0x177   :  { %v4598_v53 = vpop.f32.mrb[31].mxu0 }
 0x178   :  { %v5548_v54 = vpop.f32.mrb[28].mxu1 }
 0x179   :  { %6130 = vst [vmem:[#allocation18_spill] sm:$0xff] %v5548_v54  ;;  %v2108_v55 = vsel %vm2078_vm3, %v5548_v54, 0.0  ;;  %v4603_v56 = vpop.f32.mrb[29].mxu1 }
 0x17a   :  { %v2109_v58 = vadd.f32 %v2108_v55, %v2107_v50  ;;  %v1083_v59 = vpop.f32.mrb[30].mxu1 }
 0x17b   :  { %v4604_v60 = vpop.f32.mrb[31].mxu1 }
 0x17c   :  { %v5552_v61 = vpop.f32.mrb[32].mxu0 }
 0x17d   :  { %6131 = vst [vmem:[#allocation19_spill] sm:$0xff] %v5552_v61  ;;  %v2110_v62 = vsel %vm2078_vm3, %v5552_v61, 0.0  ;;  %v4609_v0 = vpop.f32.mrb[33].mxu0 }
 0x17e   :  { %v2111_v1 = vadd.f32 %v2110_v62, %v2109_v58  ;;  %v1145_v2 = vpop.f32.mrb[34].mxu0 }
 0x17f   :  { %v4610_v3 = vpop.f32.mrb[35].mxu0 }
 0x180   :  { %v5556_v6 = vpop.f32.mrb[32].mxu1 }
 0x181   :  { %6132 = vst [vmem:[#allocation20_spill] sm:$0xff] %v5556_v6  ;;  %v2112_v10 = vsel %vm2078_vm3, %v5556_v6, 0.0  ;;  %v4615_v11 = vpop.f32.mrb[33].mxu1 }
 0x182   :  { %v2113_v13 = vadd.f32 %v2112_v10, %v2111_v1  ;;  %v1207_v14 = vpop.f32.mrb[34].mxu1 }
 0x183   :  { %v4616_v17 = vpop.f32.mrb[35].mxu1 }
 0x184   :  { %v5560_v19 = vpop.f32.mrb[36].mxu0 }
 0x185   :  { %6133 = vst [vmem:[#allocation21_spill] sm:$0xff] %v5560_v19  ;;  %v2114_v21 = vsel %vm2078_vm3, %v5560_v19, 0.0  ;;  %v4621_v22 = vpop.f32.mrb[37].mxu0 }
 0x186   :  { %v2115_v23 = vadd.f32 %v2114_v21, %v2113_v13  ;;  %v1269_v24 = vpop.f32.mrb[38].mxu0 }
 0x187   :  { %v4622_v26 = vpop.f32.mrb[39].mxu0 }
 0x188   :  { %v5564_v28 = vpop.f32.mrb[36].mxu1 }
 0x189   :  { %6134 = vst [vmem:[#allocation22_spill] sm:$0xff] %v5564_v28  ;;  %v2116_v29 = vsel %vm2078_vm3, %v5564_v28, 0.0  ;;  %v4627_v30 = vpop.f32.mrb[37].mxu1 }
 0x18a   :  { %v2117_v31 = vadd.f32 %v2116_v29, %v2115_v23  ;;  %v1331_v34 = vpop.f32.mrb[38].mxu1 }
 0x18b   :  { %v4628_v35 = vpop.f32.mrb[39].mxu1 }
 0x18c   :  { %v5568_v36 = vpop.f32.mrb[40].mxu0 }
 0x18d   :  { %6135 = vst [vmem:[#allocation23_spill] sm:$0xff] %v5568_v36  ;;  %v2118_v37 = vsel %vm2078_vm3, %v5568_v36, 0.0  ;;  %v4633_v38 = vpop.f32.mrb[41].mxu0 }
 0x18e   :  { %v2119_v41 = vadd.f32 %v2118_v37, %v2117_v31  ;;  %v1393_v42 = vpop.f32.mrb[42].mxu0 }
 0x18f   :  { %v4634_v43 = vpop.f32.mrb[43].mxu0 }
 0x190   :  { %v5572_v44 = vpop.f32.mrb[40].mxu1 }
 0x191   :  { %6136 = vst [vmem:[#allocation24_spill] sm:$0xff] %v5572_v44  ;;  %v2120_v46 = vsel %vm2078_vm3, %v5572_v44, 0.0  ;;  %v4639_v48 = vpop.f32.mrb[41].mxu1 }
 0x192   :  { %v2121_v49 = vadd.f32 %v2120_v46, %v2119_v41  ;;  %v1455_v50 = vpop.f32.mrb[42].mxu1 }
 0x193   :  { %v4640_v52 = vpop.f32.mrb[43].mxu1 }
 0x194   :  { %v5576_v53 = vpop.f32.mrb[44].mxu0 }
 0x195   :  { %6137 = vst [vmem:[#allocation25_spill] sm:$0xff] %v5576_v53  ;;  %v2122_v55 = vsel %vm2078_vm3, %v5576_v53, 0.0  ;;  %v4645_v56 = vpop.f32.mrb[45].mxu0 }
 0x196   :  { %v2123_v58 = vadd.f32 %v2122_v55, %v2121_v49  ;;  %v1517_v59 = vpop.f32.mrb[46].mxu0 }
 0x197   :  { %v4646_v60 = vpop.f32.mrb[47].mxu0 }
 0x198   :  { %v5580_v62 = vpop.f32.mrb[44].mxu1 }
 0x199   :  { %6138 = vst [vmem:[#allocation26_spill] sm:$0xff] %v5580_v62  ;;  %v2124_v0 = vsel %vm2078_vm3, %v5580_v62, 0.0  ;;  %v4651_v1 = vpop.f32.mrb[45].mxu1 }
 0x19a   :  { %v2125_v2 = vadd.f32 %v2124_v0, %v2123_v58  ;;  %v1579_v3 = vpop.f32.mrb[46].mxu1 }
 0x19b   :  { %v4652_v10 = vpop.f32.mrb[47].mxu1 }
 0x19c   :  { %v5584_v11 = vpop.f32.mrb[48].mxu0 }
 0x19d   :  { %6139 = vst [vmem:[#allocation27_spill] sm:$0xff] %v5584_v11  ;;  %v2126_v13 = vsel %vm2078_vm3, %v5584_v11, 0.0  ;;  %v4657_v14 = vpop.f32.mrb[49].mxu0 }
 0x19e   :  { %v2127_v17 = vadd.f32 %v2126_v13, %v2125_v2  ;;  %v1641_v21 = vpop.f32.mrb[50].mxu0 }
 0x19f   :  { %v4658_v22 = vpop.f32.mrb[51].mxu0 }
 0x1a0   :  { %v5588_v23 = vpop.f32.mrb[48].mxu1 }
 0x1a1   :  { %6140 = vst [vmem:[#allocation28_spill] sm:$0xff] %v5588_v23  ;;  %v2128_v24 = vsel %vm2078_vm3, %v5588_v23, 0.0  ;;  %v4663_v26 = vpop.f32.mrb[49].mxu1 }
 0x1a2   :  { %v2129_v29 = vadd.f32 %v2128_v24, %v2127_v17  ;;  %v1703_v30 = vpop.f32.mrb[50].mxu1 }
 0x1a3   :  { %v4664_v31 = vpop.f32.mrb[51].mxu1 }
 0x1a4   :  { %v5592_v34 = vpop.f32.mrb[52].mxu0 }
 0x1a5   :  { %6141 = vst [vmem:[#allocation29_spill] sm:$0xff] %v5592_v34  ;;  %v2130_v35 = vsel %vm2078_vm3, %v5592_v34, 0.0  ;;  %v4669_v37 = vpop.f32.mrb[53].mxu0 }
 0x1a6   :  { %v2131_v38 = vadd.f32 %v2130_v35, %v2129_v29  ;;  %v1765_v41 = vpop.f32.mrb[54].mxu0 }
 0x1a7   :  { %v4670_v42 = vpop.f32.mrb[55].mxu0 }
 0x1a8   :  { %v5596_v43 = vpop.f32.mrb[52].mxu1 }
 0x1a9   :  { %6142 = vst [vmem:[#allocation30_spill] sm:$0xff] %v5596_v43  ;;  %v2132_v46 = vsel %vm2078_vm3, %v5596_v43, 0.0  ;;  %v4675_v48 = vpop.f32.mrb[53].mxu1 }
 0x1aa   :  { %v2133_v49 = vadd.f32 %v2132_v46, %v2131_v38  ;;  %v1827_v50 = vpop.f32.mrb[54].mxu1  ;;  %v5620_v48 = vld [vmem:[%s6045_s3] sm:$0xf]  ;;  %s5065_s3 = smov [#allocation3]  }
 0x1ab   :  { %v4676_v52 = vpop.f32.mrb[55].mxu1  ;;  %4721 = vmatpush3.msk.msra.mxu1 %vm112_vm0, %v5620_v48  ;;  %4725 = vmatprep.subr.msk.mxu0 %vm112_vm0, %v5620_v48  ;;  %s4097_s26 = sshll.u32 %s5065_s3, 4  ;;  %s4098_s26 = int_to_ptr.vmem [resolvable:$true] %s4097_s26 }
 0x1ac   :  { %v5600_v55 = vpop.f32.mrb[56].mxu0  ;;  %s5038_s27 = scalar_lea.vmem %s4098_s26, 128  ;;  %p5043_p1 = scmp.lt.s32.totalorder %s4098_s26, %s4098_s26 }
 0x1ad   :  { %6143 = vst [vmem:[#allocation31_spill] sm:$0xff] %v5600_v55  ;;  %v2134_v56 = vsel %vm2078_vm3, %v5600_v55, 0.0  ;;  %v4681_v58 = vpop.f32.mrb[57].mxu0  ;;  %p5039_p0 = scmp.ne.s32.totalorder %s4098_s26, %s5038_s27  ;;  %p5044_p2 = scmp.lt.s32.totalorder %s5038_s27, %s5038_s27 }
 0x1ae   :  { %v2135_v59 = vadd.f32 %v2134_v56, %v2133_v49  ;;  %v1889_v60 = vpop.f32.mrb[58].mxu0 }
 0x1af   :  { %v4682_v0 = vpop.f32.mrb[59].mxu0  ;;  %p5045_p3 = por %p5044_p2, %p5043_p1 }
 0x1b0   :  { %v5604_v1 = vpop.f32.mrb[56].mxu1 }
 0x1b1   :  { %6144 = vst [vmem:[#allocation32_spill] sm:$0xff] %v5604_v1  ;;  %v2136_v2 = vsel %vm2078_vm3, %v5604_v1, 0.0  ;;  %v4687_v3 = vpop.f32.mrb[57].mxu1  ;;  %p5046_p4 = pnand %p5045_p3, %p5039_p0 }
 0x1b2   :  { %v2137_v10 = vadd.f32 %v2136_v2, %v2135_v59  ;;  %v1951_v13 = vpop.f32.mrb[58].mxu1 }
 0x1b3   :  { %v4688_v14 = vpop.f32.mrb[59].mxu1 }
 0x1b4   :  { %v5608_v17 = vpop.f32.mrb[60].mxu0 }
 0x1b5   :  { %6145 = vst [vmem:[#allocation33_spill] sm:$0xff] %v5608_v17  ;;  %v2138_v21 = vsel %vm2078_vm3, %v5608_v17, 0.0  ;;  %v4693_v22 = vpop.f32.mrb[61].mxu0 }
 0x1b6   :  { %v2139_v24 = vadd.f32 %v2138_v21, %v2137_v10  ;;  %v2013_v26 = vpop.f32.mrb[62].mxu0 }
 0x1b7   :  { %v4694_v29 = vpop.f32.mrb[63].mxu0 }
 0x1b8   :  { %v5612_v30 = vpop.f32.mrb[60].mxu1 }
 0x1b9   :  { %v2140_v31 = vsel %vm2078_vm3, %v5612_v30, 0.0  ;;  %v4699_v35 = vpop.f32.mrb[61].mxu1 }
 0x1ba   :  { %v2141_v37 = vadd.f32 %v2140_v31, %v2139_v24  ;;  %v2075_v38 = vpop.f32.mrb[62].mxu1 }
 0x1bb   :  { %v4700_v41 = vpop.f32.mrb[63].mxu1 }
 0x1bc   :  { %v2143_v42 = vmul.f32 0.25, %v2141_v37 }
 0x1be   :  { %v2144_v46 = vmul.f32 %v2143_v42, %v2143_v42 }
 0x1c0   :  { %4718 = vmatmul.mubr.msk.f32.vlgmr.msra.gmra.mrb[64].mxu0 %vm2078_vm3, %v2144_v46 }
 0x1c1   :  { %4726 = vmatpush3.msk.msra.mxu0 %vm112_vm0, %v5620_v48 }
 0x1c2   :  { %4933 = vmatprep.subr.bf16.mxu0 %v6047_v5 }
 0x293   :  { %v2214_v49 = vpop.f32.mrb[64].mxu0 }
 0x294   :  { %5012 = vrsqrt.f32 %v2214_v49  ;;  %v4719_v50 = vpop.f32.mrb[65].mxu0  ;;  %vm2221_vm4 = vcmp.eq.f32.partialorder %v2214_v49, inf  ;;  %v2224_v58 = vand.u32 2147483648, %v2214_v49  ;;  %vm2223_vm5 = vcmp.eq.f32.partialorder %v2214_v49, 0.0 }
 0x295   :  { %v2218_v0 = vadd.f32 1.0, %v2214_v49 }
 0x29e   :  { %v5013_v52 = vpop.eup %5012 }
 0x29f   :  { %v2220_v56 = vmul.f32 %v5013_v52, %v2214_v49 }
 0x2a1   :  { %v2222_v59 = vsel %vm2221_vm4, %v2214_v49, %v2220_v56 }
 0x2a2   :  { %v2225_v60 = vsel %vm2223_vm5, %v2224_v58, %v2222_v59 }
 0x2a3   :  { %v2226_v2 = vadd.f32 1e-08, %v2225_v60 }
 0x2a5   :  { %v2227_v3 = vmul.f32 %v2226_v2, %v2218_v0 }
 0x2a7   :  { %5014 = vrcp.f32 %v2227_v3 }
 0x2b1   :  { %v5015_v10 = vpop.eup %5014 }
 0x2b2   :  { %v2229_v13 = vmul.f32 %v5015_v10, %v2214_v49 }
 0x2b4   :  { %4723 = vmatmul.mubr.msk.f32.vlgmr.msra.gmra.mrb[64].mxu1 %vm2230_vm6, %v2229_v13 }
 0x2b5   :  { %4385 = vmatprep.mubr.msk.f32.mxu1 %vm2078_vm3, %v5620_v48 }
 0x387   :  { %v2303_v14 = vpop.f32.mrb[64].mxu1 }
 0x388   :  { %v2307_v21 = vmul.f32 %v2303_v14, %v2143_v42  ;;  %v4724_v22 = vpop.f32.mrb[65].mxu1 }
 0x38a   :  { %v2308_v24 = vmul.f32 %v2307_v21, %v5487_v16  ;;  %v2309_v26 = vmul.f32 %v2307_v21, %v5490_v20  ;;  %v2310_v29 = vmul.f32 %v2307_v21, %v5496_v27  ;;  %v2311_v31 = vmul.f32 %v2307_v21, %v5500_v33 }
 0x38b   :  { %v2312_v35 = vmul.f32 %v2307_v21, %v5504_v39  ;;  %v2313_v37 = vmul.f32 %v2307_v21, %v5508_v45  ;;  %v2314_v38 = vmul.f32 %v2307_v21, %v5512_v51  ;;  %v2315_v41 = vmul.f32 %v2307_v21, %v5516_v57 }
 0x38c   :  { %v2316_v46 = vmul.f32 %v2307_v21, %v5520_v63  ;;  %v2317_v42 = vmul.f32 %v2307_v21, %v5524_v7  ;;  %v2318_v49 = vmul.f32 %v2307_v21, %v5528_v18  ;;  %v2319_v50 = vmul.f32 %v2307_v21, %v5532_v25 }
 0x38d   :  { %v2320_v52 = vmul.f32 %v2307_v21, %v5536_v32  ;;  %v2321_v56 = vmul.f32 %v2307_v21, %v5540_v40  ;;  %v2322_v58 = vmul.f32 %v2307_v21, %v5544_v47  ;;  %v2323_v59 = vmul.f32 %v2307_v21, %v5548_v54 }
 0x38e   :  { %v2324_v60 = vmul.f32 %v2307_v21, %v5552_v61  ;;  %v2325_v0 = vmul.f32 %v2307_v21, %v5556_v6  ;;  %v2326_v2 = vmul.f32 %v2307_v21, %v5560_v19  ;;  %v2327_v3 = vmul.f32 %v2307_v21, %v5564_v28 }
 0x38f   :  { %v2328_v10 = vmul.f32 %v2307_v21, %v5568_v36  ;;  %v2329_v13 = vmul.f32 %v2307_v21, %v5572_v44  ;;  %v2330_v14 = vmul.f32 %v2307_v21, %v5576_v53  ;;  %v2331_v22 = vmul.f32 %v2307_v21, %v5580_v62 }
 0x390   :  { %v2332_v5 = vmul.f32 %v2307_v21, %v5584_v11  ;;  %v2333_v9 = vmul.f32 %v2307_v21, %v5588_v23  ;;  %v2334_v61 = vmul.f32 %v2307_v21, %v5592_v34  ;;  %v2335_v6 = vmul.f32 %v2307_v21, %v5596_v43 }
 0x391   :  { %v2336_v19 = vmul.f32 %v2307_v21, %v5600_v55  ;;  %v2337_v28 = vmul.f32 %v2307_v21, %v5604_v1  ;;  %v2338_v36 = vmul.f32 %v2307_v21, %v5608_v17  ;;  %v2339_v44 = vmul.f32 %v2307_v21, %v5612_v30 }
 0x392   :  { %v4888_v47 = vpack.c.bf16 %v2309_v26, %v2308_v24  ;;  %v4894_v53 = vpack.c.bf16 %v2311_v31, %v2310_v29  ;;  %v4900_v54 = vpack.c.bf16 %v2313_v37, %v2312_v35  ;;  %v4906_v62 = vpack.c.bf16 %v2315_v41, %v2314_v38 }
 0x393   :  { %v4912_v32 = vpack.c.bf16 %v2317_v42, %v2316_v46  ;;  %v4918_v11 = vpack.c.bf16 %v2319_v50, %v2318_v49  ;;  %v4924_v40 = vpack.c.bf16 %v2321_v56, %v2320_v52  ;;  %v4930_v23 = vpack.c.bf16 %v2323_v59, %v2322_v58 }
 0x394   :  { %v4885_v55 = vpack.c.bf16 %v2325_v0, %v2324_v60  ;;  %v4891_v1 = vpack.c.bf16 %v2327_v3, %v2326_v2  ;;  %v4897_v43 = vpack.c.bf16 %v2329_v13, %v2328_v10  ;;  %v4903_v17 = vpack.c.bf16 %v2331_v22, %v2330_v14 }
 0x395   :  { %v4909_v18 = vpack.c.bf16 %v2333_v9, %v2332_v5  ;;  %v4915_v21 = vpack.c.bf16 %v2335_v6, %v2334_v61  ;;  %v4921_v24 = vpack.c.bf16 %v2337_v28, %v2336_v19  ;;  %v4927_v26 = vpack.c.bf16 %v2339_v44, %v2338_v36 }
 0x396   :  { %4887 = vmatprep.subr.msk.bf16.mxu1 %vm5666_vm7, %v4885_v55  ;;  %v6148_v9 = vmov 0.0  }
 0x397   :  { %4890 = vmatpush3.bf16.xpose.msk.msra.mxu1 %vm5666_vm7, %v4888_v47 }
 0x398   :  { %4893 = vmatprep.subr.msk.bf16.mxu1 %vm5666_vm7, %v4891_v1 }
 0x39f   :  { %4896 = vmatpush3.bf16.xpose.msk.msra.mxu1 %vm5666_vm7, %v4894_v53 }
 0x3a0   :  { %4899 = vmatprep.subr.msk.bf16.mxu1 %vm5666_vm7, %v4897_v43 }
 0x3a7   :  { %4902 = vmatpush3.bf16.xpose.msk.msra.mxu1 %vm5666_vm7, %v4900_v54 }
 0x3a8   :  { %4905 = vmatprep.subr.msk.bf16.mxu1 %vm5666_vm7, %v4903_v17 }
 0x3af   :  { %4908 = vmatpush3.bf16.xpose.msk.msra.mxu1 %vm5666_vm7, %v4906_v62 }
 0x3b0   :  { %4911 = vmatprep.subr.msk.bf16.mxu1 %vm5666_vm7, %v4909_v18 }
 0x3b7   :  { %4914 = vmatpush3.bf16.xpose.msk.msra.mxu1 %vm5666_vm7, %v4912_v32 }
 0x3b8   :  { %4917 = vmatprep.subr.msk.bf16.mxu1 %vm5666_vm7, %v4915_v21 }
 0x3bf   :  { %4920 = vmatpush3.bf16.xpose.msk.msra.mxu1 %vm5666_vm7, %v4918_v11 }
 0x3c0   :  { %4923 = vmatprep.subr.msk.bf16.mxu1 %vm5666_vm7, %v4921_v24 }
 0x3c7   :  { %4926 = vmatpush3.bf16.xpose.msk.msra.mxu1 %vm5666_vm7, %v4924_v40 }
 0x3c8   :  { %4929 = vmatprep.subr.msk.bf16.mxu1 %vm5666_vm7, %v4927_v26 }
 0x3cf   :  { %4932 = vmatpush3.bf16.xpose.msk.msra.mxu1 %vm5666_vm7, %v4930_v23 }
 0x3d0   :  { %5005 = vmatprep.subr.msk.mxu1 %vm112_vm0, %v5620_v48 }
 0x3d6   :  { %4386 = vmatmul.mubr.msk.f32.vlgmr.msra.gmra.mrb[66].mxu1 %vm2078_vm3, %v5620_v48 }
 0x3d7   :  { %5006 = vmatpush3.msk.msra.mxu1 %vm112_vm0, %v5620_v48 }
 0x3d8   :  { %4794 = vmatprep.subr.mxu1 %v6148_v9 }
 0x4a9   :  { %v5709_v5 = vpop.f32.mrb[66].mxu1 }
 0x4aa   :  { %v2514_v18 = vsel %vm112_vm0, %v5709_v5, -inf  ;;  %v5713_v32 = vpop.f32.mrb[67].mxu1 }
 0x4ab   :  { %v2515_v40 = vrot.slane %v2514_v18, 4  ;;  %v2521_v54 = vsel %vm112_vm0, %v5713_v32, -inf }
 0x4ac   :  { %v2522_v61 = vrot.slane %v2521_v54, 4 }
 0x4ad   :  { %v2516_v6 = vmax.f32 %v2514_v18, %v2515_v40  ;;  %v6149_v18 = vmov 0.0|0.0  }
 0x4ae   :  { %v2523_v19 = vmax.f32 %v2521_v54, %v2522_v61 }
 0x4af   :  { %v2517_v28 = vrot.slane %v2516_v6, 2 }
 0x4b0   :  { %v2524_v36 = vrot.slane %v2523_v19, 2 }
 0x4b1   :  { %v2518_v44 = vmax.f32 %v2516_v6, %v2517_v28 }
 0x4b2   :  { %v2525_v53 = vmax.f32 %v2523_v19, %v2524_v36 }
 0x4b3   :  { %v2519_v62 = vrot.slane %v2518_v44, 1 }
 0x4b4   :  { %v2526_v11 = vrot.slane %v2525_v53, 1 }
 0x4b5   :  { %v2520_v23 = vmax.f32 %v2518_v44, %v2519_v62 }
 0x4b6   :  { %v2527_v43 = vmax.f32 %v2525_v53, %v2526_v11 }
 0x4b7   :  { %v2528_v55 = vsub.f32 %v5709_v5, %v2520_v23 }
 0x4b8   :  { %v2529_v1 = vsub.f32 %v5713_v32, %v2527_v43 }
 0x4b9   :  { %v2530_v17 = vmul.f32 1.442695, %v2528_v55 }
 0x4ba   :  { %v2532_v29 = vmul.f32 1.442695, %v2529_v1 }
 0x4bb   :  { %5016 = vpow2.f32 %v2530_v17 }
 0x4bc   :  { %5018 = vpow2.f32 %v2532_v29 }
 0x4c5   :  { %v5017_v31 = vpop.eup %5016 }
 0x4c6   :  { %v5019_v35 = vpop.eup %5018  ;;  %v2534_v37 = vsel %vm112_vm0, %v5017_v31, 0.0 }
 0x4c7   :  { %v2535_v38 = vrot.slane %v2534_v37, 4  ;;  %v2541_v41 = vsel %vm112_vm0, %v5019_v35, 0.0 }
 0x4c8   :  { %v2542_v46 = vrot.slane %v2541_v41, 4 }
 0x4c9   :  { %v2536_v42 = vadd.f32 %v2535_v38, %v2534_v37 }
 0x4ca   :  { %v2543_v49 = vadd.f32 %v2542_v46, %v2541_v41 }
 0x4cb   :  { %v2537_v50 = vrot.slane %v2536_v42, 2 }
 0x4cc   :  { %v2544_v52 = vrot.slane %v2543_v49, 2 }
 0x4cd   :  { %v2538_v56 = vadd.f32 %v2537_v50, %v2536_v42 }
 0x4ce   :  { %v2545_v58 = vadd.f32 %v2544_v52, %v2543_v49 }
 0x4cf   :  { %v2539_v59 = vrot.slane %v2538_v56, 1 }
 0x4d0   :  { %v2546_v60 = vrot.slane %v2545_v58, 1 }
 0x4d1   :  { %v2540_v0 = vadd.f32 %v2539_v59, %v2538_v56 }
 0x4d2   :  { %v2547_v2 = vadd.f32 %v2546_v60, %v2545_v58 }
 0x4d3   :  { %5020 = vrcp.f32 %v2540_v0 }
 0x4d4   :  { %5022 = vrcp.f32 %v2547_v2 }
 0x4dd   :  { %v5021_v3 = vpop.eup %5020 }
 0x4de   :  { %v5023_v10 = vpop.eup %5022  ;;  %v2550_v13 = vmul.f32 %v5021_v3, %v5017_v31 }
 0x4df   :  { %v2551_v14 = vmul.f32 %v5023_v10, %v5019_v35 }
 0x4e0   :  { %2552 = vxpose.xlu0.b32.start.end [1/1] (short) %v2550_v13, 128 }
 0x4e1   :  { %2584 = vxpose.xlu1.b32.start.end [1/1] (short) %v2551_v14, 128 }
 0x560   :  { %v2568_v22 = vpop.trf.xlu0 }
 0x561   :  { %4727 = vmatprep.mubr.msk.f32.mxu0 %vm2230_vm6, %v2568_v22  ;;  %v2600_v21 = vpop.trf.xlu1 }
 0x564   :  { %v2569_v24 = vpop.trf.xlu0 }
 0x565   :  { %4728 = vmatmul.mubr.msk.f32.vlgmr.msra.gmra.mrb[66].mxu0 %vm2230_vm6, %v2569_v24  ;;  %v2601_v26 = vpop.trf.xlu1 }
 0x566   :  { %4935 = vmatpush3.bf16.msra.mxu0 %v5454_v4 }
 0x567   :  { %4936 = vmatprep.subr.bf16.mxu0 %v6149_v18 }
 0x568   :  { %v2570_v40 = vpop.trf.xlu0 }
 0x569   :  { %4730 = vmatprep.mubr.msk.f32.mxu0 %vm2230_vm6, %v2570_v40  ;;  %v2602_v54 = vpop.trf.xlu1 }
 0x56a   :  { %4938 = vmatpush3.bf16.msra.mxu0 %v5465_v8 }
 0x56b   :  { %4939 = vmatprep.subr.bf16.mxu0 %v6149_v18 }
 0x56c   :  { %v2571_v61 = vpop.trf.xlu0 }
 0x56d   :  { %4731 = vmatmul.mubr.msk.f32.gmra.mrb[68].mxu0 %vm2230_vm6, %v2571_v61  ;;  %v2603_v6 = vpop.trf.xlu1 }
 0x56e   :  { %4941 = vmatpush3.bf16.msra.mxu0 %v5475_v12 }
 0x56f   :  { %4942 = vmatprep.subr.bf16.mxu0 %v6149_v18 }
 0x570   :  { %v2572_v19 = vpop.trf.xlu0 }
 0x571   :  { %4733 = vmatprep.mubr.msk.f32.mxu0 %vm2230_vm6, %v2572_v19  ;;  %v2604_v28 = vpop.trf.xlu1 }
 0x572   :  { %4944 = vmatpush3.bf16.msra.mxu0 %v5485_v15 }
 0x573   :  { %4799 = vmatprep.subr.msk.mxu0 %vm112_vm0, %v5620_v48 }
 0x574   :  { %v2573_v36 = vpop.trf.xlu0 }
 0x575   :  { %4734 = vmatmul.mubr.msk.f32.gmra.mrb[70].mxu0 %vm2230_vm6, %v2573_v36  ;;  %v2605_v44 = vpop.trf.xlu1 }
 0x578   :  { %v2574_v53 = vpop.trf.xlu0 }
 0x579   :  { %4736 = vmatprep.mubr.msk.f32.mxu0 %vm2230_vm6, %v2574_v53  ;;  %v2606_v62 = vpop.trf.xlu1 }
 0x57c   :  { %v2575_v11 = vpop.trf.xlu0 }
 0x57d   :  { %4737 = vmatmul.mubr.msk.f32.gmra.mrb[72].mxu0 %vm2230_vm6, %v2575_v11  ;;  %v2607_v23 = vpop.trf.xlu1 }
 0x580   :  { %v2576_v43 = vpop.trf.xlu0 }
 0x581   :  { %4739 = vmatprep.mubr.msk.f32.mxu0 %vm2230_vm6, %v2576_v43  ;;  %v2608_v55 = vpop.trf.xlu1 }
 0x584   :  { %v2577_v1 = vpop.trf.xlu0 }
 0x585   :  { %4740 = vmatmul.mubr.msk.f32.gmra.mrb[74].mxu0 %vm2230_vm6, %v2577_v1  ;;  %v2609_v17 = vpop.trf.xlu1 }
 0x588   :  { %v2578_v29 = vpop.trf.xlu0 }
 0x589   :  { %4742 = vmatprep.mubr.msk.f32.mxu0 %vm2230_vm6, %v2578_v29  ;;  %v2610_v31 = vpop.trf.xlu1 }
 0x58c   :  { %v2579_v35 = vpop.trf.xlu0 }
 0x58d   :  { %4743 = vmatmul.mubr.msk.f32.gmra.mrb[76].mxu0 %vm2230_vm6, %v2579_v35  ;;  %v2611_v37 = vpop.trf.xlu1 }
 0x590   :  { %v2580_v38 = vpop.trf.xlu0 }
 0x591   :  { %4745 = vmatprep.mubr.msk.f32.mxu0 %vm2230_vm6, %v2580_v38  ;;  %v2612_v41 = vpop.trf.xlu1 }
 0x594   :  { %v2581_v46 = vpop.trf.xlu0 }
 0x595   :  { %4746 = vmatmul.mubr.msk.f32.gmra.mrb[78].mxu0 %vm2230_vm6, %v2581_v46  ;;  %v2613_v42 = vpop.trf.xlu1 }
 0x598   :  { %v2582_v49 = vpop.trf.xlu0 }
 0x599   :  { %4748 = vmatprep.mubr.msk.f32.mxu0 %vm2230_vm6, %v2582_v49  ;;  %v2614_v50 = vpop.trf.xlu1 }
 0x59a   :  { %4772 = vmatprep.mubr.msk.f32.mxu1 %vm2230_vm6, %v2614_v50 }
 0x59c   :  { %v2583_v52 = vpop.trf.xlu0 }
 0x59d   :  { %4749 = vmatmul.mubr.msk.f32.gmra.mrb[80].mxu0 %vm2230_vm6, %v2583_v52  ;;  %v2615_v56 = vpop.trf.xlu1 }
 0x59e   :  { %4751 = vmatprep.mubr.msk.f32.mxu0 %vm2230_vm6, %v2600_v21  ;;  %4773 = vmatmul.mubr.msk.f32.vlgmr.msra.gmra.mrb[68].mxu1 %vm2230_vm6, %v2615_v56 }
 0x59f   :  { %4795 = vmatpush3.msk.msra.mxu1 %vm112_vm0, %v5620_v48  ;;  %4796 = vmatprep.mubr.msk.f32.mxu1 %vm5063_vm1, %v6148_v9 }
 0x5a1   :  { %4752 = vmatmul.mubr.msk.f32.gmra.mrb[82].mxu0 %vm2230_vm6, %v2601_v26 }
 0x5a2   :  { %4754 = vmatprep.mubr.msk.f32.mxu0 %vm2230_vm6, %v2602_v54 }
 0x5a5   :  { %4755 = vmatmul.mubr.msk.f32.gmra.mrb[84].mxu0 %vm2230_vm6, %v2603_v6 }
 0x5a6   :  { %4757 = vmatprep.mubr.msk.f32.mxu0 %vm2230_vm6, %v2604_v28 }
 0x5a9   :  { %4758 = vmatmul.mubr.msk.f32.gmra.mrb[86].mxu0 %vm2230_vm6, %v2605_v44 }
 0x5aa   :  { %4760 = vmatprep.mubr.msk.f32.mxu0 %vm2230_vm6, %v2606_v62 }
 0x5ad   :  { %4761 = vmatmul.mubr.msk.f32.gmra.mrb[88].mxu0 %vm2230_vm6, %v2607_v23 }
 0x5ae   :  { %4763 = vmatprep.mubr.msk.f32.mxu0 %vm2230_vm6, %v2608_v55 }
 0x5b1   :  { %4764 = vmatmul.mubr.msk.f32.gmra.mrb[90].mxu0 %vm2230_vm6, %v2609_v17 }
 0x5b2   :  { %4766 = vmatprep.mubr.msk.f32.mxu0 %vm2230_vm6, %v2610_v31 }
 0x5b5   :  { %4767 = vmatmul.mubr.msk.f32.gmra.mrb[92].mxu0 %vm2230_vm6, %v2611_v37 }
 0x5b6   :  { %4769 = vmatprep.mubr.msk.f32.mxu0 %vm2230_vm6, %v2612_v41 }
 0x5b9   :  { %4770 = vmatmul.mubr.msk.f32.gmra.mrb[94].mxu0 %vm2230_vm6, %v2613_v42 }
 0x5ba   :  { %4791 = vmatprep.mubr.msk.f32.mxu0 %vm5063_vm1, %v6148_v9 }
 0x638   :  { %v4729_v58 = vpop.f32.mrb[66].mxu0 }
 0x639   :  { %v2938_v59 = vmul.f32 %v4729_v58, %v5490_v20  ;;  %v2778_v60 = vpop.f32.mrb[67].mxu0 }
 0x63a   :  { %v2937_v0 = vmul.f32 %v2778_v60, %v5487_v16 }
 0x63b   :  { %v2970_v2 = vsel %vm2078_vm3, %v2938_v59, 0.0  ;;  %v6150_v59 = vld [vmem:[#allocation13_spill] sm:$0xff] }
 0x63c   :  { %v2969_v3 = vsel %vm2078_vm3, %v2937_v0, 0.0 }
 0x63d   :  { %v2971_v10 = vadd.f32 %v2970_v2, %v2969_v3 }
 0x640   :  { %v4732_v13 = vpop.f32.mrb[68].mxu0 }
 0x641   :  { %v2940_v14 = vmul.f32 %v4732_v13, %v5500_v33  ;;  %v2788_v22 = vpop.f32.mrb[69].mxu0 }
 0x642   :  { %v2939_v21 = vmul.f32 %v2788_v22, %v5496_v27 }
 0x643   :  { %v2974_v40 = vsel %vm2078_vm3, %v2940_v14, 0.0  ;;  %v6151_v14 = vld [vmem:[#allocation16_spill] sm:$0xff] }
 0x644   :  { %v2972_v24 = vsel %vm2078_vm3, %v2939_v21, 0.0 }
 0x645   :  { %v2973_v26 = vadd.f32 %v2972_v24, %v2971_v10  ;;  %v6152_v24 = vld [vmem:[#allocation15_spill] sm:$0xff] }
 0x647   :  { %v2975_v54 = vadd.f32 %v2974_v40, %v2973_v26 }
 0x648   :  { %v4735_v61 = vpop.f32.mrb[70].mxu0 }
 0x649   :  { %v2942_v6 = vmul.f32 %v4735_v61, %v5508_v45  ;;  %v2798_v19 = vpop.f32.mrb[71].mxu0 }
 0x64a   :  { %v2941_v28 = vmul.f32 %v2798_v19, %v5504_v39 }
 0x64b   :  { %v2978_v53 = vsel %vm2078_vm3, %v2942_v6, 0.0 }
 0x64c   :  { %v2976_v36 = vsel %vm2078_vm3, %v2941_v28, 0.0  ;;  %v6153_v28 = vld [vmem:[#allocation18_spill] sm:$0xff] }
 0x64d   :  { %v2977_v44 = vadd.f32 %v2976_v36, %v2975_v54 }
 0x64f   :  { %v2979_v62 = vadd.f32 %v2978_v53, %v2977_v44 }
 0x650   :  { %v4738_v11 = vpop.f32.mrb[72].mxu0 }
 0x651   :  { %v2944_v23 = vmul.f32 %v4738_v11, %v5516_v57  ;;  %v2808_v43 = vpop.f32.mrb[73].mxu0 }
 0x652   :  { %v2943_v55 = vmul.f32 %v2808_v43, %v5512_v51 }
 0x653   :  { %v2982_v29 = vsel %vm2078_vm3, %v2944_v23, 0.0 }
 0x654   :  { %v2980_v1 = vsel %vm2078_vm3, %v2943_v55, 0.0  ;;  %v6155_v55 = vld [vmem:[#allocation33_spill] sm:$0xff] }
 0x655   :  { %v2981_v17 = vadd.f32 %v2980_v1, %v2979_v62  ;;  %v6154_v62 = vld [vmem:[#allocation17_spill] sm:$0xff] }
 0x657   :  { %v2983_v31 = vadd.f32 %v2982_v29, %v2981_v17 }
 0x658   :  { %v4741_v35 = vpop.f32.mrb[74].mxu0 }
 0x659   :  { %v2946_v37 = vmul.f32 %v4741_v35, %v5524_v7  ;;  %v2818_v38 = vpop.f32.mrb[75].mxu0  ;;  %v6156_v35 = vld [vmem:[#allocation20_spill] sm:$0xff] }
 0x65a   :  { %v2945_v41 = vmul.f32 %v2818_v38, %v5520_v63 }
 0x65b   :  { %v2986_v49 = vsel %vm2078_vm3, %v2946_v37, 0.0 }
 0x65c   :  { %v2984_v46 = vsel %vm2078_vm3, %v2945_v41, 0.0 }
 0x65d   :  { %v2985_v42 = vadd.f32 %v2984_v46, %v2983_v31  ;;  %v6157_v46 = vld [vmem:[#allocation19_spill] sm:$0xff] }
 0x65f   :  { %v2987_v50 = vadd.f32 %v2986_v49, %v2985_v42 }
 0x660   :  { %v4744_v52 = vpop.f32.mrb[76].mxu0 }
 0x661   :  { %v2948_v56 = vmul.f32 %v4744_v52, %v5532_v25  ;;  %v2828_v58 = vpop.f32.mrb[77].mxu0 }
 0x662   :  { %v2947_v60 = vmul.f32 %v2828_v58, %v6150_v59  ;;  %v6158_v58 = vld [vmem:[#allocation22_spill] sm:$0xff] }
 0x663   :  { %v2990_v3 = vsel %vm2078_vm3, %v2948_v56, 0.0 }
 0x664   :  { %v2988_v0 = vsel %vm2078_vm3, %v2947_v60, 0.0 }
 0x665   :  { %v2989_v2 = vadd.f32 %v2988_v0, %v2987_v50 }
 0x667   :  { %v2991_v10 = vadd.f32 %v2990_v3, %v2989_v2  ;;  %v6159_v3 = vld [vmem:[#allocation21_spill] sm:$0xff] }
 0x668   :  { %v4747_v13 = vpop.f32.mrb[78].mxu0 }
 0x669   :  { %v2950_v22 = vmul.f32 %v4747_v13, %v6151_v14  ;;  %v2838_v21 = vpop.f32.mrb[79].mxu0 }
 0x66a   :  { %v2949_v26 = vmul.f32 %v2838_v21, %v6152_v24 }
 0x66b   :  { %v2994_v61 = vsel %vm2078_vm3, %v2950_v22, 0.0 }
 0x66c   :  { %v2992_v40 = vsel %vm2078_vm3, %v2949_v26, 0.0 }
 0x66d   :  { %v2993_v54 = vadd.f32 %v2992_v40, %v2991_v10  ;;  %v6160_v40 = vld [vmem:[#allocation24_spill] sm:$0xff] }
 0x66f   :  { %v2995_v6 = vadd.f32 %v2994_v61, %v2993_v54 }
 0x670   :  { %v4750_v19 = vpop.f32.mrb[80].mxu0 }
 0x671   :  { %v2952_v36 = vmul.f32 %v4750_v19, %v6153_v28  ;;  %v2848_v44 = vpop.f32.mrb[81].mxu0  ;;  %v4774_v53 = vpop.f32.mrb[68].mxu1  ;;  %v6161_v19 = vld [vmem:[#allocation23_spill] sm:$0xff] }
 0x672   :  { %v2951_v11 = vmul.f32 %v2848_v44, %v6154_v62  ;;  %v5801_v23 = vmul.f32 %v4774_v53, %v5612_v30  ;;  %v2928_v43 = vpop.f32.mrb[69].mxu1 }
 0x673   :  { %v2967_v1 = vmul.f32 %v2928_v43, %v6155_v55  ;;  %v2998_v41 = vsel %vm2078_vm3, %v2952_v36, 0.0 }
 0x674   :  { %v2996_v17 = vsel %vm2078_vm3, %v2951_v11, 0.0  ;;  %v4753_v29 = vpop.f32.mrb[82].mxu0 }
 0x675   :  { %v2997_v31 = vadd.f32 %v2996_v17, %v2995_v6  ;;  %v2954_v37 = vmul.f32 %v4753_v29, %v6156_v35  ;;  %v2858_v38 = vpop.f32.mrb[83].mxu0  ;;  %v6162_v17 = vld [vmem:[#allocation26_spill] sm:$0xff] }
 0x676   :  { %v2953_v42 = vmul.f32 %v2858_v38, %v6157_v46  ;;  %v6163_v38 = vld [vmem:[#allocation25_spill] sm:$0xff] }
 0x677   :  { %v2999_v49 = vadd.f32 %v2998_v41, %v2997_v31  ;;  %v3002_v2 = vsel %vm2078_vm3, %v2954_v37, 0.0 }
 0x678   :  { %v3000_v50 = vsel %vm2078_vm3, %v2953_v42, 0.0  ;;  %v4756_v52 = vpop.f32.mrb[84].mxu0 }
 0x679   :  { %v3001_v56 = vadd.f32 %v3000_v50, %v2999_v49  ;;  %v2956_v60 = vmul.f32 %v4756_v52, %v6158_v58  ;;  %v2868_v0 = vpop.f32.mrb[85].mxu0 }
 0x67a   :  { %v2955_v10 = vmul.f32 %v2868_v0, %v6159_v3 }
 0x67b   :  { %v3003_v13 = vadd.f32 %v3002_v2, %v3001_v56  ;;  %v3006_v6 = vsel %vm2078_vm3, %v2956_v60, 0.0  ;;  %v6164_v56 = vld [vmem:[#allocation28_spill] sm:$0xff] }
 0x67c   :  { %v3004_v22 = vsel %vm2078_vm3, %v2955_v10, 0.0  ;;  %v4759_v21 = vpop.f32.mrb[86].mxu0  ;;  %v6165_v10 = vld [vmem:[#allocation27_spill] sm:$0xff] }
 0x67d   :  { %v3005_v26 = vadd.f32 %v3004_v22, %v3003_v13  ;;  %v2958_v54 = vmul.f32 %v4759_v21, %v6160_v40  ;;  %v2878_v61 = vpop.f32.mrb[87].mxu0 }
 0x67e   :  { %v2957_v36 = vmul.f32 %v2878_v61, %v6161_v19 }
 0x67f   :  { %v3007_v44 = vadd.f32 %v3006_v6, %v3005_v26  ;;  %v3010_v37 = vsel %vm2078_vm3, %v2958_v54, 0.0  ;;  %v6166_v54 = vld [vmem:[#allocation30_spill] sm:$0xff] }
 0x680   :  { %v3008_v53 = vsel %vm2078_vm3, %v2957_v36, 0.0  ;;  %v4762_v11 = vpop.f32.mrb[88].mxu0 }
 0x681   :  { %v3009_v43 = vadd.f32 %v3008_v53, %v3007_v44  ;;  %v2960_v29 = vmul.f32 %v4762_v11, %v6162_v17  ;;  %v2888_v31 = vpop.f32.mrb[89].mxu0  ;;  %v6167_v53 = vld [vmem:[#allocation29_spill] sm:$0xff] }
 0x682   :  { %v2959_v41 = vmul.f32 %v2888_v31, %v6163_v38 }
 0x683   :  { %v3011_v42 = vadd.f32 %v3010_v37, %v3009_v43  ;;  %v3014_v2 = vsel %vm2078_vm3, %v2960_v29, 0.0  ;;  %v6168_v29 = vld [vmem:[#allocation32_spill] sm:$0xff] }
 0x684   :  { %v3012_v49 = vsel %vm2078_vm3, %v2959_v41, 0.0  ;;  %v4765_v50 = vpop.f32.mrb[90].mxu0 }
 0x685   :  { %v3013_v52 = vadd.f32 %v3012_v49, %v3011_v42  ;;  %v2962_v60 = vmul.f32 %v4765_v50, %v6164_v56  ;;  %v2898_v0 = vpop.f32.mrb[91].mxu0 }
 0x686   :  { %v2961_v13 = vmul.f32 %v2898_v0, %v6165_v10 }
 0x687   :  { %v3015_v22 = vadd.f32 %v3014_v2, %v3013_v52  ;;  %v3018_v44 = vsel %vm2078_vm3, %v2962_v60, 0.0  ;;  %v6169_v52 = vld [vmem:[#allocation31_spill] sm:$0xff] }
 0x688   :  { %v3016_v21 = vsel %vm2078_vm3, %v2961_v13, 0.0  ;;  %v4768_v26 = vpop.f32.mrb[92].mxu0 }
 0x689   :  { %v3017_v61 = vadd.f32 %v3016_v21, %v3015_v22  ;;  %v2964_v6 = vmul.f32 %v4768_v26, %v6166_v54  ;;  %v2908_v36 = vpop.f32.mrb[93].mxu0  ;;  %v3028_v26 = vsel %vm2078_vm3, %v2967_v1, 0.0 }
 0x68a   :  { %v2963_v11 = vmul.f32 %v2908_v36, %v6167_v53  ;;  %v3030_v36 = vsel %vm2078_vm3, %v5801_v23, 0.0 }
 0x68b   :  { %v3019_v43 = vadd.f32 %v3018_v44, %v3017_v61  ;;  %v3022_v50 = vsel %vm2078_vm3, %v2964_v6, 0.0 }
 0x68c   :  { %v3020_v31 = vsel %vm2078_vm3, %v2963_v11, 0.0  ;;  %v4771_v37 = vpop.f32.mrb[94].mxu0 }
 0x68d   :  { %v3021_v41 = vadd.f32 %v3020_v31, %v3019_v43  ;;  %v2966_v42 = vmul.f32 %v4771_v37, %v6168_v29  ;;  %v2918_v49 = vpop.f32.mrb[95].mxu0 }
 0x68e   :  { %v2965_v0 = vmul.f32 %v2918_v49, %v6169_v52 }
 0x68f   :  { %v3023_v2 = vadd.f32 %v3022_v50, %v3021_v41  ;;  %v3026_v60 = vsel %vm2078_vm3, %v2966_v42, 0.0 }
 0x690   :  { %v3024_v13 = vsel %vm2078_vm3, %v2965_v0, 0.0 }
 0x691   :  { %v3025_v22 = vadd.f32 %v3024_v13, %v3023_v2 }
 0x693   :  { %v3027_v21 = vadd.f32 %v3026_v60, %v3025_v22 }
 0x695   :  { %v3029_v61 = vadd.f32 %v3028_v26, %v3027_v21 }
 0x697   :  { %v3031_v44 = vadd.f32 %v3030_v36, %v3029_v61 }
 0x699   :  { %v3033_v11 = vmul.f32 %v3031_v44, %v3031_v44 }
 0x69b   :  { %4792 = vmatmul.mubr.msk.f32.vlgmr.msra.gmra.mrb[96].mxu0 %vm2078_vm3, %v3033_v11 }
 0x69c   :  { %4800 = vmatpush3.msk.msra.mxu0 %vm112_vm0, %v5620_v48 }
 0x69d   :  { %4993 = vmatprep.subr.bf16.mxu0 %v6149_v18 }
 0x76e   :  { %v3103_v6 = vpop.f32.mrb[96].mxu0 }
 0x76f   :  { %5024 = vrsqrt.f32 %v3103_v6  ;;  %v4793_v43 = vpop.f32.mrb[97].mxu0  ;;  %vm3110_vm8 = vcmp.eq.f32.partialorder %v3103_v6, inf  ;;  %v3113_v1 = vand.u32 2147483648, %v3103_v6  ;;  %vm3112_vm9 = vcmp.eq.f32.partialorder %v3103_v6, 0.0 }
 0x770   :  { %v3107_v23 = vadd.f32 1.0, %v3103_v6 }
 0x779   :  { %v5025_v31 = vpop.eup %5024 }
 0x77a   :  { %v3109_v37 = vmul.f32 %v5025_v31, %v3103_v6 }
 0x77c   :  { %v3111_v41 = vsel %vm3110_vm8, %v3103_v6, %v3109_v37 }
 0x77d   :  { %v3114_v42 = vsel %vm3112_vm9, %v3113_v1, %v3111_v41 }
 0x77e   :  { %v3115_v49 = vadd.f32 1e-08, %v3114_v42 }
 0x780   :  { %v3116_v50 = vmul.f32 %v3115_v49, %v3107_v23 }
 0x782   :  { %5026 = vrcp.f32 %v3116_v50 }
 0x78c   :  { %v5027_v0 = vpop.eup %5026 }
 0x78d   :  { %v3118_v2 = vmul.f32 %v5027_v0, %v3103_v6 }
 0x78f   :  { %4797 = vmatmul.mubr.msk.f32.vlgmr.msra.gmra.mrb[70].mxu1 %vm2230_vm6, %v3118_v2 }
 0x790   :  { %4463 = vmatprep.mubr.msk.f32.mxu1 %vm2078_vm3, %v5620_v48 }
 0x862   :  { %v3188_v13 = vpop.f32.mrb[70].mxu1 }
 0x863   :  { %v3192_v22 = vmul.f32 %v3188_v13, %v3031_v44  ;;  %v4798_v60 = vpop.f32.mrb[71].mxu1 }
 0x865   :  { %v3193_v21 = vmul.f32 %v3192_v22, %v5487_v16  ;;  %v3194_v26 = vmul.f32 %v3192_v22, %v5490_v20  ;;  %v3195_v61 = vmul.f32 %v3192_v22, %v5496_v27  ;;  %v3196_v36 = vmul.f32 %v3192_v22, %v5500_v33 }
 0x866   :  { %v3197_v11 = vmul.f32 %v3192_v22, %v5504_v39  ;;  %v3198_v6 = vmul.f32 %v3192_v22, %v5508_v45  ;;  %v3199_v43 = vmul.f32 %v3192_v22, %v5512_v51  ;;  %v3200_v31 = vmul.f32 %v3192_v22, %v5516_v57 }
 0x867   :  { %v3201_v37 = vmul.f32 %v3192_v22, %v5520_v63  ;;  %v3202_v44 = vmul.f32 %v3192_v22, %v5524_v7  ;;  %v3203_v1 = vmul.f32 %v3192_v22, %v6150_v59  ;;  %v3204_v41 = vmul.f32 %v3192_v22, %v5532_v25 }
 0x868   :  { %v3205_v42 = vmul.f32 %v3192_v22, %v6152_v24  ;;  %v3206_v23 = vmul.f32 %v3192_v22, %v6151_v14  ;;  %v3207_v49 = vmul.f32 %v3192_v22, %v6154_v62  ;;  %v3208_v50 = vmul.f32 %v3192_v22, %v6153_v28 }
 0x869   :  { %v3209_v0 = vmul.f32 %v3192_v22, %v6157_v46  ;;  %v3210_v2 = vmul.f32 %v3192_v22, %v6156_v35  ;;  %v3211_v13 = vmul.f32 %v3192_v22, %v6159_v3  ;;  %v3212_v60 = vmul.f32 %v3192_v22, %v6158_v58 }
 0x86a   :  { %v3213_v47 = vmul.f32 %v3192_v22, %v6161_v19  ;;  %v3214_v59 = vmul.f32 %v3192_v22, %v6160_v40  ;;  %v3215_v24 = vmul.f32 %v3192_v22, %v6163_v38  ;;  %v3216_v14 = vmul.f32 %v3192_v22, %v6162_v17 }
 0x86b   :  { %v3217_v62 = vmul.f32 %v3192_v22, %v6165_v10  ;;  %v3218_v28 = vmul.f32 %v3192_v22, %v6164_v56  ;;  %v3219_v46 = vmul.f32 %v3192_v22, %v6167_v53  ;;  %v3220_v35 = vmul.f32 %v3192_v22, %v6166_v54 }
 0x86c   :  { %v3221_v3 = vmul.f32 %v3192_v22, %v6169_v52  ;;  %v3222_v58 = vmul.f32 %v3192_v22, %v6168_v29  ;;  %v3223_v19 = vmul.f32 %v3192_v22, %v6155_v55  ;;  %v3224_v40 = vmul.f32 %v3192_v22, %v5612_v30 }
 0x86d   :  { %v4948_v25 = vpack.c.bf16 %v3194_v26, %v3193_v21  ;;  %v4954_v38 = vpack.c.bf16 %v3196_v36, %v3195_v61  ;;  %v4960_v63 = vpack.c.bf16 %v3198_v6, %v3197_v11  ;;  %v4966_v17 = vpack.c.bf16 %v3200_v31, %v3199_v43 }
 0x86e   :  { %v4972_v7 = vpack.c.bf16 %v3202_v44, %v3201_v37  ;;  %v4978_v10 = vpack.c.bf16 %v3204_v41, %v3203_v1  ;;  %v4984_v51 = vpack.c.bf16 %v3206_v23, %v3205_v42  ;;  %v4990_v56 = vpack.c.bf16 %v3208_v50, %v3207_v49 }
 0x86f   :  { %v4945_v57 = vpack.c.bf16 %v3210_v2, %v3209_v0  ;;  %v4951_v53 = vpack.c.bf16 %v3212_v60, %v3211_v13  ;;  %v4957_v39 = vpack.c.bf16 %v3214_v59, %v3213_v47  ;;  %v4963_v54 = vpack.c.bf16 %v3216_v14, %v3215_v24 }
 0x870   :  { %v4969_v45 = vpack.c.bf16 %v3218_v28, %v3217_v62  ;;  %v4975_v52 = vpack.c.bf16 %v3220_v35, %v3219_v46  ;;  %v4981_v27 = vpack.c.bf16 %v3222_v58, %v3221_v3  ;;  %v4987_v29 = vpack.c.bf16 %v3224_v40, %v3223_v19 }
 0x871   :  { %4947 = vmatprep.subr.msk.bf16.mxu1 %vm5666_vm7, %v4945_v57 }
 0x872   :  { %4950 = vmatpush3.bf16.xpose.msk.msra.mxu1 %vm5666_vm7, %v4948_v25 }
 0x873   :  { %4953 = vmatprep.subr.msk.bf16.mxu1 %vm5666_vm7, %v4951_v53 }
 0x87a   :  { %4956 = vmatpush3.bf16.xpose.msk.msra.mxu1 %vm5666_vm7, %v4954_v38 }
 0x87b   :  { %4959 = vmatprep.subr.msk.bf16.mxu1 %vm5666_vm7, %v4957_v39 }
 0x882   :  { %4962 = vmatpush3.bf16.xpose.msk.msra.mxu1 %vm5666_vm7, %v4960_v63 }
 0x883   :  { %4965 = vmatprep.subr.msk.bf16.mxu1 %vm5666_vm7, %v4963_v54 }
 0x88a   :  { %4968 = vmatpush3.bf16.xpose.msk.msra.mxu1 %vm5666_vm7, %v4966_v17 }
 0x88b   :  { %4971 = vmatprep.subr.msk.bf16.mxu1 %vm5666_vm7, %v4969_v45 }
 0x892   :  { %4974 = vmatpush3.bf16.xpose.msk.msra.mxu1 %vm5666_vm7, %v4972_v7 }
 0x893   :  { %4977 = vmatprep.subr.msk.bf16.mxu1 %vm5666_vm7, %v4975_v52 }
 0x89a   :  { %4980 = vmatpush3.bf16.xpose.msk.msra.mxu1 %vm5666_vm7, %v4978_v10 }
 0x89b   :  { %4983 = vmatprep.subr.msk.bf16.mxu1 %vm5666_vm7, %v4981_v27 }
 0x8a2   :  { %4986 = vmatpush3.bf16.xpose.msk.msra.mxu1 %vm5666_vm7, %v4984_v51  ;;  %v6170_v51 = vcombine.low %v5709_v5, %v5713_v32 }
 0x8a3   :  { %4989 = vmatprep.subr.msk.bf16.mxu1 %vm5666_vm7, %v4987_v29 }
 0x8aa   :  { %4992 = vmatpush3.bf16.xpose.msk.msra.mxu1 %vm5666_vm7, %v4990_v56 }
 0x8ab   :  { %4868 = vmatprep.subr.mxu1 %v6148_v9 }
 0x8b1   :  { %4464 = vmatmul.mubr.msk.f32.vlgmr.msra.gmra.mrb[72].mxu1 %vm2078_vm3, %v5620_v48 }
 0x8b2   :  { %4869 = vmatpush3.msk.msra.mxu1 %vm112_vm0, %v5620_v48  ;;  %4870 = vmatprep.mubr.msk.f32.mxu1 %vm5063_vm1, %v6148_v9 }
 0x984   :  { %v3387_v27 = vpop.f32.mrb[72].mxu1 }
 0x985   :  { %v3389_v39 = vpop.f32.mrb[73].mxu1 }
 0x986   :  { %v3395_v45 = vcombine.low %v3387_v27, %v3389_v39 }
 0x988   :  { %v3397_v57 = vadd.f32 %v3395_v45, %v6170_v51 }
 0x98a   :  { %v3399_v63 = vcombine.high %v3397_v57, %v3397_v57  ;;  %v3401_v7 = vsel %vm112_vm0, %v3397_v57, -inf }
 0x98b   :  { %v3402_v25 = vrot.slane %v3401_v7, 4 }
 0x98c   :  { %v3408_v34 = vsel %vm112_vm0, %v3399_v63, -inf }
 0x98d   :  { %v3403_v47 = vmax.f32 %v3401_v7, %v3402_v25  ;;  %v3409_v59 = vrot.slane %v3408_v34, 4 }
 0x98f   :  { %v3404_v14 = vrot.slane %v3403_v47, 2  ;;  %v3410_v48 = vmax.f32 %v3408_v34, %v3409_v59 }
 0x991   :  { %v3405_v24 = vmax.f32 %v3403_v47, %v3404_v14  ;;  %v3411_v28 = vrot.slane %v3410_v48, 2 }
 0x993   :  { %v3406_v62 = vrot.slane %v3405_v24, 1  ;;  %v3412_v35 = vmax.f32 %v3410_v48, %v3411_v28 }
 0x995   :  { %v3413_v46 = vrot.slane %v3412_v35, 1  ;;  %v3407_v58 = vmax.f32 %v3405_v24, %v3406_v62 }
 0x997   :  { %v3414_v3 = vmax.f32 %v3412_v35, %v3413_v46 }
 0x999   :  { %v3417_v40 = vcombine.low %v3407_v58, %v3414_v3 }
 0x99b   :  { %v3419_v5 = vsub.f32 %v3397_v57, %v3417_v40 }
 0x99d   :  { %v3420_v32 = vmul.f32 1.442695, %v3419_v5 }
 0x99f   :  { %5028 = vpow2.f32 %v3420_v32 }
 0x9a9   :  { %v5029_v19 = vpop.eup %5028 }
 0x9aa   :  { %v3423_v17 = vcombine.high %v5029_v19, %v5029_v19  ;;  %v3425_v38 = vsel %vm112_vm0, %v5029_v19, 0.0 }
 0x9ab   :  { %v3426_v56 = vrot.slane %v3425_v38, 4 }
 0x9ac   :  { %v3432_v10 = vsel %vm112_vm0, %v3423_v17, 0.0 }
 0x9ad   :  { %v3427_v54 = vadd.f32 %v3426_v56, %v3425_v38  ;;  %v3433_v53 = vrot.slane %v3432_v10, 4 }
 0x9af   :  { %v3428_v29 = vrot.slane %v3427_v54, 2  ;;  %v3434_v52 = vadd.f32 %v3433_v53, %v3432_v10 }
 0x9b1   :  { %v3429_v22 = vadd.f32 %v3428_v29, %v3427_v54  ;;  %v3435_v21 = vrot.slane %v3434_v52, 2  ;;  %v6171_v54 = vld [vmem:[#allocation6_spill] sm:$0xff] }
 0x9b3   :  { %v3430_v26 = vrot.slane %v3429_v22, 1  ;;  %v3436_v61 = vadd.f32 %v3435_v21, %v3434_v52  ;;  %v6172_v21 = vld [vmem:[#allocation8_spill] sm:$0xff] }
 0x9b5   :  { %v3431_v36 = vadd.f32 %v3430_v26, %v3429_v22  ;;  %v3437_v11 = vrot.slane %v3436_v61, 1 }
 0x9b7   :  { %v3438_v6 = vadd.f32 %v3437_v11, %v3436_v61  ;;  %5030 = vrcp.f32 %v3431_v36  ;;  %v6173_v61 = vld [vmem:[#allocation7_spill] sm:$0xff] }
 0x9b9   :  { %5032 = vrcp.f32 %v3438_v6 }
 0x9c1   :  { %v5031_v43 = vpop.eup %5030 }
 0x9c3   :  { %v5033_v31 = vpop.eup %5032 }
 0x9c4   :  { %v3443_v37 = vcombine.low %v5031_v43, %v5033_v31 }
 0x9c6   :  { %v3445_v44 = vmul.f32 %v5029_v19, %v3443_v37  ;;  %v6174_v37 = vld [vmem:[#allocation10_spill] sm:$0xff] }
 0x9c8   :  { %3449 = vxpose.xlu0.b32.start.end [1/1] (short) %v3445_v44, 128  ;;  %v3447_v1 = vcombine.high %v3445_v44, %v3445_v44 }
 0x9ca   :  { %3481 = vxpose.xlu1.b32.start.end [1/1] (short) %v3447_v1, 128 }
 0xa48   :  { %v3465_v41 = vpop.trf.xlu0 }
 0xa49   :  { %4801 = vmatprep.mubr.msk.f32.mxu0 %vm2230_vm6, %v3465_v41  ;;  %v6175_v41 = vld [vmem:[#allocation9_spill] sm:$0xff] }
 0xa4a   :  { %v3497_v42 = vpop.trf.xlu1 }
 0xa4c   :  { %v3466_v23 = vpop.trf.xlu0 }
 0xa4d   :  { %4802 = vmatmul.mubr.msk.f32.vlgmr.msra.gmra.mrb[98].mxu0 %vm2230_vm6, %v3466_v23 }
 0xa4e   :  { %v3498_v49 = vpop.trf.xlu1  ;;  %4995 = vmatpush3.bf16.msra.mxu0 %v5454_v4 }
 0xa4f   :  { %4996 = vmatprep.subr.bf16.mxu0 %v6149_v18 }
 0xa50   :  { %v3467_v50 = vpop.trf.xlu0 }
 0xa51   :  { %4804 = vmatprep.mubr.msk.f32.mxu0 %vm2230_vm6, %v3467_v50 }
 0xa52   :  { %4998 = vmatpush3.bf16.msra.mxu0 %v5465_v8  ;;  %v3499_v2 = vpop.trf.xlu1 }
 0xa53   :  { %4999 = vmatprep.subr.bf16.mxu0 %v6149_v18 }
 0xa54   :  { %v3468_v0 = vpop.trf.xlu0 }
 0xa55   :  { %4805 = vmatmul.mubr.msk.f32.gmra.mrb[100].mxu0 %vm2230_vm6, %v3468_v0 }
 0xa56   :  { %5001 = vmatpush3.bf16.msra.mxu0 %v5475_v12  ;;  %v3500_v4 = vpop.trf.xlu1 }
 0xa57   :  { %5002 = vmatprep.subr.bf16.mxu0 %v6149_v18 }
 0xa58   :  { %v3469_v13 = vpop.trf.xlu0 }
 0xa59   :  { %4807 = vmatprep.mubr.msk.f32.mxu0 %vm2230_vm6, %v3469_v13  ;;  %v6176_v13 = vld [vmem:[#allocation12_spill] sm:$0xff] }
 0xa5a   :  { %5004 = vmatpush3.bf16.msra.mxu0 %v5485_v15  ;;  %v3501_v27 = vpop.trf.xlu1 }
 0xa5c   :  { %v3470_v60 = vpop.trf.xlu0 }
 0xa5d   :  { %4808 = vmatmul.mubr.msk.f32.gmra.mrb[102].mxu0 %vm2230_vm6, %v3470_v60 }
 0xa5e   :  { %v3502_v45 = vpop.trf.xlu1 }
 0xa60   :  { %v3471_v8 = vpop.trf.xlu0 }
 0xa61   :  { %4810 = vmatprep.mubr.msk.f32.mxu0 %vm2230_vm6, %v3471_v8  ;;  %v6177_v8 = vld [vmem:[#allocation11_spill] sm:$0xff] }
 0xa62   :  { %v3503_v51 = vpop.trf.xlu1 }
 0xa64   :  { %v3472_v39 = vpop.trf.xlu0 }
 0xa65   :  { %4811 = vmatmul.mubr.msk.f32.gmra.mrb[104].mxu0 %vm2230_vm6, %v3472_v39 }
 0xa66   :  { %v3504_v15 = vpop.trf.xlu1 }
 0xa68   :  { %v3473_v12 = vpop.trf.xlu0 }
 0xa69   :  { %4813 = vmatprep.mubr.msk.f32.mxu0 %vm2230_vm6, %v3473_v12 }
 0xa6a   :  { %v3505_v25 = vpop.trf.xlu1 }
 0xa6c   :  { %v3474_v18 = vpop.trf.xlu0 }
 0xa6d   :  { %4814 = vmatmul.mubr.msk.f32.gmra.mrb[106].mxu0 %vm2230_vm6, %v3474_v18 }
 0xa6e   :  { %v3506_v47 = vpop.trf.xlu1 }
 0xa70   :  { %v3475_v57 = vpop.trf.xlu0 }
 0xa71   :  { %4816 = vmatprep.mubr.msk.f32.mxu0 %vm2230_vm6, %v3475_v57  ;;  %v6178_v57 = vld [vmem:[#allocation14_spill] sm:$0xff] }
 0xa72   :  { %v3507_v48 = vpop.trf.xlu1 }
 0xa74   :  { %v3476_v63 = vpop.trf.xlu0 }
 0xa75   :  { %4817 = vmatmul.mubr.msk.f32.gmra.mrb[108].mxu0 %vm2230_vm6, %v3476_v63 }
 0xa76   :  { %v3508_v24 = vpop.trf.xlu1 }
 0xa78   :  { %v3477_v7 = vpop.trf.xlu0 }
 0xa79   :  { %4819 = vmatprep.mubr.msk.f32.mxu0 %vm2230_vm6, %v3477_v7  ;;  %v6179_v7 = vld [vmem:[#allocation13_spill] sm:$0xff] }
 0xa7a   :  { %v3509_v28 = vpop.trf.xlu1 }
 0xa7c   :  { %v3478_v34 = vpop.trf.xlu0 }
 0xa7d   :  { %4820 = vmatmul.mubr.msk.f32.gmra.mrb[110].mxu0 %vm2230_vm6, %v3478_v34 }
 0xa7e   :  { %v3510_v62 = vpop.trf.xlu1 }
 0xa80   :  { %v3479_v59 = vpop.trf.xlu0 }
 0xa81   :  { %4822 = vmatprep.mubr.msk.f32.mxu0 %vm2230_vm6, %v3479_v59 }
 0xa82   :  { %v3511_v35 = vpop.trf.xlu1 }
 0xa84   :  { %v3480_v14 = vpop.trf.xlu0 }
 0xa85   :  { %4823 = vmatmul.mubr.msk.f32.gmra.mrb[112].mxu0 %vm2230_vm6, %v3480_v14 }
 0xa86   :  { %4825 = vmatprep.mubr.msk.f32.mxu0 %vm2230_vm6, %v3497_v42  ;;  %v3512_v46 = vpop.trf.xlu1 }
 0xa89   :  { %4826 = vmatmul.mubr.msk.f32.gmra.mrb[114].mxu0 %vm2230_vm6, %v3498_v49 }
 0xa8a   :  { %4828 = vmatprep.mubr.msk.f32.mxu0 %vm2230_vm6, %v3499_v2 }
 0xa8d   :  { %4829 = vmatmul.mubr.msk.f32.gmra.mrb[116].mxu0 %vm2230_vm6, %v3500_v4 }
 0xa8e   :  { %4831 = vmatprep.mubr.msk.f32.mxu0 %vm2230_vm6, %v3501_v27 }
 0xa91   :  { %4832 = vmatmul.mubr.msk.f32.gmra.mrb[118].mxu0 %vm2230_vm6, %v3502_v45 }
 0xa92   :  { %4834 = vmatprep.mubr.msk.f32.mxu0 %vm2230_vm6, %v3503_v51 }
 0xa95   :  { %4835 = vmatmul.mubr.msk.f32.gmra.mrb[120].mxu0 %vm2230_vm6, %v3504_v15 }
 0xa96   :  { %4837 = vmatprep.mubr.msk.f32.mxu0 %vm2230_vm6, %v3505_v25 }
 0xa99   :  { %4838 = vmatmul.mubr.msk.f32.gmra.mrb[122].mxu0 %vm2230_vm6, %v3506_v47 }
 0xa9a   :  { %4840 = vmatprep.mubr.msk.f32.mxu0 %vm2230_vm6, %v3507_v48 }
 0xa9d   :  { %4841 = vmatmul.mubr.msk.f32.gmra.mrb[124].mxu0 %vm2230_vm6, %v3508_v24  ;;  %v6180_v24 = vld [vmem:[#allocation16_spill] sm:$0xff] }
 0xa9e   :  { %4843 = vmatprep.mubr.msk.f32.mxu0 %vm2230_vm6, %v3509_v28 }
 0xaa1   :  { %4844 = vmatmul.mubr.msk.f32.gmra.mrb[126].mxu0 %vm2230_vm6, %v3510_v62 }
 0xaa2   :  { %4846 = vmatprep.mubr.msk.f32.mxu0 %vm2230_vm6, %v3511_v35  ;;  %v6181_v35 = vld [vmem:[#allocation15_spill] sm:$0xff] }
 0xaa5   :  { %4847 = vmatmul.mubr.msk.f32.gmra.mrb[128].mxu0 %vm2230_vm6, %v3512_v46 }
 0xaa6   :  { %4865 = vmatprep.mubr.msk.f32.mxu0 %vm5063_vm1, %v6148_v9 }
 0xb20   :  { %v4803_v58 = vpop.f32.mrb[98].mxu0 }
 0xb21   :  { %v3835_v3 = vmul.f32 %v4803_v58, %v5490_v20  ;;  %v3675_v40 = vpop.f32.mrb[99].mxu0 }
 0xb22   :  { %v3834_v5 = vmul.f32 %v3675_v40, %v5487_v16 }
 0xb23   :  { %v3867_v32 = vsel %vm2078_vm3, %v3835_v3, 0.0 }
 0xb24   :  { %v3866_v19 = vsel %vm2078_vm3, %v3834_v5, 0.0 }
 0xb25   :  { %v3868_v17 = vadd.f32 %v3867_v32, %v3866_v19  ;;  %v6182_v19 = vld [vmem:[#allocation18_spill] sm:$0xff] }
 0xb28   :  { %v4806_v38 = vpop.f32.mrb[100].mxu0 }
 0xb29   :  { %v3837_v56 = vmul.f32 %v4806_v38, %v5500_v33  ;;  %v3685_v10 = vpop.f32.mrb[101].mxu0 }
 0xb2a   :  { %v3836_v53 = vmul.f32 %v3685_v10, %v6171_v54 }
 0xb2b   :  { %v3871_v52 = vsel %vm2078_vm3, %v3837_v56, 0.0  ;;  %v6183_v56 = vld [vmem:[#allocation17_spill] sm:$0xff] }
 0xb2c   :  { %v3869_v29 = vsel %vm2078_vm3, %v3836_v53, 0.0 }
 0xb2d   :  { %v3870_v9 = vadd.f32 %v3869_v29, %v3868_v17 }
 0xb2f   :  { %v3872_v20 = vadd.f32 %v3871_v52, %v3870_v9  ;;  %v6184_v9 = vld [vmem:[#allocation20_spill] sm:$0xff] }
 0xb30   :  { %v4809_v22 = vpop.f32.mrb[102].mxu0 }
 0xb31   :  { %v3839_v16 = vmul.f32 %v4809_v22, %v6172_v21  ;;  %v3695_v26 = vpop.f32.mrb[103].mxu0  ;;  %v6185_v21 = vld [vmem:[#allocation19_spill] sm:$0xff] }
 0xb32   :  { %v3838_v36 = vmul.f32 %v3695_v26, %v6173_v61 }
 0xb33   :  { %v3875_v33 = vsel %vm2078_vm3, %v3839_v16, 0.0 }
 0xb34   :  { %v3873_v11 = vsel %vm2078_vm3, %v3838_v36, 0.0 }
 0xb35   :  { %v3874_v6 = vadd.f32 %v3873_v11, %v3872_v20 }
 0xb37   :  { %v3876_v43 = vadd.f32 %v3875_v33, %v3874_v6  ;;  %v6186_v6 = vld [vmem:[#allocation22_spill] sm:$0xff] }
 0xb38   :  { %v4812_v31 = vpop.f32.mrb[104].mxu0 }
 0xb39   :  { %v3841_v44 = vmul.f32 %v4812_v31, %v6174_v37  ;;  %v3705_v1 = vpop.f32.mrb[105].mxu0  ;;  %v6187_v37 = vld [vmem:[#allocation21_spill] sm:$0xff] }
 0xb3a   :  { %v3840_v42 = vmul.f32 %v3705_v1, %v6175_v41 }
 0xb3b   :  { %v3879_v50 = vsel %vm2078_vm3, %v3841_v44, 0.0 }
 0xb3c   :  { %v3877_v23 = vsel %vm2078_vm3, %v3840_v42, 0.0 }
 0xb3d   :  { %v3878_v49 = vadd.f32 %v3877_v23, %v3876_v43 }
 0xb3f   :  { %v3880_v0 = vadd.f32 %v3879_v50, %v3878_v49  ;;  %v6188_v49 = vld [vmem:[#allocation24_spill] sm:$0xff] }
 0xb40   :  { %v4815_v2 = vpop.f32.mrb[106].mxu0 }
 0xb41   :  { %v3843_v4 = vmul.f32 %v4815_v2, %v6176_v13  ;;  %v3715_v60 = vpop.f32.mrb[107].mxu0  ;;  %v6189_v13 = vld [vmem:[#allocation23_spill] sm:$0xff] }
 0xb42   :  { %v3842_v27 = vmul.f32 %v3715_v60, %v6177_v8 }
 0xb43   :  { %v3883_v12 = vsel %vm2078_vm3, %v3843_v4, 0.0 }
 0xb44   :  { %v3881_v39 = vsel %vm2078_vm3, %v3842_v27, 0.0 }
 0xb45   :  { %v3882_v45 = vadd.f32 %v3881_v39, %v3880_v0 }
 0xb47   :  { %v3884_v18 = vadd.f32 %v3883_v12, %v3882_v45  ;;  %v6190_v45 = vld [vmem:[#allocation26_spill] sm:$0xff] }
 0xb48   :  { %v4818_v51 = vpop.f32.mrb[108].mxu0 }
 0xb49   :  { %v3845_v15 = vmul.f32 %v4818_v51, %v6178_v57  ;;  %v3725_v63 = vpop.f32.mrb[109].mxu0  ;;  %v6191_v57 = vld [vmem:[#allocation25_spill] sm:$0xff] }
 0xb4a   :  { %v3844_v25 = vmul.f32 %v3725_v63, %v6179_v7 }
 0xb4b   :  { %v3887_v59 = vsel %vm2078_vm3, %v3845_v15, 0.0 }
 0xb4c   :  { %v3885_v34 = vsel %vm2078_vm3, %v3844_v25, 0.0 }
 0xb4d   :  { %v3886_v47 = vadd.f32 %v3885_v34, %v3884_v18 }
 0xb4f   :  { %v3888_v14 = vadd.f32 %v3887_v59, %v3886_v47  ;;  %v6192_v47 = vld [vmem:[#allocation28_spill] sm:$0xff] }
 0xb50   :  { %v4821_v48 = vpop.f32.mrb[110].mxu0 }
 0xb51   :  { %v3847_v28 = vmul.f32 %v4821_v48, %v6180_v24  ;;  %v3735_v62 = vpop.f32.mrb[111].mxu0  ;;  %v6193_v24 = vld [vmem:[#allocation27_spill] sm:$0xff] }
 0xb52   :  { %v3846_v46 = vmul.f32 %v3735_v62, %v6181_v35 }
 0xb53   :  { %v3891_v40 = vsel %vm2078_vm3, %v3847_v28, 0.0 }
 0xb54   :  { %v3889_v58 = vsel %vm2078_vm3, %v3846_v46, 0.0 }
 0xb55   :  { %v3890_v3 = vadd.f32 %v3889_v58, %v3888_v14 }
 0xb57   :  { %v3892_v5 = vadd.f32 %v3891_v40, %v3890_v3  ;;  %v6194_v3 = vld [vmem:[#allocation30_spill] sm:$0xff] }
 0xb58   :  { %v4824_v32 = vpop.f32.mrb[112].mxu0 }
 0xb59   :  { %v3849_v17 = vmul.f32 %v4824_v32, %v6182_v19  ;;  %v3745_v38 = vpop.f32.mrb[113].mxu0  ;;  %v6195_v19 = vld [vmem:[#allocation29_spill] sm:$0xff] }
 0xb5a   :  { %v3848_v10 = vmul.f32 %v3745_v38, %v6183_v56 }
 0xb5b   :  { %v3895_v22 = vsel %vm2078_vm3, %v3849_v17, 0.0 }
 0xb5c   :  { %v3893_v54 = vsel %vm2078_vm3, %v3848_v10, 0.0  ;;  %v4827_v53 = vpop.f32.mrb[114].mxu0 }
 0xb5d   :  { %v3894_v29 = vadd.f32 %v3893_v54, %v3892_v5  ;;  %v3851_v52 = vmul.f32 %v4827_v53, %v6184_v9  ;;  %v3755_v20 = vpop.f32.mrb[115].mxu0  ;;  %v6196_v53 = vld [vmem:[#allocation32_spill] sm:$0xff] }
 0xb5e   :  { %v3850_v16 = vmul.f32 %v3755_v20, %v6185_v21  ;;  %v6197_v20 = vld [vmem:[#allocation31_spill] sm:$0xff] }
 0xb5f   :  { %v3896_v26 = vadd.f32 %v3895_v22, %v3894_v29  ;;  %v3899_v31 = vsel %vm2078_vm3, %v3851_v52, 0.0 }
 0xb60   :  { %v3897_v61 = vsel %vm2078_vm3, %v3850_v16, 0.0  ;;  %v4830_v36 = vpop.f32.mrb[116].mxu0 }
 0xb61   :  { %v3898_v11 = vadd.f32 %v3897_v61, %v3896_v26  ;;  %v3853_v33 = vmul.f32 %v4830_v36, %v6186_v6  ;;  %v3765_v43 = vpop.f32.mrb[117].mxu0 }
 0xb62   :  { %v3852_v44 = vmul.f32 %v3765_v43, %v6187_v37 }
 0xb63   :  { %v3900_v1 = vadd.f32 %v3899_v31, %v3898_v11  ;;  %v3903_v2 = vsel %vm2078_vm3, %v3853_v33, 0.0 }
 0xb64   :  { %v3901_v41 = vsel %vm2078_vm3, %v3852_v44, 0.0  ;;  %v4833_v42 = vpop.f32.mrb[118].mxu0 }
 0xb65   :  { %v3902_v23 = vadd.f32 %v3901_v41, %v3900_v1  ;;  %v3855_v50 = vmul.f32 %v4833_v42, %v6188_v49  ;;  %v3775_v0 = vpop.f32.mrb[119].mxu0 }
 0xb66   :  { %v3854_v4 = vmul.f32 %v3775_v0, %v6189_v13 }
 0xb67   :  { %v3904_v60 = vadd.f32 %v3903_v2, %v3902_v23  ;;  %v3907_v51 = vsel %vm2078_vm3, %v3855_v50, 0.0 }
 0xb68   :  { %v3905_v8 = vsel %vm2078_vm3, %v3854_v4, 0.0  ;;  %v4836_v27 = vpop.f32.mrb[120].mxu0 }
 0xb69   :  { %v3906_v39 = vadd.f32 %v3905_v8, %v3904_v60  ;;  %v3857_v12 = vmul.f32 %v4836_v27, %v6190_v45  ;;  %v3785_v18 = vpop.f32.mrb[121].mxu0 }
 0xb6a   :  { %v3856_v15 = vmul.f32 %v3785_v18, %v6191_v57 }
 0xb6b   :  { %v3908_v63 = vadd.f32 %v3907_v51, %v3906_v39  ;;  %v3911_v48 = vsel %vm2078_vm3, %v3857_v12, 0.0 }
 0xb6c   :  { %v3909_v7 = vsel %vm2078_vm3, %v3856_v15, 0.0  ;;  %v4839_v25 = vpop.f32.mrb[122].mxu0 }
 0xb6d   :  { %v3910_v34 = vadd.f32 %v3909_v7, %v3908_v63  ;;  %v3859_v59 = vmul.f32 %v4839_v25, %v6192_v47  ;;  %v3795_v14 = vpop.f32.mrb[123].mxu0 }
 0xb6e   :  { %v3858_v28 = vmul.f32 %v3795_v14, %v6193_v24 }
 0xb6f   :  { %v3912_v62 = vadd.f32 %v3911_v48, %v3910_v34  ;;  %v3915_v32 = vsel %vm2078_vm3, %v3859_v59, 0.0 }
 0xb70   :  { %v3913_v35 = vsel %vm2078_vm3, %v3858_v28, 0.0  ;;  %v4842_v46 = vpop.f32.mrb[124].mxu0 }
 0xb71   :  { %v3914_v58 = vadd.f32 %v3913_v35, %v3912_v62  ;;  %v3861_v40 = vmul.f32 %v4842_v46, %v6194_v3  ;;  %v3805_v5 = vpop.f32.mrb[125].mxu0 }
 0xb72   :  { %v3860_v17 = vmul.f32 %v3805_v5, %v6195_v19 }
 0xb73   :  { %v3916_v38 = vadd.f32 %v3915_v32, %v3914_v58  ;;  %v3919_v52 = vsel %vm2078_vm3, %v3861_v40, 0.0 }
 0xb74   :  { %v3917_v56 = vsel %vm2078_vm3, %v3860_v17, 0.0  ;;  %v4845_v10 = vpop.f32.mrb[126].mxu0 }
 0xb75   :  { %v3918_v54 = vadd.f32 %v3917_v56, %v3916_v38  ;;  %v3863_v29 = vmul.f32 %v4845_v10, %v6196_v53  ;;  %v3815_v9 = vpop.f32.mrb[127].mxu0 }
 0xb76   :  { %v3862_v22 = vmul.f32 %v3815_v9, %v6197_v20 }
 0xb77   :  { %v3920_v21 = vadd.f32 %v3919_v52, %v3918_v54  ;;  %v3923_v6 = vsel %vm2078_vm3, %v3863_v29, 0.0 }
 0xb78   :  { %v3921_v16 = vsel %vm2078_vm3, %v3862_v22, 0.0  ;;  %v4848_v26 = vpop.f32.mrb[128].mxu0 }
 0xb79   :  { %v3922_v61 = vadd.f32 %v3921_v16, %v3920_v21  ;;  %v3865_v36 = vmul.f32 %v4848_v26, %v5612_v30  ;;  %v3825_v11 = vpop.f32.mrb[129].mxu0 }
 0xb7a   :  { %v3864_v33 = vmul.f32 %v3825_v11, %v6155_v55 }
 0xb7b   :  { %v3924_v43 = vadd.f32 %v3923_v6, %v3922_v61  ;;  %v3927_v44 = vsel %vm2078_vm3, %v3865_v36, 0.0 }
 0xb7c   :  { %v3925_v31 = vsel %vm2078_vm3, %v3864_v33, 0.0 }
 0xb7d   :  { %v3926_v37 = vadd.f32 %v3925_v31, %v3924_v43 }
 0xb7f   :  { %v3928_v1 = vadd.f32 %v3927_v44, %v3926_v37 }
 0xb81   :  { %v3930_v41 = vmul.f32 %v3928_v1, %v3928_v1 }
 0xb83   :  { %4866 = vmatmul.mubr.msk.f32.vlgmr.msra.gmra.mrb[130].mxu0 %vm2078_vm3, %v3930_v41 }
 0xc56   :  { %v4000_v42 = vpop.f32.mrb[130].mxu0 }
 0xc57   :  { %5034 = vrsqrt.f32 %v4000_v42  ;;  %v4867_v23 = vpop.f32.mrb[131].mxu0  ;;  %vm4007_vm10 = vcmp.eq.f32.partialorder %v4000_v42, inf  ;;  %v4010_v50 = vand.u32 2147483648, %v4000_v42  ;;  %vm4009_vm11 = vcmp.eq.f32.partialorder %v4000_v42, 0.0 }
 0xc58   :  { %v4004_v2 = vadd.f32 1.0, %v4000_v42 }
 0xc61   :  { %v5035_v49 = vpop.eup %5034 }
 0xc62   :  { %v4006_v30 = vmul.f32 %v5035_v49, %v4000_v42 }
 0xc64   :  { %v4008_v0 = vsel %vm4007_vm10, %v4000_v42, %v4006_v30 }
 0xc65   :  { %v4011_v55 = vsel %vm4009_vm11, %v4010_v50, %v4008_v0 }
 0xc66   :  { %v4012_v13 = vadd.f32 1e-08, %v4011_v55 }
 0xc68   :  { %v4013_v4 = vmul.f32 %v4012_v13, %v4004_v2 }
 0xc6a   :  { %5036 = vrcp.f32 %v4013_v4 }
 0xc74   :  { %v5037_v60 = vpop.eup %5036 }
 0xc75   :  { %v4015_v8 = vmul.f32 %v5037_v60, %v4000_v42 }
 0xc77   :  { %4871 = vmatmul.mubr.msk.f32.vlgmr.msra.gmra.mrb[74].mxu1 %vm2230_vm6, %v4015_v8 }
 0xd4a   :  { %v4085_v27 = vpop.f32.mrb[74].mxu1 }
 0xd4b   :  { %v4089_v39 = vmul.f32 %v4085_v27, %v3928_v1  ;;  %v4872_v45 = vpop.f32.mrb[75].mxu1 }
 0xd4d   :  { %4090 = vst.msk [vmem:[#allocation3] sm:$0xff] %vm2078_vm3, %v4089_v39 }
 0xd4e   :  { %5049 = shalt.err (!%p5046_p4)
}
 0xd4f   :  { %s5050_s30 = scalar_lea.hbm %s6046_s4, 128 }
 0xd50   :  { %p5051_p5 = scmp.ne.s32.totalorder %s6046_s4, %s5050_s30  ;;  %p5054_p6 = scmp.lt.u32.totalorder %s5050_s30, %s6046_s4 }
 0xd52   :  { %p5056_p7 = pnand %p5054_p6, %p5051_p5 }
 0xd54   :  { %5059 = shalt.err (!%p5056_p7)
}
 0xd55   :  { %4100 = dma.vmem_to_hbm [thread:$0]  %s4098_s26, 128, %s6046_s4, [#allocation4]  }
 0xd56   :  { %5060 = dma.done.wait [#allocation4], 128  }
 0xd57   :  { %5061 = vsyncadd [#allocation4], 4294967168 }
 0xd58   :  { %4104 = vsyncpa [#allocation4], 1 }

</bundles_post_ra>
